<compile_context>
chip_gen: v7x
topology: tpu7x:2x2x1
jax: 0.10.0
libtpu: 0.0.40
codegen_flags: <defaults>
</compile_context>

<pallas_src>
import math
from functools import partial

import jax
import jax.numpy as jnp
from jax.experimental import pallas as pl
from jax.experimental.pallas import tpu as pltpu


_TILE_T = 256          # rows of T per grid step (multiple of 8); full T if smaller
_PAR2 = pltpu.CompilerParams(dimension_semantics=("parallel", "parallel"))


def _row_tile(n, target=_TILE_T):
    return n if n <= target else target


# ----------------------------------------------------------------------------
# Kernels
# ----------------------------------------------------------------------------
def _demb_kernel(emb_ref, w1_ref, b1_ref, w2_ref, b2_ref, wd_ref, bd_ref, o_ref):
    # DiffusionEmbedding MLP (silu x2) fused with all layers' diffusion_projection.
    x = jnp.dot(emb_ref[...], w1_ref[...], preferred_element_type=jnp.float32) + b1_ref[...]
    x = x * jax.nn.sigmoid(x)
    x = jnp.dot(x, w2_ref[...], preferred_element_type=jnp.float32) + b2_ref[...]
    x = x * jax.nn.sigmoid(x)
    x = jnp.dot(x, wd_ref[...], preferred_element_type=jnp.float32) + bd_ref[...]
    o_ref[...] = x.astype(o_ref.dtype)


def _convq_kernel(ys_ref, wdil_ref, bdil_ref, wq_ref, o_ref):
    # dilated Conv1d (as shifted-stack matmul) fused with the attention q projection.
    h = jnp.dot(ys_ref[...], wdil_ref[...], preferred_element_type=jnp.float32)
    h = h + bdil_ref[...]
    q = jnp.dot(h.astype(wq_ref.dtype), wq_ref[...], preferred_element_type=jnp.float32)
    o_ref[...] = q.astype(o_ref.dtype)


def _kv_kernel(spec_ref, wc_ref, bc_ref, wkv_ref, o_ref):
    # conditioner_projection fused with the (bias-free) k|v projections.
    cond = jnp.dot(spec_ref[...], wc_ref[...], preferred_element_type=jnp.float32)
    cond = cond + bc_ref[...]
    kv = jnp.dot(cond.astype(wkv_ref.dtype), wkv_ref[...], preferred_element_type=jnp.float32)
    o_ref[...] = kv.astype(o_ref.dtype)


def _attn_kernel(scale, heads, dim_head, q_ref, kv_ref, o_ref):
    # All heads handled per grid step; output written directly in (T, H*D) layout
    # so the out block is lane-dense (512 wide).
    q = q_ref[...]                       # (TM, H*D) bf16
    kv = kv_ref[...]                     # (Ts, 2*H*D) bf16
    hd = heads * dim_head
    outs = []
    for h in range(heads):
        qh = q[:, h * dim_head:(h + 1) * dim_head]
        kh = kv[:, h * dim_head:(h + 1) * dim_head]
        vh = kv[:, hd + h * dim_head: hd + (h + 1) * dim_head]
        s = jax.lax.dot_general(qh, kh, (((1,), (1,)), ((), ())),
                                preferred_element_type=jnp.float32) * scale
        m = jnp.max(s, axis=-1, keepdims=True)
        p = jnp.exp(s - m)
        denom = jnp.sum(p, axis=-1, keepdims=True)
        p = p * pl.reciprocal(denom, approx=True)
        oh = jnp.dot(p.astype(vh.dtype), vh, preferred_element_type=jnp.float32)
        outs.append(oh)
    o_ref[...] = jnp.concatenate(outs, axis=-1).astype(o_ref.dtype)


def _post_kernel(C, ao_ref, xs_ref, wo_ref, bo_ref, wp_ref, bp_ref, o_ref):
    # to_out projection + gated sigmoid*tanh + output_projection + residual/skip
    # accumulate, all on the combined f32 state xs = [x | skip_sum].
    y2 = jnp.dot(ao_ref[...], wo_ref[...], preferred_element_type=jnp.float32) + bo_ref[...]
    g = jax.nn.sigmoid(y2[:, :C]) * jnp.tanh(y2[:, C:])
    out = jnp.dot(g.astype(wp_ref.dtype), wp_ref[...],
                  preferred_element_type=jnp.float32) + bp_ref[...]
    xs = xs_ref[...]
    x_new = (xs[:, :C] + out[:, :C]) * 0.7071067811865476
    skip_new = xs[:, C:] + out[:, C:]
    o_ref[...] = jnp.concatenate([x_new, skip_new], axis=-1).astype(o_ref.dtype)


def _final_kernel(C, inv_sqrt_layers, xs_ref, ws_ref, bs_ref, wo_ref, bo_ref, o_ref):
    # skip_projection + relu fused with the 1-wide output projection (done as a
    # VPU multiply + lane reduction instead of an N=1 MXU matmul).
    ssum = xs_ref[:, C:] * inv_sqrt_layers
    s = jnp.dot(ssum.astype(ws_ref.dtype), ws_ref[...],
                preferred_element_type=jnp.float32) + bs_ref[...]
    s = jnp.maximum(s, 0.0)
    out = jnp.sum(s * wo_ref[...], axis=-1, keepdims=True) + bo_ref[...]
    o_ref[...] = out.astype(o_ref.dtype)


# ----------------------------------------------------------------------------
# Wrappers
# ----------------------------------------------------------------------------
def demb_pallas(emb, w1, b1, w2, b2, wd, bd):
    B = emb.shape[0]
    N = wd.shape[1]
    return pl.pallas_call(
        _demb_kernel,
        out_shape=jax.ShapeDtypeStruct((B, N), jnp.float32),
    )(emb, w1, b1, w2, b2, wd, bd)


def convq_pallas(ystack, w_dil, b_dil, w_q, tile_t=_TILE_T):
    B, T, K3 = ystack.shape
    C2 = w_dil.shape[1]
    N = w_q.shape[1]
    TM = _row_tile(T, tile_t)
    return pl.pallas_call(
        _convq_kernel,
        out_shape=jax.ShapeDtypeStruct((B, T, N), jnp.bfloat16),
        grid=(B, pl.cdiv(T, TM)),
        in_specs=[
            pl.BlockSpec((None, TM, K3), lambda b, t: (b, t, 0)),
            pl.BlockSpec((K3, C2), lambda b, t: (0, 0)),
            pl.BlockSpec((1, C2), lambda b, t: (0, 0)),
            pl.BlockSpec((C2, N), lambda b, t: (0, 0)),
        ],
        out_specs=pl.BlockSpec((None, TM, N), lambda b, t: (b, t, 0)),
        compiler_params=_PAR2,
    )(ystack, w_dil, b_dil, w_q)


def kv_pallas(spec, w_c, b_c, w_kv, tile_t=_TILE_T):
    B, Ts, M = spec.shape
    C2 = w_c.shape[1]
    N = w_kv.shape[1]
    TM = _row_tile(Ts, tile_t)
    return pl.pallas_call(
        _kv_kernel,
        out_shape=jax.ShapeDtypeStruct((B, Ts, N), jnp.bfloat16),
        grid=(B, pl.cdiv(Ts, TM)),
        in_specs=[
            pl.BlockSpec((None, TM, M), lambda b, t: (b, t, 0)),
            pl.BlockSpec((M, C2), lambda b, t: (0, 0)),
            pl.BlockSpec((1, C2), lambda b, t: (0, 0)),
            pl.BlockSpec((C2, N), lambda b, t: (0, 0)),
        ],
        out_specs=pl.BlockSpec((None, TM, N), lambda b, t: (b, t, 0)),
        compiler_params=_PAR2,
    )(spec, w_c, b_c, w_kv)


def attn_pallas(q, kv, scale, heads, dim_head, tile_t=_TILE_T):
    B, T, HD = q.shape
    _, Ts, _ = kv.shape
    TM = _row_tile(T, tile_t)
    # TODO(synk): for very long conditioners, Tk should be tiled with an online
    # (flash-style) softmax; here the full (Ts, 1024) kv block stays resident.
    return pl.pallas_call(
        partial(_attn_kernel, scale, heads, dim_head),
        out_shape=jax.ShapeDtypeStruct((B, T, HD), jnp.bfloat16),
        grid=(B, pl.cdiv(T, TM)),
        in_specs=[
            pl.BlockSpec((None, TM, HD), lambda b, t: (b, t, 0)),
            pl.BlockSpec((None, Ts, 2 * HD), lambda b, t: (b, 0, 0)),
        ],
        out_specs=pl.BlockSpec((None, TM, HD), lambda b, t: (b, t, 0)),
        compiler_params=_PAR2,
    )(q, kv)


def post_pallas(ao, xs, w_o, b_o, w_p, b_p, C, tile_t=_TILE_T):
    B, T, HD = ao.shape
    TM = _row_tile(T, tile_t)
    return pl.pallas_call(
        partial(_post_kernel, C),
        out_shape=jax.ShapeDtypeStruct((B, T, 2 * C), jnp.float32),
        grid=(B, pl.cdiv(T, TM)),
        in_specs=[
            pl.BlockSpec((None, TM, HD), lambda b, t: (b, t, 0)),
            pl.BlockSpec((None, TM, 2 * C), lambda b, t: (b, t, 0)),
            pl.BlockSpec((HD, 2 * C), lambda b, t: (0, 0)),
            pl.BlockSpec((1, 2 * C), lambda b, t: (0, 0)),
            pl.BlockSpec((C, 2 * C), lambda b, t: (0, 0)),
            pl.BlockSpec((1, 2 * C), lambda b, t: (0, 0)),
        ],
        out_specs=pl.BlockSpec((None, TM, 2 * C), lambda b, t: (b, t, 0)),
        compiler_params=_PAR2,
    )(ao, xs, w_o, b_o, w_p, b_p)


def final_pallas(xs, w_skip, b_skip, w_out_row, b_out, C, n_layers, tile_t=_TILE_T):
    B, T, _ = xs.shape
    TM = _row_tile(T, tile_t)
    inv = 1.0 / math.sqrt(float(n_layers))
    return pl.pallas_call(
        partial(_final_kernel, C, inv),
        out_shape=jax.ShapeDtypeStruct((B, T, 1), jnp.float32),
        grid=(B, pl.cdiv(T, TM)),
        in_specs=[
            pl.BlockSpec((None, TM, 2 * C), lambda b, t: (b, t, 0)),
            pl.BlockSpec((C, C), lambda b, t: (0, 0)),
            pl.BlockSpec((1, C), lambda b, t: (0, 0)),
            pl.BlockSpec((1, C), lambda b, t: (0, 0)),
            pl.BlockSpec((1, 1), lambda b, t: (0, 0)),
        ],
        out_specs=pl.BlockSpec((None, TM, 1), lambda b, t: (b, t, 0)),
        compiler_params=_PAR2,
    )(xs, w_skip, b_skip, w_out_row, b_out)


# ----------------------------------------------------------------------------
# Parameter construction (deterministic, synthetic).  bf16 matmul weights,
# f32 biases / accumulator-path params.
# ----------------------------------------------------------------------------
def init_params(key, C, n_mels, n_layers, dilation_cycle, max_steps,
                heads=8, dim_head=64):
    keys = iter(jax.random.split(key, 16 + 16 * n_layers))

    def nrm(shape, scale=0.1):
        return scale * jax.random.normal(next(keys), shape, jnp.float32)

    bf = jnp.bfloat16
    inner = heads * dim_head
    params = {}

    # input_projection Conv1d(1, C, 1) — kept f32 (VPU broadcast FMA in glue)
    params["in_w"] = nrm((C,))
    params["in_b"] = nrm((C,))

    # DiffusionEmbedding table (max_steps, 128): [sin | cos]
    steps = jnp.arange(max_steps, dtype=jnp.float32)[:, None]
    dims = jnp.arange(64, dtype=jnp.float32)[None, :]
    table = steps * 10.0 ** (dims * 4.0 / 63.0)
    params["emb_table"] = jnp.concatenate([jnp.sin(table), jnp.cos(table)], axis=1)
    params["p1_w"] = nrm((128, 512))
    params["p1_b"] = nrm((512,)).reshape(1, 512)
    params["p2_w"] = nrm((512, 512))
    params["p2_b"] = nrm((512,)).reshape(1, 512)

    dilations = tuple(2 ** (i % dilation_cycle) for i in range(n_layers))
    layers, diff_ws, diff_bs = [], [], []
    for _ in range(n_layers):
        # dilated Conv1d(C, 2C, 3) — torch layout (out, in, k) flattened to (3C, 2C)
        dil_w = nrm((2 * C, C, 3))
        dil_w_flat = jnp.transpose(dil_w, (2, 1, 0)).reshape(3 * C, 2 * C)
        q_w = nrm((2 * C, inner))
        k_w = nrm((2 * C, inner))
        v_w = nrm((2 * C, inner))
        o_w = nrm((inner, 2 * C))
        o_b = nrm((2 * C,))
        diff_ws.append(nrm((512, C)))
        diff_bs.append(nrm((C,)))
        cond_w = nrm((n_mels, 2 * C))
        cond_b = nrm((2 * C,))
        outp_w = nrm((C, 2 * C))
        outp_b = nrm((2 * C,))
        layers.append({
            "dil_w": dil_w_flat.astype(bf),
            "dil_b": nrm((2 * C,)).reshape(1, 2 * C),
            "q_w": q_w.astype(bf),
            "kv_w": jnp.concatenate([k_w, v_w], axis=1).astype(bf),   # (2C, 1024)
            "o_w": o_w.astype(bf),
            "o_b": o_b.reshape(1, 2 * C),
            "cond_w": cond_w.astype(bf),
            "cond_b": cond_b.reshape(1, 2 * C),
            "outp_w": outp_w.astype(bf),
            "outp_b": outp_b.reshape(1, 2 * C),
        })
    params["layers"] = layers
    # all layers' diffusion_projection fused: (512, n_layers*C)
    params["diff_w_all"] = jnp.concatenate(diff_ws, axis=1)
    params["diff_b_all"] = jnp.concatenate(diff_bs).reshape(1, -1)

    params["skip_w"] = nrm((C, C)).astype(bf)
    params["skip_b"] = nrm((C,)).reshape(1, C)
    # output_projection Conv1d(C, 1, 1), zero-initialized weight (as row for VPU reduce)
    params["out_w_row"] = jnp.zeros((1, C), jnp.float32)
    params["out_b"] = nrm((1,)).reshape(1, 1)
    return params, dilations


# ----------------------------------------------------------------------------
# Forward pass
# ----------------------------------------------------------------------------
def hifidiff_forward(params, audio, spectrogram, diffusion_step, dilations,
                     heads=8, dim_head=64, tile_t=_TILE_T):
    """audio: (B, T) f32; spectrogram: (B, n_mels, Ts) f32;
    diffusion_step: (B,) int32.  Returns (B, 1, T) like the PyTorch module."""
    B, T = audio.shape
    C = params["in_b"].shape[0]
    L = len(params["layers"])
    scale = dim_head ** (-0.5)

    # input projection (Conv1d(1,C,1)) + relu as a VPU broadcast FMA (K=1 -> keep off MXU)
    x0 = jnp.maximum(audio[:, :, None] * params["in_w"][None, None, :]
                     + params["in_b"][None, None, :], 0.0)            # (B, T, C) f32
    # combined f32 state: [x | skip_sum]
    xs = jnp.concatenate([x0, jnp.zeros_like(x0)], axis=-1)           # (B, T, 2C)

    # diffusion embedding MLP + all layers' diffusion projections in one kernel
    emb = params["emb_table"][diffusion_step]                         # (B, 128)
    dsteps = demb_pallas(emb, params["p1_w"], params["p1_b"],
                         params["p2_w"], params["p2_b"],
                         params["diff_w_all"], params["diff_b_all"])  # (B, L*C)

    spec = jnp.transpose(spectrogram, (0, 2, 1)).astype(jnp.bfloat16)  # (B, Ts, n_mels)

    for li, lyr in enumerate(params["layers"]):
        d = dilations[li]
        dstep = dsteps[:, li * C:(li + 1) * C]                        # (B, C)
        y = xs[..., :C] + dstep[:, None, :]                           # (B, T, C) f32

        # dilated Conv1d(C,2C,3,padding=d,dilation=d) as a shifted channel stack.
        # TODO(synk): the (B,T,3C) stack is still materialized in HBM (bf16); an
        # in-kernel halo read would cut this layer's HBM traffic further.
        ypad = jnp.pad(y, ((0, 0), (d, d), (0, 0)))
        ystack = jnp.concatenate(
            [ypad[:, 0:T], ypad[:, d:d + T], ypad[:, 2 * d:2 * d + T]],
            axis=-1).astype(jnp.bfloat16)                             # (B, T, 3C)

        q = convq_pallas(ystack, lyr["dil_w"], lyr["dil_b"], lyr["q_w"], tile_t)   # (B,T,512)
        kv = kv_pallas(spec, lyr["cond_w"], lyr["cond_b"], lyr["kv_w"], tile_t)    # (B,Ts,1024)
        ao = attn_pallas(q, kv, scale, heads, dim_head, tile_t)                    # (B,T,512)
        # TODO(synk): nn.Dropout in to_out is identity at inference; omitted.
        xs = post_pallas(ao, xs, lyr["o_w"], lyr["o_b"],
                         lyr["outp_w"], lyr["outp_b"], C, tile_t)                  # (B,T,2C)

    out = final_pallas(xs, params["skip_w"], params["skip_b"],
                       params["out_w_row"], params["out_b"], C, L, tile_t)         # (B,T,1)
    return jnp.transpose(out, (0, 2, 1))                                           # (B,1,T)


# ----------------------------------------------------------------------------
if __name__ == "__main__":
    key = jax.random.PRNGKey(0)
    B, T, Ts = 2, 16, 8
    C, n_mels = 4, 8
    n_layers, dil_cycle, max_steps = 2, 2, 50

    kp, ka, ks, kd = jax.random.split(key, 4)
    params, dilations = init_params(kp, C, n_mels, n_layers, dil_cycle, max_steps)

    audio = jax.random.normal(ka, (B, T), jnp.float32)
    spectrogram = jax.random.normal(ks, (B, n_mels, Ts), jnp.float32)
    diffusion_step = jax.random.randint(kd, (B,), 0, max_steps)

    fwd = jax.jit(partial(hifidiff_forward, dilations=dilations))
    out = fwd(params, audio, spectrogram, diffusion_step)
    out = jax.block_until_ready(out)
    assert out.shape == (B, 1, T), out.shape
    assert bool(jnp.all(jnp.isfinite(out)))
    print("KERNEL_OK")
</pallas_src>

<mosaic_0001>
module attributes {stable_mosaic.version = 11 : i64} {
  func.func @_demb_kernel(%arg0: memref<2x128xf32, #tpu.memory_space<vmem>>, %arg1: memref<128x512xf32, #tpu.memory_space<vmem>>, %arg2: memref<1x512xf32, #tpu.memory_space<vmem>>, %arg3: memref<512x512xf32, #tpu.memory_space<vmem>>, %arg4: memref<1x512xf32, #tpu.memory_space<vmem>>, %arg5: memref<512x8xf32, #tpu.memory_space<vmem>>, %arg6: memref<1x8xf32, #tpu.memory_space<vmem>>, %arg7: memref<2x8xf32, #tpu.memory_space<vmem>>) attributes {dimension_semantics = [], scalar_prefetch = 0 : i64, scratch_operands = 0 : i64, tpu.core_type = #tpu.core_type<tc>} {
    %c0 = arith.constant 0 : index
    %c0_0 = arith.constant 0 : index
    %0 = vector.load %arg0[%c0, %c0_0] : memref<2x128xf32, #tpu.memory_space<vmem>>, vector<2x128xf32>
    %c0_1 = arith.constant 0 : index
    %c0_2 = arith.constant 0 : index
    %1 = vector.load %arg1[%c0_1, %c0_2] : memref<128x512xf32, #tpu.memory_space<vmem>>, vector<128x512xf32>
    %cst = arith.constant dense<0.000000e+00> : vector<2x512xf32>
    %2 = tpu.matmul %0, %1, %cst {dimension_numbers = #tpu.dot_dimension_numbers<[1], [0], [0], [1], [0, 0, 1, 1], [], []>} : vector<2x128xf32>, vector<128x512xf32>, vector<2x512xf32> -> vector<2x512xf32>
    %c0_3 = arith.constant 0 : index
    %c0_4 = arith.constant 0 : index
    %3 = vector.load %arg2[%c0_3, %c0_4] : memref<1x512xf32, #tpu.memory_space<vmem>>, vector<1x512xf32>
    %4 = vector.broadcast %3 : vector<1x512xf32> to vector<2x512xf32>
    %5 = arith.addf %2, %4 : vector<2x512xf32>
    %6 = arith.negf %5 : vector<2x512xf32>
    %7 = math.exp %6 : vector<2x512xf32>
    %cst_5 = arith.constant 1.000000e+00 : f32
    %8 = vector.broadcast %cst_5 : f32 to vector<2x512xf32>
    %9 = arith.addf %8, %7 : vector<2x512xf32>
    %10 = arith.divf %8, %9 : vector<2x512xf32>
    %11 = arith.mulf %5, %10 : vector<2x512xf32>
    %c0_6 = arith.constant 0 : index
    %c0_7 = arith.constant 0 : index
    %12 = vector.load %arg3[%c0_6, %c0_7] : memref<512x512xf32, #tpu.memory_space<vmem>>, vector<512x512xf32>
    %cst_8 = arith.constant dense<0.000000e+00> : vector<2x512xf32>
    %13 = tpu.matmul %11, %12, %cst_8 {dimension_numbers = #tpu.dot_dimension_numbers<[1], [0], [0], [1], [0, 0, 1, 1], [], []>} : vector<2x512xf32>, vector<512x512xf32>, vector<2x512xf32> -> vector<2x512xf32>
    %c0_9 = arith.constant 0 : index
    %c0_10 = arith.constant 0 : index
    %14 = vector.load %arg4[%c0_9, %c0_10] : memref<1x512xf32, #tpu.memory_space<vmem>>, vector<1x512xf32>
    %15 = vector.broadcast %14 : vector<1x512xf32> to vector<2x512xf32>
    %16 = arith.addf %13, %15 : vector<2x512xf32>
    %17 = arith.negf %16 : vector<2x512xf32>
    %18 = math.exp %17 : vector<2x512xf32>
    %cst_11 = arith.constant 1.000000e+00 : f32
    %19 = vector.broadcast %cst_11 : f32 to vector<2x512xf32>
    %20 = arith.addf %19, %18 : vector<2x512xf32>
    %21 = arith.divf %19, %20 : vector<2x512xf32>
    %22 = arith.mulf %16, %21 : vector<2x512xf32>
    %c0_12 = arith.constant 0 : index
    %c0_13 = arith.constant 0 : index
    %23 = vector.load %arg5[%c0_12, %c0_13] : memref<512x8xf32, #tpu.memory_space<vmem>>, vector<512x8xf32>
    %cst_14 = arith.constant dense<0.000000e+00> : vector<2x8xf32>
    %24 = tpu.matmul %22, %23, %cst_14 {dimension_numbers = #tpu.dot_dimension_numbers<[1], [0], [0], [1], [0, 0, 1, 1], [], []>} : vector<2x512xf32>, vector<512x8xf32>, vector<2x8xf32> -> vector<2x8xf32>
    %c0_15 = arith.constant 0 : index
    %c0_16 = arith.constant 0 : index
    %25 = vector.load %arg6[%c0_15, %c0_16] : memref<1x8xf32, #tpu.memory_space<vmem>>, vector<1x8xf32>
    %26 = vector.broadcast %25 : vector<1x8xf32> to vector<2x8xf32>
    %27 = arith.addf %24, %26 : vector<2x8xf32>
    %c0_17 = arith.constant 0 : index
    %c0_18 = arith.constant 0 : index
    %28 = vector.load %arg7[%c0_17, %c0_18] : memref<2x8xf32, #tpu.memory_space<vmem>>, vector<2x8xf32>
    tpu.vector_store %arg7[%c0_17, %c0_18], %27 {strides = array<i32>} : memref<2x8xf32, #tpu.memory_space<vmem>>, vector<2x8xf32>,
    return
  }
}

module attributes {stable_mosaic.version = 11 : i64} {
  func.func @_convq_kernel(%arg0: i32, %arg1: i32, %arg2: memref<1x16x12xbf16, #tpu.memory_space<vmem>>, %arg3: memref<12x8xbf16, #tpu.memory_space<vmem>>, %arg4: memref<1x8xf32, #tpu.memory_space<vmem>>, %arg5: memref<8x512xbf16, #tpu.memory_space<vmem>>, %arg6: memref<1x16x512xbf16, #tpu.memory_space<vmem>>) attributes {dimension_semantics = [#tpu.dimension_semantics<parallel>, #tpu.dimension_semantics<parallel>], iteration_bounds = array<i64: 2, 1>, scalar_prefetch = 0 : i64, scratch_operands = 0 : i64, tpu.core_type = #tpu.core_type<tc>, window_params = [{transform_indices = @transform_0, window_bounds = array<i64: 1, 16, 12>}, {pipeline_mode = #tpu.pipeline_mode<synchronous>, transform_indices = @transform_1, window_bounds = array<i64: 12, 8>}, {pipeline_mode = #tpu.pipeline_mode<synchronous>, transform_indices = @transform_2, window_bounds = array<i64: 1, 8>}, {pipeline_mode = #tpu.pipeline_mode<synchronous>, transform_indices = @transform_3, window_bounds = array<i64: 8, 512>}, {transform_indices = @transform_4, window_bounds = array<i64: 1, 16, 512>}]} {
    %c0 = arith.constant 0 : index
    %c0_0 = arith.constant 0 : index
    %c0_1 = arith.constant 0 : index
    %0 = vector.load %arg2[%c0, %c0_0, %c0_1] : memref<1x16x12xbf16, #tpu.memory_space<vmem>>, vector<1x16x12xbf16>
    %1 = vector.shape_cast %0 : vector<1x16x12xbf16> to vector<16x12xbf16>
    %c0_2 = arith.constant 0 : index
    %c0_3 = arith.constant 0 : index
    %2 = vector.load %arg3[%c0_2, %c0_3] : memref<12x8xbf16, #tpu.memory_space<vmem>>, vector<12x8xbf16>
    %cst = arith.constant dense<0.000000e+00> : vector<16x8xf32>
    %3 = tpu.matmul %1, %2, %cst {dimension_numbers = #tpu.dot_dimension_numbers<[1], [0], [0], [1], [0, 0, 1, 1], [], []>} : vector<16x12xbf16>, vector<12x8xbf16>, vector<16x8xf32> -> vector<16x8xf32>
    %c0_4 = arith.constant 0 : index
    %c0_5 = arith.constant 0 : index
    %4 = vector.load %arg4[%c0_4, %c0_5] : memref<1x8xf32, #tpu.memory_space<vmem>>, vector<1x8xf32>
    %5 = vector.broadcast %4 : vector<1x8xf32> to vector<16x8xf32>
    %6 = arith.addf %3, %5 : vector<16x8xf32>
    %7 = arith.truncf %6 : vector<16x8xf32> to vector<16x8xbf16>
    %c0_6 = arith.constant 0 : index
    %c0_7 = arith.constant 0 : index
    %8 = vector.load %arg5[%c0_6, %c0_7] : memref<8x512xbf16, #tpu.memory_space<vmem>>, vector<8x512xbf16>
    %cst_8 = arith.constant dense<0.000000e+00> : vector<16x512xf32>
    %9 = tpu.matmul %7, %8, %cst_8 {dimension_numbers = #tpu.dot_dimension_numbers<[1], [0], [0], [1], [0, 0, 1, 1], [], []>} : vector<16x8xbf16>, vector<8x512xbf16>, vector<16x512xf32> -> vector<16x512xf32>
    %10 = arith.truncf %9 : vector<16x512xf32> to vector<16x512xbf16>
    %c0_9 = arith.constant 0 : index
    %c0_10 = arith.constant 0 : index
    %c0_11 = arith.constant 0 : index
    %11 = vector.load %arg6[%c0_9, %c0_10, %c0_11] : memref<1x16x512xbf16, #tpu.memory_space<vmem>>, vector<1x16x512xbf16>
    %12 = vector.shape_cast %11 : vector<1x16x512xbf16> to vector<16x512xbf16>
    %13 = vector.shape_cast %10 : vector<16x512xbf16> to vector<1x16x512xbf16>
    tpu.vector_store %arg6[%c0_9, %c0_10, %c0_11], %13 {strides = array<i32>} : memref<1x16x512xbf16, #tpu.memory_space<vmem>>, vector<1x16x512xbf16>,
    return
  }
  func.func @transform_0(%arg0: i32, %arg1: i32) -> (i32, i32, i32) {
    %c0_i32 = arith.constant 0 : i32
    %c0_i32_0 = arith.constant 0 : i32
    return %arg0, %arg1, %c0_i32 : i32, i32, i32
  }
  func.func @transform_1(%arg0: i32, %arg1: i32) -> (i32, i32) {
    %c0_i32 = arith.constant 0 : i32
    %c0_i32_0 = arith.constant 0 : i32
    %c0_i32_1 = arith.constant 0 : i32
    return %c0_i32, %c0_i32_0 : i32, i32
  }
  func.func @transform_2(%arg0: i32, %arg1: i32) -> (i32, i32) {
    %c0_i32 = arith.constant 0 : i32
    %c0_i32_0 = arith.constant 0 : i32
    %c0_i32_1 = arith.constant 0 : i32
    return %c0_i32, %c0_i32_0 : i32, i32
  }
  func.func @transform_3(%arg0: i32, %arg1: i32) -> (i32, i32) {
    %c0_i32 = arith.constant 0 : i32
    %c0_i32_0 = arith.constant 0 : i32
    %c0_i32_1 = arith.constant 0 : i32
    return %c0_i32, %c0_i32_0 : i32, i32
  }
  func.func @transform_4(%arg0: i32, %arg1: i32) -> (i32, i32, i32) {
    %c0_i32 = arith.constant 0 : i32
    %c0_i32_0 = arith.constant 0 : i32
    return %arg0, %arg1, %c0_i32 : i32, i32, i32
  }
}

module attributes {stable_mosaic.version = 11 : i64} {
  func.func @_attn_kernel(%arg0: i32, %arg1: i32, %arg2: memref<1x16x512xbf16, #tpu.memory_space<vmem>>, %arg3: memref<1x8x1024xbf16, #tpu.memory_space<vmem>>, %arg4: memref<1x16x512xbf16, #tpu.memory_space<vmem>>) attributes {dimension_semantics = [#tpu.dimension_semantics<parallel>, #tpu.dimension_semantics<parallel>], iteration_bounds = array<i64: 2, 1>, scalar_prefetch = 0 : i64, scratch_operands = 0 : i64, tpu.core_type = #tpu.core_type<tc>, window_params = [{transform_indices = @transform_0, window_bounds = array<i64: 1, 16, 512>}, {transform_indices = @transform_1, window_bounds = array<i64: 1, 8, 1024>}, {transform_indices = @transform_2, window_bounds = array<i64: 1, 16, 512>}]} {
    %c0 = arith.constant 0 : index
    %c0_0 = arith.constant 0 : index
    %c0_1 = arith.constant 0 : index
    %0 = vector.load %arg2[%c0, %c0_0, %c0_1] : memref<1x16x512xbf16, #tpu.memory_space<vmem>>, vector<1x16x512xbf16>
    %1 = vector.shape_cast %0 : vector<1x16x512xbf16> to vector<16x512xbf16>
    %c0_2 = arith.constant 0 : index
    %c0_3 = arith.constant 0 : index
    %c0_4 = arith.constant 0 : index
    %2 = vector.load %arg3[%c0_2, %c0_3, %c0_4] : memref<1x8x1024xbf16, #tpu.memory_space<vmem>>, vector<1x8x1024xbf16>
    %3 = vector.shape_cast %2 : vector<1x8x1024xbf16> to vector<8x1024xbf16>
    %4 = vector.extract_strided_slice %1 {offsets = [0, 0], sizes = [16, 64], strides = [1, 1]} : vector<16x512xbf16> to vector<16x64xbf16>
    %5 = vector.extract_strided_slice %3 {offsets = [0, 0], sizes = [8, 64], strides = [1, 1]} : vector<8x1024xbf16> to vector<8x64xbf16>
    %6 = vector.extract_strided_slice %3 {offsets = [0, 512], sizes = [8, 64], strides = [1, 1]} : vector<8x1024xbf16> to vector<8x64xbf16>
    %cst = arith.constant dense<0.000000e+00> : vector<16x8xf32>
    %7 = tpu.matmul %4, %5, %cst {dimension_numbers = #tpu.dot_dimension_numbers<[1], [1], [0], [0], [0, 0, 1, 0], [], []>} : vector<16x64xbf16>, vector<8x64xbf16>, vector<16x8xf32> -> vector<16x8xf32>
    %cst_5 = arith.constant 1.250000e-01 : f32
    %8 = vector.broadcast %cst_5 : f32 to vector<16x8xf32>
    %9 = arith.mulf %7, %8 : vector<16x8xf32>
    %cst_6 = arith.constant dense<0xFF800000> : vector<16xf32>
    %10 = vector.multi_reduction <maximumf>, %9, %cst_6 [1] : vector<16x8xf32> to vector<16xf32>
    %11 = vector.shape_cast %10 : vector<16xf32> to vector<16x1xf32>
    %12 = vector.broadcast %11 : vector<16x1xf32> to vector<16x8xf32>
    %13 = arith.subf %9, %12 : vector<16x8xf32>
    %14 = math.exp %13 : vector<16x8xf32>
    %cst_7 = arith.constant dense<0.000000e+00> : vector<16xf32>
    %15 = vector.multi_reduction <add>, %14, %cst_7 [1] : vector<16x8xf32> to vector<16xf32>
    %16 = vector.shape_cast %15 : vector<16xf32> to vector<16x1xf32>
    %17 = tpu.reciprocal %16 {approx = true} : vector<16x1xf32> -> vector<16x1xf32>
    %18 = vector.broadcast %17 : vector<16x1xf32> to vector<16x8xf32>
    %19 = arith.mulf %14, %18 : vector<16x8xf32>
    %20 = arith.truncf %19 : vector<16x8xf32> to vector<16x8xbf16>
    %cst_8 = arith.constant dense<0.000000e+00> : vector<16x64xf32>
    %21 = tpu.matmul %20, %6, %cst_8 {dimension_numbers = #tpu.dot_dimension_numbers<[1], [0], [0], [1], [0, 0, 1, 1], [], []>} : vector<16x8xbf16>, vector<8x64xbf16>, vector<16x64xf32> -> vector<16x64xf32>
    %22 = vector.extract_strided_slice %1 {offsets = [0, 64], sizes = [16, 64], strides = [1, 1]} : vector<16x512xbf16> to vector<16x64xbf16>
    %23 = vector.extract_strided_slice %3 {offsets = [0, 64], sizes = [8, 64], strides = [1, 1]} : vector<8x1024xbf16> to vector<8x64xbf16>
    %24 = vector.extract_strided_slice %3 {offsets = [0, 576], sizes = [8, 64], strides = [1, 1]} : vector<8x1024xbf16> to vector<8x64xbf16>
    %cst_9 = arith.constant dense<0.000000e+00> : vector<16x8xf32>
    %25 = tpu.matmul %22, %23, %cst_9 {dimension_numbers = #tpu.dot_dimension_numbers<[1], [1], [0], [0], [0, 0, 1, 0], [], []>} : vector<16x64xbf16>, vector<8x64xbf16>, vector<16x8xf32> -> vector<16x8xf32>
    %cst_10 = arith.constant 1.250000e-01 : f32
    %26 = vector.broadcast %cst_10 : f32 to vector<16x8xf32>
    %27 = arith.mulf %25, %26 : vector<16x8xf32>
    %cst_11 = arith.constant dense<0xFF800000> : vector<16xf32>
    %28 = vector.multi_reduction <maximumf>, %27, %cst_11 [1] : vector<16x8xf32> to vector<16xf32>
    %29 = vector.shape_cast %28 : vector<16xf32> to vector<16x1xf32>
    %30 = vector.broadcast %29 : vector<16x1xf32> to vector<16x8xf32>
    %31 = arith.subf %27, %30 : vector<16x8xf32>
    %32 = math.exp %31 : vector<16x8xf32>
    %cst_12 = arith.constant dense<0.000000e+00> : vector<16xf32>
    %33 = vector.multi_reduction <add>, %32, %cst_12 [1] : vector<16x8xf32> to vector<16xf32>
    %34 = vector.shape_cast %33 : vector<16xf32> to vector<16x1xf32>
    %35 = tpu.reciprocal %34 {approx = true} : vector<16x1xf32> -> vector<16x1xf32>
    %36 = vector.broadcast %35 : vector<16x1xf32> to vector<16x8xf32>
    %37 = arith.mulf %32, %36 : vector<16x8xf32>
    %38 = arith.truncf %37 : vector<16x8xf32> to vector<16x8xbf16>
    %cst_13 = arith.constant dense<0.000000e+00> : vector<16x64xf32>
    %39 = tpu.matmul %38, %24, %cst_13 {dimension_numbers = #tpu.dot_dimension_numbers<[1], [0], [0], [1], [0, 0, 1, 1], [], []>} : vector<16x8xbf16>, vector<8x64xbf16>, vector<16x64xf32> -> vector<16x64xf32>
    %40 = vector.extract_strided_slice %1 {offsets = [0, 128], sizes = [16, 64], strides = [1, 1]} : vector<16x512xbf16> to vector<16x64xbf16>
    %41 = vector.extract_strided_slice %3 {offsets = [0, 128], sizes = [8, 64], strides = [1, 1]} : vector<8x1024xbf16> to vector<8x64xbf16>
    %42 = vector.extract_strided_slice %3 {offsets = [0, 640], sizes = [8, 64], strides = [1, 1]} : vector<8x1024xbf16> to vector<8x64xbf16>
    %cst_14 = arith.constant dense<0.000000e+00> : vector<16x8xf32>
    %43 = tpu.matmul %40, %41, %cst_14 {dimension_numbers = #tpu.dot_dimension_numbers<[1], [1], [0], [0], [0, 0, 1, 0], [], []>} : vector<16x64xbf16>, vector<8x64xbf16>, vector<16x8xf32> -> vector<16x8xf32>
    %cst_15 = arith.constant 1.250000e-01 : f32
    %44 = vector.broadcast %cst_15 : f32 to vector<16x8xf32>
    %45 = arith.mulf %43, %44 : vector<16x8xf32>
    %cst_16 = arith.constant dense<0xFF800000> : vector<16xf32>
    %46 = vector.multi_reduction <maximumf>, %45, %cst_16 [1] : vector<16x8xf32> to vector<16xf32>
    %47 = vector.shape_cast %46 : vector<16xf32> to vector<16x1xf32>
    %48 = vector.broadcast %47 : vector<16x1xf32> to vector<16x8xf32>
    %49 = arith.subf %45, %48 : vector<16x8xf32>
    %50 = math.exp %49 : vector<16x8xf32>
    %cst_17 = arith.constant dense<0.000000e+00> : vector<16xf32>
    %51 = vector.multi_reduction <add>, %50, %cst_17 [1] : vector<16x8xf32> to vector<16xf32>
    %52 = vector.shape_cast %51 : vector<16xf32> to vector<16x1xf32>
    %53 = tpu.reciprocal %52 {approx = true} : vector<16x1xf32> -> vector<16x1xf32>
    %54 = vector.broadcast %53 : vector<16x1xf32> to vector<16x8xf32>
    %55 = arith.mulf %50, %54 : vector<16x8xf32>
    %56 = arith.truncf %55 : vector<16x8xf32> to vector<16x8xbf16>
    %cst_18 = arith.constant dense<0.000000e+00> : vector<16x64xf32>
    %57 = tpu.matmul %56, %42, %cst_18 {dimension_numbers = #tpu.dot_dimension_numbers<[1], [0], [0], [1], [0, 0, 1, 1], [], []>} : vector<16x8xbf16>, vector<8x64xbf16>, vector<16x64xf32> -> vector<16x64xf32>
    %58 = vector.extract_strided_slice %1 {offsets = [0, 192], sizes = [16, 64], strides = [1, 1]} : vector<16x512xbf16> to vector<16x64xbf16>
    %59 = vector.extract_strided_slice %3 {offsets = [0, 192], sizes = [8, 64], strides = [1, 1]} : vector<8x1024xbf16> to vector<8x64xbf16>
    %60 = vector.extract_strided_slice %3 {offsets = [0, 704], sizes = [8, 64], strides = [1, 1]} : vector<8x1024xbf16> to vector<8x64xbf16>
    %cst_19 = arith.constant dense<0.000000e+00> : vector<16x8xf32>
    %61 = tpu.matmul %58, %59, %cst_19 {dimension_numbers = #tpu.dot_dimension_numbers<[1], [1], [0], [0], [0, 0, 1, 0], [], []>} : vector<16x64xbf16>, vector<8x64xbf16>, vector<16x8xf32> -> vector<16x8xf32>
    %cst_20 = arith.constant 1.250000e-01 : f32
    %62 = vector.broadcast %cst_20 : f32 to vector<16x8xf32>
    %63 = arith.mulf %61, %62 : vector<16x8xf32>
    %cst_21 = arith.constant dense<0xFF800000> : vector<16xf32>
    %64 = vector.multi_reduction <maximumf>, %63, %cst_21 [1] : vector<16x8xf32> to vector<16xf32>
    %65 = vector.shape_cast %64 : vector<16xf32> to vector<16x1xf32>
    %66 = vector.broadcast %65 : vector<16x1xf32> to vector<16x8xf32>
    %67 = arith.subf %63, %66 : vector<16x8xf32>
    %68 = math.exp %67 : vector<16x8xf32>
    %cst_22 = arith.constant dense<0.000000e+00> : vector<16xf32>
    %69 = vector.multi_reduction <add>, %68, %cst_22 [1] : vector<16x8xf32> to vector<16xf32>
    %70 = vector.shape_cast %69 : vector<16xf32> to vector<16x1xf32>
    %71 = tpu.reciprocal %70 {approx = true} : vector<16x1xf32> -> vector<16x1xf32>
    %72 = vector.broadcast %71 : vector<16x1xf32> to vector<16x8xf32>
    %73 = arith.mulf %68, %72 : vector<16x8xf32>
    %74 = arith.truncf %73 : vector<16x8xf32> to vector<16x8xbf16>
    %cst_23 = arith.constant dense<0.000000e+00> : vector<16x64xf32>
    %75 = tpu.matmul %74, %60, %cst_23 {dimension_numbers = #tpu.dot_dimension_numbers<[1], [0], [0], [1], [0, 0, 1, 1], [], []>} : vector<16x8xbf16>, vector<8x64xbf16>, vector<16x64xf32> -> vector<16x64xf32>
    %76 = vector.extract_strided_slice %1 {offsets = [0, 256], sizes = [16, 64], strides = [1, 1]} : vector<16x512xbf16> to vector<16x64xbf16>
    %77 = vector.extract_strided_slice %3 {offsets = [0, 256], sizes = [8, 64], strides = [1, 1]} : vector<8x1024xbf16> to vector<8x64xbf16>
    %78 = vector.extract_strided_slice %3 {offsets = [0, 768], sizes = [8, 64], strides = [1, 1]} : vector<8x1024xbf16> to vector<8x64xbf16>
    %cst_24 = arith.constant dense<0.000000e+00> : vector<16x8xf32>
    %79 = tpu.matmul %76, %77, %cst_24 {dimension_numbers = #tpu.dot_dimension_numbers<[1], [1], [0], [0], [0, 0, 1, 0], [], []>} : vector<16x64xbf16>, vector<8x64xbf16>, vector<16x8xf32> -> vector<16x8xf32>
    %cst_25 = arith.constant 1.250000e-01 : f32
    %80 = vector.broadcast %cst_25 : f32 to vector<16x8xf32>
    %81 = arith.mulf %79, %80 : vector<16x8xf32>
    %cst_26 = arith.constant dense<0xFF800000> : vector<16xf32>
    %82 = vector.multi_reduction <maximumf>, %81, %cst_26 [1] : vector<16x8xf32> to vector<16xf32>
    %83 = vector.shape_cast %82 : vector<16xf32> to vector<16x1xf32>
    %84 = vector.broadcast %83 : vector<16x1xf32> to vector<16x8xf32>
    %85 = arith.subf %81, %84 : vector<16x8xf32>
    %86 = math.exp %85 : vector<16x8xf32>
    %cst_27 = arith.constant dense<0.000000e+00> : vector<16xf32>
    %87 = vector.multi_reduction <add>, %86, %cst_27 [1] : vector<16x8xf32> to vector<16xf32>
    %88 = vector.shape_cast %87 : vector<16xf32> to vector<16x1xf32>
    %89 = tpu.reciprocal %88 {approx = true} : vector<16x1xf32> -> vector<16x1xf32>
    %90 = vector.broadcast %89 : vector<16x1xf32> to vector<16x8xf32>
    %91 = arith.mulf %86, %90 : vector<16x8xf32>
    %92 = arith.truncf %91 : vector<16x8xf32> to vector<16x8xbf16>
    %cst_28 = arith.constant dense<0.000000e+00> : vector<16x64xf32>
    %93 = tpu.matmul %92, %78, %cst_28 {dimension_numbers = #tpu.dot_dimension_numbers<[1], [0], [0], [1], [0, 0, 1, 1], [], []>} : vector<16x8xbf16>, vector<8x64xbf16>, vector<16x64xf32> -> vector<16x64xf32>
    %94 = vector.extract_strided_slice %1 {offsets = [0, 320], sizes = [16, 64], strides = [1, 1]} : vector<16x512xbf16> to vector<16x64xbf16>
    %95 = vector.extract_strided_slice %3 {offsets = [0, 320], sizes = [8, 64], strides = [1, 1]} : vector<8x1024xbf16> to vector<8x64xbf16>
    %96 = vector.extract_strided_slice %3 {offsets = [0, 832], sizes = [8, 64], strides = [1, 1]} : vector<8x1024xbf16> to vector<8x64xbf16>
    %cst_29 = arith.constant dense<0.000000e+00> : vector<16x8xf32>
    %97 = tpu.matmul %94, %95, %cst_29 {dimension_numbers = #tpu.dot_dimension_numbers<[1], [1], [0], [0], [0, 0, 1, 0], [], []>} : vector<16x64xbf16>, vector<8x64xbf16>, vector<16x8xf32> -> vector<16x8xf32>
    %cst_30 = arith.constant 1.250000e-01 : f32
    %98 = vector.broadcast %cst_30 : f32 to vector<16x8xf32>
    %99 = arith.mulf %97, %98 : vector<16x8xf32>
    %cst_31 = arith.constant dense<0xFF800000> : vector<16xf32>
    %100 = vector.multi_reduction <maximumf>, %99, %cst_31 [1] : vector<16x8xf32> to vector<16xf32>
    %101 = vector.shape_cast %100 : vector<16xf32> to vector<16x1xf32>
    %102 = vector.broadcast %101 : vector<16x1xf32> to vector<16x8xf32>
    %103 = arith.subf %99, %102 : vector<16x8xf32>
    %104 = math.exp %103 : vector<16x8xf32>
    %cst_32 = arith.constant dense<0.000000e+00> : vector<16xf32>
    %105 = vector.multi_reduction <add>, %104, %cst_32 [1] : vector<16x8xf32> to vector<16xf32>
    %106 = vector.shape_cast %105 : vector<16xf32> to vector<16x1xf32>
    %107 = tpu.reciprocal %106 {approx = true} : vector<16x1xf32> -> vector<16x1xf32>
    %108 = vector.broadcast %107 : vector<16x1xf32> to vector<16x8xf32>
    %109 = arith.mulf %104, %108 : vector<16x8xf32>
    %110 = arith.truncf %109 : vector<16x8xf32> to vector<16x8xbf16>
    %cst_33 = arith.constant dense<0.000000e+00> : vector<16x64xf32>
    %111 = tpu.matmul %110, %96, %cst_33 {dimension_numbers = #tpu.dot_dimension_numbers<[1], [0], [0], [1], [0, 0, 1, 1], [], []>} : vector<16x8xbf16>, vector<8x64xbf16>, vector<16x64xf32> -> vector<16x64xf32>
    %112 = vector.extract_strided_slice %1 {offsets = [0, 384], sizes = [16, 64], strides = [1, 1]} : vector<16x512xbf16> to vector<16x64xbf16>
    %113 = vector.extract_strided_slice %3 {offsets = [0, 384], sizes = [8, 64], strides = [1, 1]} : vector<8x1024xbf16> to vector<8x64xbf16>
    %114 = vector.extract_strided_slice %3 {offsets = [0, 896], sizes = [8, 64], strides = [1, 1]} : vector<8x1024xbf16> to vector<8x64xbf16>
    %cst_34 = arith.constant dense<0.000000e+00> : vector<16x8xf32>
    %115 = tpu.matmul %112, %113, %cst_34 {dimension_numbers = #tpu.dot_dimension_numbers<[1], [1], [0], [0], [0, 0, 1, 0], [], []>} : vector<16x64xbf16>, vector<8x64xbf16>, vector<16x8xf32> -> vector<16x8xf32>
    %cst_35 = arith.constant 1.250000e-01 : f32
    %116 = vector.broadcast %cst_35 : f32 to vector<16x8xf32>
    %117 = arith.mulf %115, %116 : vector<16x8xf32>
    %cst_36 = arith.constant dense<0xFF800000> : vector<16xf32>
    %118 = vector.multi_reduction <maximumf>, %117, %cst_36 [1] : vector<16x8xf32> to vector<16xf32>
    %119 = vector.shape_cast %118 : vector<16xf32> to vector<16x1xf32>
    %120 = vector.broadcast %119 : vector<16x1xf32> to vector<16x8xf32>
    %121 = arith.subf %117, %120 : vector<16x8xf32>
    %122 = math.exp %121 : vector<16x8xf32>
    %cst_37 = arith.constant dense<0.000000e+00> : vector<16xf32>
    %123 = vector.multi_reduction <add>, %122, %cst_37 [1] : vector<16x8xf32> to vector<16xf32>
    %124 = vector.shape_cast %123 : vector<16xf32> to vector<16x1xf32>
    %125 = tpu.reciprocal %124 {approx = true} : vector<16x1xf32> -> vector<16x1xf32>
    %126 = vector.broadcast %125 : vector<16x1xf32> to vector<16x8xf32>
    %127 = arith.mulf %122, %126 : vector<16x8xf32>
    %128 = arith.truncf %127 : vector<16x8xf32> to vector<16x8xbf16>
    %cst_38 = arith.constant dense<0.000000e+00> : vector<16x64xf32>
    %129 = tpu.matmul %128, %114, %cst_38 {dimension_numbers = #tpu.dot_dimension_numbers<[1], [0], [0], [1], [0, 0, 1, 1], [], []>} : vector<16x8xbf16>, vector<8x64xbf16>, vector<16x64xf32> -> vector<16x64xf32>
    %130 = vector.extract_strided_slice %1 {offsets = [0, 448], sizes = [16, 64], strides = [1, 1]} : vector<16x512xbf16> to vector<16x64xbf16>
    %131 = vector.extract_strided_slice %3 {offsets = [0, 448], sizes = [8, 64], strides = [1, 1]} : vector<8x1024xbf16> to vector<8x64xbf16>
    %132 = vector.extract_strided_slice %3 {offsets = [0, 960], sizes = [8, 64], strides = [1, 1]} : vector<8x1024xbf16> to vector<8x64xbf16>
    %cst_39 = arith.constant dense<0.000000e+00> : vector<16x8xf32>
    %133 = tpu.matmul %130, %131, %cst_39 {dimension_numbers = #tpu.dot_dimension_numbers<[1], [1], [0], [0], [0, 0, 1, 0], [], []>} : vector<16x64xbf16>, vector<8x64xbf16>, vector<16x8xf32> -> vector<16x8xf32>
    %cst_40 = arith.constant 1.250000e-01 : f32
    %134 = vector.broadcast %cst_40 : f32 to vector<16x8xf32>
    %135 = arith.mulf %133, %134 : vector<16x8xf32>
    %cst_41 = arith.constant dense<0xFF800000> : vector<16xf32>
    %136 = vector.multi_reduction <maximumf>, %135, %cst_41 [1] : vector<16x8xf32> to vector<16xf32>
    %137 = vector.shape_cast %136 : vector<16xf32> to vector<16x1xf32>
    %138 = vector.broadcast %137 : vector<16x1xf32> to vector<16x8xf32>
    %139 = arith.subf %135, %138 : vector<16x8xf32>
    %140 = math.exp %139 : vector<16x8xf32>
    %cst_42 = arith.constant dense<0.000000e+00> : vector<16xf32>
    %141 = vector.multi_reduction <add>, %140, %cst_42 [1] : vector<16x8xf32> to vector<16xf32>
    %142 = vector.shape_cast %141 : vector<16xf32> to vector<16x1xf32>
    %143 = tpu.reciprocal %142 {approx = true} : vector<16x1xf32> -> vector<16x1xf32>
    %144 = vector.broadcast %143 : vector<16x1xf32> to vector<16x8xf32>
    %145 = arith.mulf %140, %144 : vector<16x8xf32>
    %146 = arith.truncf %145 : vector<16x8xf32> to vector<16x8xbf16>
    %cst_43 = arith.constant dense<0.000000e+00> : vector<16x64xf32>
    %147 = tpu.matmul %146, %132, %cst_43 {dimension_numbers = #tpu.dot_dimension_numbers<[1], [0], [0], [1], [0, 0, 1, 1], [], []>} : vector<16x8xbf16>, vector<8x64xbf16>, vector<16x64xf32> -> vector<16x64xf32>
    %148 = tpu.concatenate %21, %39, %57, %75, %93, %111, %129, %147 in 1 : vector<16x64xf32>, vector<16x64xf32>, vector<16x64xf32>, vector<16x64xf32>, vector<16x64xf32>, vector<16x64xf32>, vector<16x64xf32>, vector<16x64xf32> -> vector<16x512xf32>
    %149 = arith.truncf %148 : vector<16x512xf32> to vector<16x512xbf16>
    %c0_44 = arith.constant 0 : index
    %c0_45 = arith.constant 0 : index
    %c0_46 = arith.constant 0 : index
    %150 = vector.load %arg4[%c0_44, %c0_45, %c0_46] : memref<1x16x512xbf16, #tpu.memory_space<vmem>>, vector<1x16x512xbf16>
    %151 = vector.shape_cast %150 : vector<1x16x512xbf16> to vector<16x512xbf16>
    %152 = vector.shape_cast %149 : vector<16x512xbf16> to vector<1x16x512xbf16>
    tpu.vector_store %arg4[%c0_44, %c0_45, %c0_46], %152 {strides = array<i32>} : memref<1x16x512xbf16, #tpu.memory_space<vmem>>, vector<1x16x512xbf16>,
    return
  }
  func.func @transform_0(%arg0: i32, %arg1: i32) -> (i32, i32, i32) {
    %c0_i32 = arith.constant 0 : i32
    %c0_i32_0 = arith.constant 0 : i32
    return %arg0, %arg1, %c0_i32 : i32, i32, i32
  }
  func.func @transform_1(%arg0: i32, %arg1: i32) -> (i32, i32, i32) {
    %c0_i32 = arith.constant 0 : i32
    %c0_i32_0 = arith.constant 0 : i32
    %c0_i32_1 = arith.constant 0 : i32
    return %arg0, %c0_i32, %c0_i32_0 : i32, i32, i32
  }
  func.func @transform_2(%arg0: i32, %arg1: i32) -> (i32, i32, i32) {
    %c0_i32 = arith.constant 0 : i32
    %c0_i32_0 = arith.constant 0 : i32
    return %arg0, %arg1, %c0_i32 : i32, i32, i32
  }
}

module attributes {stable_mosaic.version = 11 : i64} {
  func.func @_kv_kernel(%arg0: i32, %arg1: i32, %arg2: memref<1x8x8xbf16, #tpu.memory_space<vmem>>, %arg3: memref<8x8xbf16, #tpu.memory_space<vmem>>, %arg4: memref<1x8xf32, #tpu.memory_space<vmem>>, %arg5: memref<8x1024xbf16, #tpu.memory_space<vmem>>, %arg6: memref<1x8x1024xbf16, #tpu.memory_space<vmem>>) attributes {dimension_semantics = [#tpu.dimension_semantics<parallel>, #tpu.dimension_semantics<parallel>], iteration_bounds = array<i64: 2, 1>, scalar_prefetch = 0 : i64, scratch_operands = 0 : i64, tpu.core_type = #tpu.core_type<tc>, window_params = [{transform_indices = @transform_0, window_bounds = array<i64: 1, 8, 8>}, {pipeline_mode = #tpu.pipeline_mode<synchronous>, transform_indices = @transform_1, window_bounds = array<i64: 8, 8>}, {pipeline_mode = #tpu.pipeline_mode<synchronous>, transform_indices = @transform_2, window_bounds = array<i64: 1, 8>}, {pipeline_mode = #tpu.pipeline_mode<synchronous>, transform_indices = @transform_3, window_bounds = array<i64: 8, 1024>}, {transform_indices = @transform_4, window_bounds = array<i64: 1, 8, 1024>}]} {
    %c0 = arith.constant 0 : index
    %c0_0 = arith.constant 0 : index
    %c0_1 = arith.constant 0 : index
    %0 = vector.load %arg2[%c0, %c0_0, %c0_1] : memref<1x8x8xbf16, #tpu.memory_space<vmem>>, vector<1x8x8xbf16>
    %1 = vector.shape_cast %0 : vector<1x8x8xbf16> to vector<8x8xbf16>
    %c0_2 = arith.constant 0 : index
    %c0_3 = arith.constant 0 : index
    %2 = vector.load %arg3[%c0_2, %c0_3] : memref<8x8xbf16, #tpu.memory_space<vmem>>, vector<8x8xbf16>
    %cst = arith.constant dense<0.000000e+00> : vector<8x8xf32>
    %3 = tpu.matmul %1, %2, %cst {dimension_numbers = #tpu.dot_dimension_numbers<[1], [0], [0], [1], [0, 0, 1, 1], [], []>} : vector<8x8xbf16>, vector<8x8xbf16>, vector<8x8xf32> -> vector<8x8xf32>
    %c0_4 = arith.constant 0 : index
    %c0_5 = arith.constant 0 : index
    %4 = vector.load %arg4[%c0_4, %c0_5] : memref<1x8xf32, #tpu.memory_space<vmem>>, vector<1x8xf32>
    %5 = vector.broadcast %4 : vector<1x8xf32> to vector<8x8xf32>
    %6 = arith.addf %3, %5 : vector<8x8xf32>
    %7 = arith.truncf %6 : vector<8x8xf32> to vector<8x8xbf16>
    %c0_6 = arith.constant 0 : index
    %c0_7 = arith.constant 0 : index
    %8 = vector.load %arg5[%c0_6, %c0_7] : memref<8x1024xbf16, #tpu.memory_space<vmem>>, vector<8x1024xbf16>
    %cst_8 = arith.constant dense<0.000000e+00> : vector<8x1024xf32>
    %9 = tpu.matmul %7, %8, %cst_8 {dimension_numbers = #tpu.dot_dimension_numbers<[1], [0], [0], [1], [0, 0, 1, 1], [], []>} : vector<8x8xbf16>, vector<8x1024xbf16>, vector<8x1024xf32> -> vector<8x1024xf32>
    %10 = arith.truncf %9 : vector<8x1024xf32> to vector<8x1024xbf16>
    %c0_9 = arith.constant 0 : index
    %c0_10 = arith.constant 0 : index
    %c0_11 = arith.constant 0 : index
    %11 = vector.load %arg6[%c0_9, %c0_10, %c0_11] : memref<1x8x1024xbf16, #tpu.memory_space<vmem>>, vector<1x8x1024xbf16>
    %12 = vector.shape_cast %11 : vector<1x8x1024xbf16> to vector<8x1024xbf16>
    %13 = vector.shape_cast %10 : vector<8x1024xbf16> to vector<1x8x1024xbf16>
    tpu.vector_store %arg6[%c0_9, %c0_10, %c0_11], %13 {strides = array<i32>} : memref<1x8x1024xbf16, #tpu.memory_space<vmem>>, vector<1x8x1024xbf16>,
    return
  }
  func.func @transform_0(%arg0: i32, %arg1: i32) -> (i32, i32, i32) {
    %c0_i32 = arith.constant 0 : i32
    %c0_i32_0 = arith.constant 0 : i32
    return %arg0, %arg1, %c0_i32 : i32, i32, i32
  }
  func.func @transform_1(%arg0: i32, %arg1: i32) -> (i32, i32) {
    %c0_i32 = arith.constant 0 : i32
    %c0_i32_0 = arith.constant 0 : i32
    %c0_i32_1 = arith.constant 0 : i32
    return %c0_i32, %c0_i32_0 : i32, i32
  }
  func.func @transform_2(%arg0: i32, %arg1: i32) -> (i32, i32) {
    %c0_i32 = arith.constant 0 : i32
    %c0_i32_0 = arith.constant 0 : i32
    %c0_i32_1 = arith.constant 0 : i32
    return %c0_i32, %c0_i32_0 : i32, i32
  }
  func.func @transform_3(%arg0: i32, %arg1: i32) -> (i32, i32) {
    %c0_i32 = arith.constant 0 : i32
    %c0_i32_0 = arith.constant 0 : i32
    %c0_i32_1 = arith.constant 0 : i32
    return %c0_i32, %c0_i32_0 : i32, i32
  }
  func.func @transform_4(%arg0: i32, %arg1: i32) -> (i32, i32, i32) {
    %c0_i32 = arith.constant 0 : i32
    %c0_i32_0 = arith.constant 0 : i32
    return %arg0, %arg1, %c0_i32 : i32, i32, i32
  }
}

module attributes {stable_mosaic.version = 11 : i64} {
  func.func @_post_kernel(%arg0: i32, %arg1: i32, %arg2: memref<1x16x512xbf16, #tpu.memory_space<vmem>>, %arg3: memref<1x16x8xf32, #tpu.memory_space<vmem>>, %arg4: memref<512x8xbf16, #tpu.memory_space<vmem>>, %arg5: memref<1x8xf32, #tpu.memory_space<vmem>>, %arg6: memref<4x8xbf16, #tpu.memory_space<vmem>>, %arg7: memref<1x8xf32, #tpu.memory_space<vmem>>, %arg8: memref<1x16x8xf32, #tpu.memory_space<vmem>>) attributes {dimension_semantics = [#tpu.dimension_semantics<parallel>, #tpu.dimension_semantics<parallel>], iteration_bounds = array<i64: 2, 1>, scalar_prefetch = 0 : i64, scratch_operands = 0 : i64, tpu.core_type = #tpu.core_type<tc>, window_params = [{transform_indices = @transform_0, window_bounds = array<i64: 1, 16, 512>}, {transform_indices = @transform_1, window_bounds = array<i64: 1, 16, 8>}, {pipeline_mode = #tpu.pipeline_mode<synchronous>, transform_indices = @transform_2, window_bounds = array<i64: 512, 8>}, {pipeline_mode = #tpu.pipeline_mode<synchronous>, transform_indices = @transform_3, window_bounds = array<i64: 1, 8>}, {pipeline_mode = #tpu.pipeline_mode<synchronous>, transform_indices = @transform_4, window_bounds = array<i64: 4, 8>}, {pipeline_mode = #tpu.pipeline_mode<synchronous>, transform_indices = @transform_5, window_bounds = array<i64: 1, 8>}, {transform_indices = @transform_6, window_bounds = array<i64: 1, 16, 8>}]} {
    %c0 = arith.constant 0 : index
    %c0_0 = arith.constant 0 : index
    %c0_1 = arith.constant 0 : index
    %0 = vector.load %arg2[%c0, %c0_0, %c0_1] : memref<1x16x512xbf16, #tpu.memory_space<vmem>>, vector<1x16x512xbf16>
    %1 = vector.shape_cast %0 : vector<1x16x512xbf16> to vector<16x512xbf16>
    %c0_2 = arith.constant 0 : index
    %c0_3 = arith.constant 0 : index
    %2 = vector.load %arg4[%c0_2, %c0_3] : memref<512x8xbf16, #tpu.memory_space<vmem>>, vector<512x8xbf16>
    %cst = arith.constant dense<0.000000e+00> : vector<16x8xf32>
    %3 = tpu.matmul %1, %2, %cst {dimension_numbers = #tpu.dot_dimension_numbers<[1], [0], [0], [1], [0, 0, 1, 1], [], []>} : vector<16x512xbf16>, vector<512x8xbf16>, vector<16x8xf32> -> vector<16x8xf32>
    %c0_4 = arith.constant 0 : index
    %c0_5 = arith.constant 0 : index
    %4 = vector.load %arg5[%c0_4, %c0_5] : memref<1x8xf32, #tpu.memory_space<vmem>>, vector<1x8xf32>
    %5 = vector.broadcast %4 : vector<1x8xf32> to vector<16x8xf32>
    %6 = arith.addf %3, %5 : vector<16x8xf32>
    %7 = vector.extract_strided_slice %6 {offsets = [0, 0], sizes = [16, 4], strides = [1, 1]} : vector<16x8xf32> to vector<16x4xf32>
    %8 = arith.negf %7 : vector<16x4xf32>
    %9 = math.exp %8 : vector<16x4xf32>
    %cst_6 = arith.constant 1.000000e+00 : f32
    %10 = vector.broadcast %cst_6 : f32 to vector<16x4xf32>
    %11 = arith.addf %10, %9 : vector<16x4xf32>
    %12 = arith.divf %10, %11 : vector<16x4xf32>
    %13 = vector.extract_strided_slice %6 {offsets = [0, 4], sizes = [16, 4], strides = [1, 1]} : vector<16x8xf32> to vector<16x4xf32>
    %14 = math.tanh %13 : vector<16x4xf32>
    %15 = arith.mulf %12, %14 : vector<16x4xf32>
    %16 = arith.truncf %15 : vector<16x4xf32> to vector<16x4xbf16>
    %c0_7 = arith.constant 0 : index
    %c0_8 = arith.constant 0 : index
    %17 = vector.load %arg6[%c0_7, %c0_8] : memref<4x8xbf16, #tpu.memory_space<vmem>>, vector<4x8xbf16>
    %cst_9 = arith.constant dense<0.000000e+00> : vector<16x8xf32>
    %18 = tpu.matmul %16, %17, %cst_9 {dimension_numbers = #tpu.dot_dimension_numbers<[1], [0], [0], [1], [0, 0, 1, 1], [], []>} : vector<16x4xbf16>, vector<4x8xbf16>, vector<16x8xf32> -> vector<16x8xf32>
    %c0_10 = arith.constant 0 : index
    %c0_11 = arith.constant 0 : index
    %19 = vector.load %arg7[%c0_10, %c0_11] : memref<1x8xf32, #tpu.memory_space<vmem>>, vector<1x8xf32>
    %20 = vector.broadcast %19 : vector<1x8xf32> to vector<16x8xf32>
    %21 = arith.addf %18, %20 : vector<16x8xf32>
    %c0_12 = arith.constant 0 : index
    %c0_13 = arith.constant 0 : index
    %c0_14 = arith.constant 0 : index
    %22 = vector.load %arg3[%c0_12, %c0_13, %c0_14] : memref<1x16x8xf32, #tpu.memory_space<vmem>>, vector<1x16x8xf32>
    %23 = vector.shape_cast %22 : vector<1x16x8xf32> to vector<16x8xf32>
    %24 = vector.extract_strided_slice %23 {offsets = [0, 0], sizes = [16, 4], strides = [1, 1]} : vector<16x8xf32> to vector<16x4xf32>
    %25 = vector.extract_strided_slice %21 {offsets = [0, 0], sizes = [16, 4], strides = [1, 1]} : vector<16x8xf32> to vector<16x4xf32>
    %26 = arith.addf %24, %25 : vector<16x4xf32>
    %cst_15 = arith.constant 0.707106769 : f32
    %27 = vector.broadcast %cst_15 : f32 to vector<16x4xf32>
    %28 = arith.mulf %26, %27 : vector<16x4xf32>
    %29 = vector.extract_strided_slice %23 {offsets = [0, 4], sizes = [16, 4], strides = [1, 1]} : vector<16x8xf32> to vector<16x4xf32>
    %30 = vector.extract_strided_slice %21 {offsets = [0, 4], sizes = [16, 4], strides = [1, 1]} : vector<16x8xf32> to vector<16x4xf32>
    %31 = arith.addf %29, %30 : vector<16x4xf32>
    %32 = tpu.concatenate %28, %31 in 1 : vector<16x4xf32>, vector<16x4xf32> -> vector<16x8xf32>
    %c0_16 = arith.constant 0 : index
    %c0_17 = arith.constant 0 : index
    %c0_18 = arith.constant 0 : index
    %33 = vector.load %arg8[%c0_16, %c0_17, %c0_18] : memref<1x16x8xf32, #tpu.memory_space<vmem>>, vector<1x16x8xf32>
    %34 = vector.shape_cast %33 : vector<1x16x8xf32> to vector<16x8xf32>
    %35 = vector.shape_cast %32 : vector<16x8xf32> to vector<1x16x8xf32>
    tpu.vector_store %arg8[%c0_16, %c0_17, %c0_18], %35 {strides = array<i32>} : memref<1x16x8xf32, #tpu.memory_space<vmem>>, vector<1x16x8xf32>,
    return
  }
  func.func @transform_0(%arg0: i32, %arg1: i32) -> (i32, i32, i32) {
    %c0_i32 = arith.constant 0 : i32
    %c0_i32_0 = arith.constant 0 : i32
    return %arg0, %arg1, %c0_i32 : i32, i32, i32
  }
  func.func @transform_1(%arg0: i32, %arg1: i32) -> (i32, i32, i32) {
    %c0_i32 = arith.constant 0 : i32
    %c0_i32_0 = arith.constant 0 : i32
    return %arg0, %arg1, %c0_i32 : i32, i32, i32
  }
  func.func @transform_2(%arg0: i32, %arg1: i32) -> (i32, i32) {
    %c0_i32 = arith.constant 0 : i32
    %c0_i32_0 = arith.constant 0 : i32
    %c0_i32_1 = arith.constant 0 : i32
    return %c0_i32, %c0_i32_0 : i32, i32
  }
  func.func @transform_3(%arg0: i32, %arg1: i32) -> (i32, i32) {
    %c0_i32 = arith.constant 0 : i32
    %c0_i32_0 = arith.constant 0 : i32
    %c0_i32_1 = arith.constant 0 : i32
    return %c0_i32, %c0_i32_0 : i32, i32
  }
  func.func @transform_4(%arg0: i32, %arg1: i32) -> (i32, i32) {
    %c0_i32 = arith.constant 0 : i32
    %c0_i32_0 = arith.constant 0 : i32
    %c0_i32_1 = arith.constant 0 : i32
    return %c0_i32, %c0_i32_0 : i32, i32
  }
  func.func @transform_5(%arg0: i32, %arg1: i32) -> (i32, i32) {
    %c0_i32 = arith.constant 0 : i32
    %c0_i32_0 = arith.constant 0 : i32
    %c0_i32_1 = arith.constant 0 : i32
    return %c0_i32, %c0_i32_0 : i32, i32
  }
  func.func @transform_6(%arg0: i32, %arg1: i32) -> (i32, i32, i32) {
    %c0_i32 = arith.constant 0 : i32
    %c0_i32_0 = arith.constant 0 : i32
    return %arg0, %arg1, %c0_i32 : i32, i32, i32
  }
}

module attributes {stable_mosaic.version = 11 : i64} {
  func.func @_final_kernel(%arg0: i32, %arg1: i32, %arg2: memref<1x16x8xf32, #tpu.memory_space<vmem>>, %arg3: memref<4x4xbf16, #tpu.memory_space<vmem>>, %arg4: memref<1x4xf32, #tpu.memory_space<vmem>>, %arg5: memref<1x4xf32, #tpu.memory_space<vmem>>, %arg6: memref<1x1xf32, #tpu.memory_space<vmem>>, %arg7: memref<1x16x1xf32, #tpu.memory_space<vmem>>) attributes {dimension_semantics = [#tpu.dimension_semantics<parallel>, #tpu.dimension_semantics<parallel>], iteration_bounds = array<i64: 2, 1>, scalar_prefetch = 0 : i64, scratch_operands = 0 : i64, tpu.core_type = #tpu.core_type<tc>, window_params = [{transform_indices = @transform_0, window_bounds = array<i64: 1, 16, 8>}, {pipeline_mode = #tpu.pipeline_mode<synchronous>, transform_indices = @transform_1, window_bounds = array<i64: 4, 4>}, {pipeline_mode = #tpu.pipeline_mode<synchronous>, transform_indices = @transform_2, window_bounds = array<i64: 1, 4>}, {pipeline_mode = #tpu.pipeline_mode<synchronous>, transform_indices = @transform_3, window_bounds = array<i64: 1, 4>}, {pipeline_mode = #tpu.pipeline_mode<synchronous>, transform_indices = @transform_4, window_bounds = array<i64: 1, 1>}, {transform_indices = @transform_5, window_bounds = array<i64: 1, 16, 1>}]} {
    %c0 = arith.constant 0 : index
    %c0_0 = arith.constant 0 : index
    %c4 = arith.constant 4 : index
    %0 = vector.load %arg2[%c0, %c0_0, %c4] : memref<1x16x8xf32, #tpu.memory_space<vmem>>, vector<1x16x4xf32>
    %1 = vector.shape_cast %0 : vector<1x16x4xf32> to vector<16x4xf32>
    %cst = arith.constant 0.707106769 : f32
    %2 = vector.broadcast %cst : f32 to vector<16x4xf32>
    %3 = arith.mulf %1, %2 : vector<16x4xf32>
    %4 = arith.truncf %3 : vector<16x4xf32> to vector<16x4xbf16>
    %c0_1 = arith.constant 0 : index
    %c0_2 = arith.constant 0 : index
    %5 = vector.load %arg3[%c0_1, %c0_2] : memref<4x4xbf16, #tpu.memory_space<vmem>>, vector<4x4xbf16>
    %cst_3 = arith.constant dense<0.000000e+00> : vector<16x4xf32>
    %6 = tpu.matmul %4, %5, %cst_3 {dimension_numbers = #tpu.dot_dimension_numbers<[1], [0], [0], [1], [0, 0, 1, 1], [], []>} : vector<16x4xbf16>, vector<4x4xbf16>, vector<16x4xf32> -> vector<16x4xf32>
    %c0_4 = arith.constant 0 : index
    %c0_5 = arith.constant 0 : index
    %7 = vector.load %arg4[%c0_4, %c0_5] : memref<1x4xf32, #tpu.memory_space<vmem>>, vector<1x4xf32>
    %8 = vector.broadcast %7 : vector<1x4xf32> to vector<16x4xf32>
    %9 = arith.addf %6, %8 : vector<16x4xf32>
    %cst_6 = arith.constant 0.000000e+00 : f32
    %10 = vector.broadcast %cst_6 : f32 to vector<16x4xf32>
    %11 = arith.maximumf %9, %10 : vector<16x4xf32>
    %c0_7 = arith.constant 0 : index
    %c0_8 = arith.constant 0 : index
    %12 = vector.load %arg5[%c0_7, %c0_8] : memref<1x4xf32, #tpu.memory_space<vmem>>, vector<1x4xf32>
    %13 = vector.broadcast %12 : vector<1x4xf32> to vector<16x4xf32>
    %14 = arith.mulf %11, %13 : vector<16x4xf32>
    %cst_9 = arith.constant dense<0.000000e+00> : vector<16xf32>
    %15 = vector.multi_reduction <add>, %14, %cst_9 [1] : vector<16x4xf32> to vector<16xf32>
    %16 = vector.shape_cast %15 : vector<16xf32> to vector<16x1xf32>
    %c0_10 = arith.constant 0 : index
    %c0_11 = arith.constant 0 : index
    %17 = vector.load %arg6[%c0_10, %c0_11] : memref<1x1xf32, #tpu.memory_space<vmem>>, vector<1x1xf32>
    %18 = vector.broadcast %17 : vector<1x1xf32> to vector<16x1xf32>
    %19 = arith.addf %16, %18 : vector<16x1xf32>
    %c0_12 = arith.constant 0 : index
    %c0_13 = arith.constant 0 : index
    %c0_14 = arith.constant 0 : index
    %20 = vector.load %arg7[%c0_12, %c0_13, %c0_14] : memref<1x16x1xf32, #tpu.memory_space<vmem>>, vector<1x16x1xf32>
    %21 = vector.shape_cast %20 : vector<1x16x1xf32> to vector<16x1xf32>
    %22 = vector.shape_cast %19 : vector<16x1xf32> to vector<1x16x1xf32>
    tpu.vector_store %arg7[%c0_12, %c0_13, %c0_14], %22 {strides = array<i32>} : memref<1x16x1xf32, #tpu.memory_space<vmem>>, vector<1x16x1xf32>,
    return
  }
  func.func @transform_0(%arg0: i32, %arg1: i32) -> (i32, i32, i32) {
    %c0_i32 = arith.constant 0 : i32
    %c0_i32_0 = arith.constant 0 : i32
    return %arg0, %arg1, %c0_i32 : i32, i32, i32
  }
  func.func @transform_1(%arg0: i32, %arg1: i32) -> (i32, i32) {
    %c0_i32 = arith.constant 0 : i32
    %c0_i32_0 = arith.constant 0 : i32
    %c0_i32_1 = arith.constant 0 : i32
    return %c0_i32, %c0_i32_0 : i32, i32
  }
  func.func @transform_2(%arg0: i32, %arg1: i32) -> (i32, i32) {
    %c0_i32 = arith.constant 0 : i32
    %c0_i32_0 = arith.constant 0 : i32
    %c0_i32_1 = arith.constant 0 : i32
    return %c0_i32, %c0_i32_0 : i32, i32
  }
  func.func @transform_3(%arg0: i32, %arg1: i32) -> (i32, i32) {
    %c0_i32 = arith.constant 0 : i32
    %c0_i32_0 = arith.constant 0 : i32
    %c0_i32_1 = arith.constant 0 : i32
    return %c0_i32, %c0_i32_0 : i32, i32
  }
  func.func @transform_4(%arg0: i32, %arg1: i32) -> (i32, i32) {
    %c0_i32 = arith.constant 0 : i32
    %c0_i32_0 = arith.constant 0 : i32
    %c0_i32_1 = arith.constant 0 : i32
    return %c0_i32, %c0_i32_0 : i32, i32
  }
  func.func @transform_5(%arg0: i32, %arg1: i32) -> (i32, i32, i32) {
    %c0_i32 = arith.constant 0 : i32
    %c0_i32_0 = arith.constant 0 : i32
    return %arg0, %arg1, %c0_i32 : i32, i32, i32
  }
}

</mosaic_0001>

<bundles_post_ra>
// kernel: hifidiff_forward.11
= control target key start
LH: loop header
LB: loop body
LE: loop exit
PB: predicated region body
PF: predicated region fallthrough
CT: control target
= control target key end

     0   :  { %s673_s15 = smov 0   ;;  %s675_s16 = smov 0   ;;  %s726_s0 = inlined_call_operand.vmem [shape: bf16[2,16,12], index: 0, kind: input, shape index: {}]   ;;  %s727_s1 = inlined_call_operand.vmem [shape: bf16[12,8], index: 1, kind: input, shape index: {}]   ;;  %s728_s2 = inlined_call_operand.vmem [shape: f32[1,8], index: 2, kind: input, shape index: {}]   ;;  %s729_s3 = inlined_call_operand.vmem [shape: bf16[8,512], index: 3, kind: input, shape index: {}]   ;;  %s730_s4 = inlined_call_operand.vmem [shape: bf16[2,16,512], index: 4, kind: output, shape index: {}]  }
   0x1   :  { %s677_s17 = smov 0  }
   0x2 LB: > { %s26_s18 = sadd.s32 1, %s639_s16  ;;  %p551_p0 = scmp.ge.s32.totalorder %s643_s17, 1  ;;  %s643_s17 = sphi %s677_s17, %s14_s17   ;;  %s639_s16 = sphi %s675_s16, %s732_s16   ;;  %s635_s15 = sphi %s673_s15, %s731_s15  }
   0x3   : > { %p28_p1 = scmp.ge.s32.totalorder %s26_s18, 2  ;;  %p183_p2 = scmp.lt.s32.totalorder %s643_s17, 3 }
   0x5   : > { %s734_s18 = smov (%p28_p1, %s26_s18), 0  ;;  %p184_p3 = pnand %p551_p0, %p183_p2 }
   0x6   : > { %vm265_vm0 = vcmask (!%p184_p3), 1045504   ;;  %v645_v0 = vmov (!%p184_p3), 0.0   ;;  %v615_v1 = vld [vmem:[%s727_s1] sm:$0x3f] (!%p184_p3)   ;;  %p219_p4 = scmp.lt.s32.totalorder (!%p184_p3), %s635_s15, 1  ;;  %v312_v2 = vld [vmem:[%s729_s3 + $0x8] sm:$0xff] (!%p184_p3) }
   0x7   : > { %187 = sbr.rel (%p184_p3) target bundleno = 454 (0x1c6), region = 36  ;;  %582 = vmatprep.subr.bf16.mxu0 (!%p184_p3), %v645_v0  ;;  %vm646_vm1 = vmmov (!%p184_p3), 0   ;;  %v563_v3 = vcombine.high (!%p184_p3), %v312_v2, %v312_v2  ;;  %vm327_vm2 = vcmask (!%p184_p3), 1043456   ;;  %v267_v4 = vsel (!%p184_p3), %vm265_vm0, %v615_v1, 0  ;;  %v311_v8 = vld [vmem:[%s729_s3] sm:$0xff] (!%p184_p3) }
   0x8   : > { %584 = vmatprep.mubr.msk.bf16.mxu0 (!%p184_p3), %vm646_vm1, %v645_v0  ;;  %v562_v5 = vcombine.low (!%p184_p3), %v312_v2, %v312_v2  ;;  %583 = vmatpush3.bf16.msra.mxu0 (!%p184_p3), %v267_v4  ;;  %vm261_vm3 = vcmask (!%p184_p3), 97280   ;;  %v561_v9 = vcombine.high (!%p184_p3), %v311_v8, %v311_v8  ;;  %v560_v10 = vcombine.low (!%p184_p3), %v311_v8, %v311_v8  ;;  %v556_v13 = vld [vmem:[%s728_s2] ss:$0 sm:$0xff] (!%p184_p3) }
   0x9   : > { %566 = vmatprep.subr.msk.bf16.mxu0 (!%p184_p3), %vm327_vm2, %v563_v3  ;;  %v647_v12 = vmov (!%p184_p3), 0   ;;  %vm323_vm4 = vcmask (!%p184_p3), 64512  }
   0xa   : > { %v335_v7 = vsel (!%p184_p3), %vm327_vm2, %v562_v5, 0  ;;  %564 = vmatprep.subr.msk.bf16.mxu1 (!%p184_p3), %vm327_vm2, %v561_v9  ;;  %v329_v11 = vsel (!%p184_p3), %vm327_vm2, %v560_v10, 0  ;;  %372 = vmatprep.mubr.bf16.mxu1 (!%p184_p3), %v647_v12 }
   0xb   : > { %341 = vmatpush1.bf16.msra.mxu1 (!%p184_p3), %v329_v11 }
   0xe   : > { %s736_s15 = smov (!%p219_p4, %s635_s15), 1 }
   0xf   : > { %s574_s23 = sshll.u32 %s736_s15, 3  ;;  %s575_s5 = sshll.u32 %s736_s15, 5 }
  0x10   : > { %s226_s26 = scalar_lea.vmem %s726_s0, %s574_s23  ;;  %s237_s8 = scalar_lea.vmem %s730_s4, %s575_s5 }
  0x11   : > { %v616_v6 = vld [vmem:[%s226_s26] sm:$0xff]  }
  0x12   : > { %585 = vmatmul.mubr.msk.bf16.vlgmr.msra.gmra.mrb[0].mxu0 %vm261_vm3, %v616_v6 }
  0x13   : > { %384 = vmatpush1.bf16.msra.mxu0 %v335_v7  ;;  %415 = vmatprep.mubr.bf16.mxu0 %v647_v12 }
  0xe5   : > { %v303_v14 = vpop.f32.mrb[0].mxu0 }
  0xe6   : > { %v586_v15 = vpop.f32.mrb[1].mxu0  ;;  %v304_v17 = vadd.f32 %v556_v13, %v303_v14 }
  0xe7   : > { %v306_v16 = vpop.f32.mrb[2].mxu0 }
  0xe8   : > { %v307_v18 = vadd.f32 %v556_v13, %v306_v16  ;;  %v587_v19 = vpop.f32.mrb[3].mxu0 }
  0xea   : > { %v310_v20 = vpack.c.bf16 %v307_v18, %v304_v17 }
  0xec   : > { %565 = vmatmul.mubr.msk.bf16.vlgmr.msra.gmra.mrb[0].mxu1 %vm323_vm4, %v310_v20  ;;  %567 = vmatmul.mubr.msk.bf16.vlgmr.msra.gmra.mrb[4].mxu0 %vm323_vm4, %v310_v20 }
 0x1bf   : > { %v374_v21 = vpop.f32.mrb[0].mxu1  ;;  %v417_v22 = vpop.f32.mrb[4].mxu0 }
 0x1c0   : > { %v376_v23 = vpop.f32.mrb[1].mxu1  ;;  %v419_v24 = vpop.f32.mrb[5].mxu0 }
 0x1c1   : > { %v576_v25 = vpack.c.bf16 %v376_v23, %v374_v21  ;;  %v577_v26 = vpack.c.bf16 %v419_v24, %v417_v22  ;;  %v378_v27 = vpop.f32.mrb[2].mxu1  ;;  %v421_v28 = vpop.f32.mrb[6].mxu0 }
 0x1c2   : > { %v380_v29 = vpop.f32.mrb[3].mxu1  ;;  %v423_v30 = vpop.f32.mrb[7].mxu0 }
 0x1c3   : > { %450 = vst [vmem:[%s237_s8] sm:$0xff] %v576_v25  ;;  %451 = vst [vmem:[%s237_s8 + $0x8] sm:$0xff] %v577_v26  ;;  %v578_v31 = vpack.c.bf16 %v380_v29, %v378_v27  ;;  %v579_v32 = vpack.c.bf16 %v423_v30, %v421_v28 }
 0x1c5   : > { %452 = vst [vmem:[%s237_s8 + $0x10] sm:$0xff] %v578_v31  ;;  %453 = vst [vmem:[%s237_s8 + $0x18] sm:$0xff] %v579_v32 }
 0x1c6 PF: > { %s14_s17 = sadd.s32 1, %s643_s17   ;;  %s731_s15 = smov %s639_s16 }
 0x1c7   : > { %p11_p5 = scmp.ge.s32.totalorder %s14_s17, 4   ;;  %s732_s16 = smov %s734_s18 }
 0x1c9   :  { %13 = sbr.rel (!%p11_p5) target bundleno = 2 (0x2), region = 66 }

// kernel: hifidiff_forward.12
= control target key start
LH: loop header
LB: loop body
LE: loop exit
PB: predicated region body
PF: predicated region fallthrough
CT: control target
= control target key end

     0   :  { %s756_s15 = smov 0   ;;  %s758_s16 = smov 0   ;;  %s825_s0 = inlined_call_operand.vmem [shape: bf16[2,8,8], index: 0, kind: input, shape index: {}]   ;;  %s826_s1 = inlined_call_operand.vmem [shape: bf16[8,8], index: 1, kind: input, shape index: {}]   ;;  %s827_s2 = inlined_call_operand.vmem [shape: f32[1,8], index: 2, kind: input, shape index: {}]   ;;  %s828_s3 = inlined_call_operand.vmem [shape: bf16[8,1024], index: 3, kind: input, shape index: {}]   ;;  %s829_s4 = inlined_call_operand.vmem [shape: bf16[2,8,1024], index: 4, kind: output, shape index: {}]  }
   0x1   :  { %s760_s17 = smov 0  }
   0x2 LB: > { %s26_s18 = sadd.s32 1, %s722_s16  ;;  %p628_p0 = scmp.ge.s32.totalorder %s726_s17, 1  ;;  %s726_s17 = sphi %s760_s17, %s14_s17   ;;  %s722_s16 = sphi %s758_s16, %s831_s16   ;;  %s718_s15 = sphi %s756_s15, %s830_s15  }
   0x3   : > { %p28_p1 = scmp.ge.s32.totalorder %s26_s18, 2  ;;  %p180_p2 = scmp.lt.s32.totalorder %s726_s17, 3 }
   0x5   : > { %s833_s18 = smov (%p28_p1, %s26_s18), 0  ;;  %p181_p3 = pnand %p628_p0, %p180_p2 }
   0x6   : > { %v230_v0 = vld [vmem:[%s826_s1] sm:$0xf] (!%p181_p3)  ;;  %vm242_vm0 = vcmask (!%p181_p3), 1043456   ;;  %p212_p4 = scmp.lt.s32.totalorder (!%p181_p3), %s718_s15, 1  ;;  %v728_v1 = vmov (!%p181_p3), 0.0   ;;  %vm729_vm1 = vmmov (!%p181_p3), 0  }
   0x7   : > { %184 = sbr.rel (%p181_p3) target bundleno = 458 (0x1ca), region = 36  ;;  %663 = vmatprep.subr.bf16.mxu0 (!%p181_p3), %v728_v1  ;;  %v244_v2 = vsel (!%p181_p3), %vm242_vm0, %v230_v0, 0  ;;  %665 = vmatprep.mubr.msk.bf16.mxu0 (!%p181_p3), %vm729_vm1, %v728_v1  ;;  %v288_v3 = vld [vmem:[%s828_s3 + $0x8] sm:$0xff] (!%p181_p3)  ;;  %vm238_vm2 = vcmask (!%p181_p3), 64512   ;;  %v287_v8 = vld [vmem:[%s828_s3] sm:$0xff] (!%p181_p3)  ;;  %v289_v12 = vld [vmem:[%s828_s3 + $0x10] sm:$0xff] (!%p181_p3) }
   0x8   : > { %664 = vmatpush3.bf16.msra.mxu0 (!%p181_p3), %v244_v2  ;;  %v637_v4 = vcombine.high (!%p181_p3), %v288_v3, %v288_v3  ;;  %v636_v5 = vcombine.low (!%p181_p3), %v288_v3, %v288_v3  ;;  %v635_v9 = vcombine.high (!%p181_p3), %v287_v8, %v287_v8  ;;  %v634_v10 = vcombine.low (!%p181_p3), %v287_v8, %v287_v8  ;;  %v290_v13 = vld [vmem:[%s828_s3 + $0x18] sm:$0xff] (!%p181_p3)  ;;  %v632_v17 = vld [vmem:[%s827_s2] ss:$0 sm:$0xff] (!%p181_p3) }
   0x9   : > { %v730_v14 = vmov (!%p181_p3), 0   ;;  %v639_v15 = vcombine.high (!%p181_p3), %v289_v12, %v289_v12  ;;  %v641_v16 = vcombine.high (!%p181_p3), %v290_v13, %v290_v13  ;;  %v638_v18 = vcombine.low (!%p181_p3), %v289_v12, %v289_v12 }
   0xa   : > { %644 = vmatprep.subr.msk.bf16.mxu0 (!%p181_p3), %vm242_vm0, %v637_v4  ;;  %v321_v6 = vsel (!%p181_p3), %vm242_vm0, %v636_v5, 0  ;;  %642 = vmatprep.subr.msk.bf16.mxu1 (!%p181_p3), %vm242_vm0, %v635_v9  ;;  %v315_v11 = vsel (!%p181_p3), %vm242_vm0, %v634_v10, 0  ;;  %v640_v19 = vcombine.low (!%p181_p3), %v290_v13, %v290_v13 }
   0xb   : > { %339 = vmatpush1.bf16.msra.mxu1 (!%p181_p3), %v315_v11  ;;  %370 = vmatprep.mubr.bf16.mxu1 (!%p181_p3), %v730_v14  ;;  %v327_v26 = vsel (!%p181_p3), %vm242_vm0, %v638_v18, 0 }
   0xc   : > { %646 = vmatprep.subr.msk.bf16.mxu1 (!%p181_p3), %vm242_vm0, %v639_v15  ;;  %v333_v27 = vsel (!%p181_p3), %vm242_vm0, %v640_v19, 0 }
   0xe   : > { %s835_s15 = smov (!%p212_p4, %s718_s15), 1 }
   0xf   : > { %s629_s23 = sshll.u32 %s835_s15, 2  ;;  %s656_s9 = sshll.u32 %s835_s15, 5 }
  0x10   : > { %s218_s26 = scalar_lea.vmem %s825_s0, %s629_s23  ;;  %s227_s12 = scalar_lea.vmem %s829_s4, %s656_s9 }
  0x11   : > { %v229_v7 = vld [vmem:[%s218_s26] sm:$0xf] }
  0x12   : > { %666 = vmatmul.mubr.msk.bf16.vlgmr.msra.gmra.mrb[0].mxu0 %vm238_vm2, %v229_v7 }
  0x13   : > { %380 = vmatpush1.bf16.msra.mxu0 %v321_v6  ;;  %411 = vmatprep.mubr.bf16.mxu0 %v730_v14 }
  0x14   : > { %648 = vmatprep.subr.msk.bf16.mxu0 %vm242_vm0, %v641_v16 }
  0xe5   : > { %v280_v20 = vpop.f32.mrb[0].mxu0 }
  0xe6   : > { %v281_v21 = vadd.f32 %v632_v17, %v280_v20  ;;  %v667_v22 = vpop.f32.mrb[1].mxu0 }
  0xe7   : > { %v283_v23 = vpop.f32.mrb[2].mxu0 }
  0xe8   : > { %v286_v24 = vpack.c.bf16 %v281_v21, %v281_v21  ;;  %v668_v25 = vpop.f32.mrb[3].mxu0 }
  0xea   : > { %643 = vmatmul.mubr.msk.bf16.vlgmr.msra.gmra.mrb[0].mxu1 %vm238_vm2, %v286_v24  ;;  %645 = vmatmul.mubr.msk.bf16.vlgmr.msra.gmra.mrb[4].mxu0 %vm238_vm2, %v286_v24 }
  0xeb   : > { %421 = vmatpush1.bf16.msra.mxu1 %v327_v26  ;;  %462 = vmatpush1.bf16.msra.mxu0 %v333_v27 }
  0xec   : > { %452 = vmatprep.mubr.bf16.mxu1 %v730_v14  ;;  %493 = vmatprep.mubr.bf16.mxu0 %v730_v14 }
  0xf2   : > { %647 = vmatmul.mubr.msk.bf16.vlgmr.msra.gmra.mrb[4].mxu1 %vm238_vm2, %v286_v24  ;;  %649 = vmatmul.mubr.msk.bf16.vlgmr.msra.gmra.mrb[8].mxu0 %vm238_vm2, %v286_v24 }
 0x1bd   : > { %v372_v28 = vpop.f32.mrb[0].mxu1  ;;  %v413_v29 = vpop.f32.mrb[4].mxu0 }
 0x1be   : > { %v374_v30 = vpop.f32.mrb[1].mxu1  ;;  %v415_v31 = vpop.f32.mrb[5].mxu0 }
 0x1bf   : > { %v657_v32 = vpack.c.bf16 %v374_v30, %v372_v28  ;;  %v658_v33 = vpack.c.bf16 %v415_v31, %v413_v29  ;;  %v376_v34 = vpop.f32.mrb[2].mxu1  ;;  %v417_v35 = vpop.f32.mrb[6].mxu0 }
 0x1c0   : > { %v377_v36 = vpop.f32.mrb[3].mxu1  ;;  %v418_v37 = vpop.f32.mrb[7].mxu0 }
 0x1c1   : > { %534 = vst [vmem:[%s227_s12] sm:$0xff] %v657_v32  ;;  %535 = vst [vmem:[%s227_s12 + $0x8] sm:$0xff] %v658_v33 }
 0x1c5   : > { %v454_v38 = vpop.f32.mrb[4].mxu1  ;;  %v495_v39 = vpop.f32.mrb[8].mxu0 }
 0x1c6   : > { %v456_v40 = vpop.f32.mrb[5].mxu1  ;;  %v497_v41 = vpop.f32.mrb[9].mxu0 }
 0x1c7   : > { %v659_v42 = vpack.c.bf16 %v456_v40, %v454_v38  ;;  %v660_v43 = vpack.c.bf16 %v497_v41, %v495_v39  ;;  %v458_v44 = vpop.f32.mrb[6].mxu1  ;;  %v499_v45 = vpop.f32.mrb[10].mxu0 }
 0x1c8   : > { %v459_v46 = vpop.f32.mrb[7].mxu1  ;;  %v500_v47 = vpop.f32.mrb[11].mxu0 }
 0x1c9   : > { %536 = vst [vmem:[%s227_s12 + $0x10] sm:$0xff] %v659_v42  ;;  %537 = vst [vmem:[%s227_s12 + $0x18] sm:$0xff] %v660_v43 }
 0x1ca PF: > { %s14_s17 = sadd.s32 1, %s726_s17   ;;  %s830_s15 = smov %s722_s16 }
 0x1cb   : > { %p11_p5 = scmp.ge.s32.totalorder %s14_s17, 4   ;;  %s831_s16 = smov %s833_s18 }
 0x1cd   :  { %13 = sbr.rel (!%p11_p5) target bundleno = 2 (0x2), region = 66 }

// kernel: hifidiff_forward.13
= control target key start
LH: loop header
LB: loop body
LE: loop exit
PB: predicated region body
PF: predicated region fallthrough
CT: control target
= control target key end

     0   :  { %s1755_s9 = smov 0   ;;  %s1757_s10 = smov 0   ;;  %s2081_s0 = inlined_call_operand.vmem [shape: bf16[2,16,512], index: 0, kind: input, shape index: {}]   ;;  %s2082_s1 = inlined_call_operand.vmem [shape: bf16[2,8,1024], index: 1, kind: input, shape index: {}]   ;;  %s2083_s2 = inlined_call_operand.vmem [shape: bf16[2,16,512], index: 2, kind: output, shape index: {}]  }
   0x1   :  { %s1759_s11 = smov 0  }
   0x2 LB: > { %s24_s12 = sadd.s32 1, %s1731_s10  ;;  %p1412_p0 = scmp.ge.s32.totalorder %s1735_s11, 1  ;;  %s1735_s11 = sphi %s1759_s11, %s12_s11   ;;  %s1731_s10 = sphi %s1757_s10, %s2085_s10   ;;  %s1727_s9 = sphi %s1755_s9, %s2084_s9  }
   0x3   : > { %p26_p1 = scmp.ge.s32.totalorder %s24_s12, 2  ;;  %p144_p2 = scmp.lt.s32.totalorder %s1735_s11, 3 }
   0x5   : > { %s2087_s12 = smov (%p26_p1, %s24_s12), 0  ;;  %p145_p3 = pnand %p1412_p0, %p144_p2 }
   0x6   : > { %p182_p4 = scmp.lt.s32.totalorder (!%p145_p3), %s1727_s9, 1  ;;  %v1737_v0 = vmov (!%p145_p3), 0.0   ;;  %vm1738_vm0 = vmmov (!%p145_p3), 0   ;;  %vm222_vm1 = vcmask (!%p145_p3), 523264   ;;  %vm272_vm2 = vcmask (!%p145_p3), 64512   ;;  %s1739_s20 = smov (!%p145_p3), 64  }
   0x7   : > { %148 = sbr.rel (%p145_p3) target bundleno = 1532 (0x5fc), region = 28  ;;  %1492 = vmatprep.subr.bf16.mxu0 (!%p145_p3), %v1737_v0  ;;  %1494 = vmatprep.mubr.msk.bf16.mxu0 (!%p145_p3), %vm1738_vm0, %v1737_v0  ;;  %vm299_vm3 = vcmask (!%p145_p3), 1043456  }
   0x8   : > { %1498 = vmatprep.subr.bf16.mxu1 (!%p145_p3), %v1737_v0  ;;  %1500 = vmatprep.mubr.msk.bf16.mxu1 (!%p145_p3), %vm1738_vm0, %v1737_v0 }
   0xe   : > { %s2089_s9 = smov (!%p182_p4, %s1727_s9), 1 }
   0xf   : > { %s1779_s13 = sshll.u32 %s2089_s9, 5 }
  0x10   : > { %s1785_s16 = scalar_lea.vmem %s2081_s0, %s1779_s13  ;;  %s1791_s19 = scalar_lea.vmem %s2082_s1, %s1779_s13 }
  0x11   : > { %v213_v1 = vld [vmem:[%s1791_s19] sm:$0xff]  ;;  %v214_v13 = vld [vmem:[%s1791_s19 + $0x8] sm:$0xff]  ;;  %v1812_v26 = vld [vmem:[%s1791_s19 + $0x10] sm:$0xff]  ;;  %s206_s23 = scalar_lea.vmem %s2083_s2, %s1779_s13 }
  0x12   : > { %v227_v2 = vsel %vm222_vm1, %v213_v1, 0  ;;  %v1635_v3 = vld [vmem:[%s1785_s16] ss:$16 sps:$4 sm:$0xff]   ;;  %v1422_v12 = vcombine.low %v213_v1, %v213_v1  ;;  %v1436_v14 = vcombine.low %v214_v13, %v214_v13  ;;  %v1805_v15 = vcombine.high %v214_v13, %v214_v13  ;;  %v1639_v29 = vld [vmem:[%s1785_s16 + $0x4] ss:$16 sps:$4 sm:$0xff]  }
  0x13   : > { %1493 = vmatpush3.bf16.xpose.msra.mxu0 %v227_v2  ;;  %v301_v27 = vsel %vm299_vm3, %v1812_v26, 0  ;;  %v1427_v28 = vcombine.high %v213_v1, %v213_v1  ;;  %v1641_v30 = vld [vmem:[%s1785_s16 + $0x8] ss:$16 sps:$4 sm:$0xff]   ;;  %v1644_v31 = vld [vmem:[%s1785_s16 + $0xc] ss:$16 sps:$4 sm:$0xff]   ;;  %v735_v46 = vsel %vm222_vm1, %v214_v13, 0 }
  0x14   : > { %1510 = vmatprep.subr.bf16.mxu0 %v1737_v0  ;;  %1499 = vmatpush3.bf16.msra.mxu1 %v301_v27  ;;  %v990_v50 = vsel %vm222_vm1, %v1805_v15, 0 }
  0x15   : > { %1504 = vmatprep.subr.bf16.mxu1 %v1737_v0  ;;  %v484_v42 = vsel %vm222_vm1, %v1427_v28, 0 }
  0x1a   : > { %1495 = vmatmul.mubr.msk.bf16.vlgmr.msra.gmra.mrb[0].mxu0 %vm222_vm1, %v1635_v3 }
  0x1b   : > { %1512 = vmatprep.mubr.msk.bf16.mxu0 %vm1738_vm0, %v1737_v0 }
  0xed   : > { %v263_v4 = vpop.f32.mrb[0].mxu0 }
  0xee   : > { %v270_v5 = vmul.f32 0.125, %v263_v4  ;;  %v1496_v6 = vpop.f32.mrb[1].mxu0 }
  0xef   : > { %v266_v7 = vpop.f32.mrb[2].mxu0 }
  0xf0   : > { %v271_v8 = vmul.f32 0.125, %v266_v7  ;;  %v1497_v9 = vpop.f32.mrb[3].mxu0  ;;  %v273_v10 = vsel %vm272_vm2, %v270_v5, -inf }
  0xf1   : > { %274 = vmax.xlane.f32.xlu0 %v273_v10 }
  0xf2   : > { %v276_v11 = vsel %vm272_vm2, %v271_v8, -inf }
  0xf5   : > { %277 = vmax.xlane.f32.xlu0 %v276_v11 }
 0x10b   : > { %349 = vrot.lane.b32.xlu0 %v1422_v12, %s1739_s20 }
 0x10f   : > { %855 = vrot.lane.b32.xlu0 %v1436_v14, %s1739_s20 }
 0x113   : > { %1109 = vrot.lane.b32.xlu0 %v1805_v15, %s1739_s20 }
 0x17e   : > { %v275_v16 = vpop.xlane.xlu0 %274 }
 0x17f   : > { %v279_v17 = vsub.f32 %v270_v5, %v275_v16 }
 0x181   : > { %v281_v18 = vmul.f32 1.442695, %v279_v17 }
 0x182   : > { %v278_v19 = vpop.xlane.xlu0 %277 }
 0x183   : > { %1649 = vpow2.f32 %v281_v18  ;;  %v280_v20 = vsub.f32 %v271_v8, %v278_v19 }
 0x185   : > { %v283_v21 = vmul.f32 1.442695, %v280_v20 }
 0x186   : > { %v350_v36 = vpop.permute.xlu0 %349 }
 0x187   : > { %1651 = vpow2.f32 %v283_v21  ;;  %v355_v39 = vsel %vm222_vm1, %v350_v36, 0 }
 0x18a   : > { %v856_v47 = vpop.permute.xlu0 %855 }
 0x18b   : > { %v861_v48 = vsel %vm222_vm1, %v856_v47, 0 }
 0x18d   : > { %v1650_v22 = vpop.eup %1649 }
 0x18e   : > { %v285_v23 = vsel %vm272_vm2, %v1650_v22, 0.0  ;;  %v1110_v51 = vpop.permute.xlu0 %1109 }
 0x18f   : > { %286 = vadd.xlane.f32.xlu1 %v285_v23  ;;  %v1115_v52 = vsel %vm222_vm1, %v1110_v51, 0 }
 0x191   : > { %v1652_v24 = vpop.eup %1651 }
 0x192   : > { %v288_v25 = vsel %vm272_vm2, %v1652_v24, 0.0 }
 0x193   : > { %289 = vadd.xlane.f32.xlu1 %v288_v25 }
 0x1a4   : > { %344 = vrot.lane.b32.xlu1 %v1635_v3, %s1739_s20 }
 0x1a8   : > { %603 = vrot.lane.b32.xlu1 %v1427_v28, %s1739_s20 }
 0x1ac   : > { %601 = vrot.lane.b32.xlu1 %v1639_v29, %s1739_s20 }
 0x1b0   : > { %850 = vrot.lane.b32.xlu1 %v1641_v30, %s1739_s20 }
 0x1b4   : > { %1107 = vrot.lane.b32.xlu1 %v1644_v31, %s1739_s20 }
 0x21c   : > { %v287_v32 = vpop.xlane.xlu1 %286 }
 0x21d   : > { %1653 = vrcp.f32 %v287_v32 }
 0x220   : > { %v290_v33 = vpop.xlane.xlu1 %289 }
 0x221   : > { %1655 = vrcp.f32 %v290_v33 }
 0x224   : > { %v345_v41 = vpop.permute.xlu1 %344 }
 0x227   : > { %v1654_v34 = vpop.eup %1653 }
 0x228   : > { %v293_v37 = vmul.f32 %v1654_v34, %v1650_v22  ;;  %v604_v43 = vpop.permute.xlu1 %603 }
 0x229   : > { %v609_v44 = vsel %vm222_vm1, %v604_v43, 0 }
 0x22b   : > { %v1656_v35 = vpop.eup %1655 }
 0x22c   : > { %v294_v38 = vmul.f32 %v1656_v35, %v1652_v24  ;;  %v602_v45 = vpop.permute.xlu1 %601 }
 0x22e   : > { %v295_v40 = vpack.c.bf16 %v294_v38, %v293_v37 }
 0x230   : > { %1501 = vmatmul.mubr.msk.bf16.vlgmr.msra.gmra.mrb[0].mxu1 %vm272_vm2, %v295_v40  ;;  %v851_v49 = vpop.permute.xlu1 %850 }
 0x231   : > { %1505 = vmatpush3.bf16.xpose.msra.mxu1 %v355_v39  ;;  %1506 = vmatprep.mubr.msk.bf16.mxu1 %vm1738_vm0, %v1737_v0 }
 0x232   : > { %1516 = vmatprep.subr.bf16.mxu1 %v1737_v0 }
 0x234   : > { %v1108_v53 = vpop.permute.xlu1 %1107 }
 0x238   : > { %1507 = vmatmul.mubr.msk.bf16.vlgmr.msra.gmra.mrb[4].mxu1 %vm222_vm1, %v345_v41 }
 0x239   : > { %1517 = vmatpush3.bf16.xpose.msra.mxu1 %v484_v42  ;;  %1518 = vmatprep.mubr.msk.bf16.mxu1 %vm1738_vm0, %v1737_v0 }
 0x23a   : > { %1528 = vmatprep.subr.bf16.mxu1 %v1737_v0 }
 0x240   : > { %1519 = vmatmul.mubr.msk.bf16.vlgmr.msra.gmra.mrb[8].mxu1 %vm222_vm1, %v1639_v29 }
 0x241   : > { %1529 = vmatpush3.bf16.xpose.msra.mxu1 %v609_v44  ;;  %1530 = vmatprep.mubr.msk.bf16.mxu1 %vm1738_vm0, %v1737_v0 }
 0x242   : > { %1540 = vmatprep.subr.bf16.mxu1 %v1737_v0 }
 0x248   : > { %1531 = vmatmul.mubr.msk.bf16.vlgmr.msra.gmra.mrb[12].mxu1 %vm222_vm1, %v602_v45 }
 0x249   : > { %1541 = vmatpush3.bf16.xpose.msra.mxu1 %v735_v46  ;;  %1542 = vmatprep.mubr.msk.bf16.mxu1 %vm1738_vm0, %v1737_v0 }
 0x24a   : > { %1552 = vmatprep.subr.bf16.mxu1 %v1737_v0 }
 0x250   : > { %1543 = vmatmul.mubr.msk.bf16.vlgmr.msra.gmra.mrb[16].mxu1 %vm222_vm1, %v1641_v30 }
 0x251   : > { %1553 = vmatpush3.bf16.xpose.msra.mxu1 %v861_v48  ;;  %1554 = vmatprep.mubr.msk.bf16.mxu1 %vm1738_vm0, %v1737_v0 }
 0x252   : > { %1564 = vmatprep.subr.bf16.mxu1 %v1737_v0 }
 0x258   : > { %1555 = vmatmul.mubr.msk.bf16.vlgmr.msra.gmra.mrb[20].mxu1 %vm222_vm1, %v851_v49 }
 0x259   : > { %1565 = vmatpush3.bf16.xpose.msra.mxu1 %v990_v50  ;;  %1566 = vmatprep.mubr.msk.bf16.mxu1 %vm1738_vm0, %v1737_v0 }
 0x25a   : > { %1576 = vmatprep.subr.bf16.mxu1 %v1737_v0 }
 0x260   : > { %1567 = vmatmul.mubr.msk.bf16.vlgmr.msra.gmra.mrb[24].mxu1 %vm222_vm1, %v1644_v31 }
 0x261   : > { %1577 = vmatpush3.bf16.xpose.msra.mxu1 %v1115_v52  ;;  %1578 = vmatprep.mubr.msk.bf16.mxu1 %vm1738_vm0, %v1737_v0 }
 0x268   : > { %1579 = vmatmul.mubr.msk.bf16.vlgmr.msra.gmra.mrb[28].mxu1 %vm222_vm1, %v1108_v53 }
 0x303   : > { %v1861_v54 = vpop.f32.mrb[0].mxu1 }
 0x304   : > { %v1502_v55 = vpop.f32.mrb[1].mxu1 }
 0x305   : > { %v1863_v56 = vpop.f32.mrb[2].mxu1 }
 0x306   : > { %v1503_v57 = vpop.f32.mrb[3].mxu1 }
 0x30b   : > { %v391_v58 = vpop.f32.mrb[4].mxu1 }
 0x30c   : > { %v1865_v59 = vmul.f32 0.125, %v391_v58  ;;  %v1508_v60 = vpop.f32.mrb[5].mxu1 }
 0x30d   : > { %v394_v61 = vpop.f32.mrb[6].mxu1 }
 0x30e   : > { %v1867_v62 = vmul.f32 0.125, %v394_v61  ;;  %v1509_v63 = vpop.f32.mrb[7].mxu1  ;;  %v400_v1 = vsel %vm272_vm2, %v1865_v59, -inf }
 0x30f   : > { %401 = vmax.xlane.f32.xlu0 %v400_v1 }
 0x310   : > { %v403_v2 = vsel %vm272_vm2, %v1867_v62, -inf }
 0x311   : > { %404 = vmax.xlane.f32.xlu1 %v403_v2 }
 0x313   : > { %v520_v3 = vpop.f32.mrb[8].mxu1 }
 0x314   : > { %v1873_v4 = vmul.f32 0.125, %v520_v3  ;;  %v1520_v5 = vpop.f32.mrb[9].mxu1 }
 0x315   : > { %v523_v6 = vpop.f32.mrb[10].mxu1 }
 0x316   : > { %v1875_v7 = vmul.f32 0.125, %v523_v6  ;;  %v1521_v8 = vpop.f32.mrb[11].mxu1  ;;  %v529_v9 = vsel %vm272_vm2, %v1873_v4, -inf }
 0x317   : > { %530 = vmax.xlane.f32.xlu0 %v529_v9 }
 0x318   : > { %v532_v10 = vsel %vm272_vm2, %v1875_v7, -inf }
 0x31b   : > { %533 = vmax.xlane.f32.xlu0 %v532_v10  ;;  %v645_v11 = vpop.f32.mrb[12].mxu1 }
 0x31c   : > { %v1881_v12 = vmul.f32 0.125, %v645_v11  ;;  %v1532_v13 = vpop.f32.mrb[13].mxu1 }
 0x31d   : > { %v648_v14 = vpop.f32.mrb[14].mxu1 }
 0x31e   : > { %v1883_v15 = vmul.f32 0.125, %v648_v14  ;;  %v654_v16 = vsel %vm272_vm2, %v1881_v12, -inf  ;;  %v1533_v17 = vpop.f32.mrb[15].mxu1 }
 0x31f   : > { %655 = vmax.xlane.f32.xlu0 %v654_v16  ;;  %v1948_v17 = vcombine.high %v1812_v26, %v1812_v26 }
 0x320   : > { %v657_v18 = vsel %vm272_vm2, %v1883_v15, -inf }
 0x321   : > { %658 = vmax.xlane.f32.xlu1 %v657_v18  ;;  %v1424_v18 = vcombine.low %v1812_v26, %v1812_v26 }
 0x323   : > { %v771_v19 = vpop.f32.mrb[16].mxu1 }
 0x324   : > { %v1889_v20 = vmul.f32 0.125, %v771_v19  ;;  %v1544_v21 = vpop.f32.mrb[17].mxu1 }
 0x325   : > { %v774_v22 = vpop.f32.mrb[18].mxu1 }
 0x326   : > { %v1891_v23 = vmul.f32 0.125, %v774_v22  ;;  %v780_v24 = vsel %vm272_vm2, %v1889_v20, -inf  ;;  %v1545_v25 = vpop.f32.mrb[19].mxu1 }
 0x327   : > { %781 = vmax.xlane.f32.xlu0 %v780_v24 }
 0x328   : > { %v783_v27 = vsel %vm272_vm2, %v1891_v23, -inf }
 0x329   : > { %784 = vmax.xlane.f32.xlu1 %v783_v27 }
 0x32b   : > { %v897_v28 = vpop.f32.mrb[20].mxu1 }
 0x32c   : > { %v1897_v29 = vmul.f32 0.125, %v897_v28  ;;  %v1556_v30 = vpop.f32.mrb[21].mxu1 }
 0x32d   : > { %v900_v31 = vpop.f32.mrb[22].mxu1 }
 0x32e   : > { %v1899_v32 = vmul.f32 0.125, %v900_v31  ;;  %v906_v33 = vsel %vm272_vm2, %v1897_v29, -inf  ;;  %v1557_v34 = vpop.f32.mrb[23].mxu1 }
 0x32f   : > { %907 = vmax.xlane.f32.xlu0 %v906_v33 }
 0x330   : > { %v909_v35 = vsel %vm272_vm2, %v1899_v32, -inf }
 0x331   : > { %910 = vmax.xlane.f32.xlu1 %v909_v35 }
 0x333   : > { %v1026_v36 = vpop.f32.mrb[24].mxu1 }
 0x334   : > { %v1905_v37 = vmul.f32 0.125, %v1026_v36  ;;  %v1568_v38 = vpop.f32.mrb[25].mxu1 }
 0x335   : > { %v1029_v39 = vpop.f32.mrb[26].mxu1 }
 0x336   : > { %v1907_v40 = vmul.f32 0.125, %v1029_v39  ;;  %v1035_v41 = vsel %vm272_vm2, %v1905_v37, -inf  ;;  %v1569_v42 = vpop.f32.mrb[27].mxu1 }
 0x337   : > { %1036 = vmax.xlane.f32.xlu0 %v1035_v41 }
 0x338   : > { %v1038_v43 = vsel %vm272_vm2, %v1907_v40, -inf }
 0x339   : > { %1039 = vmax.xlane.f32.xlu1 %v1038_v43 }
 0x33b   : > { %v1151_v44 = vpop.f32.mrb[28].mxu1 }
 0x33c   : > { %v1913_v45 = vmul.f32 0.125, %v1151_v44  ;;  %v1580_v46 = vpop.f32.mrb[29].mxu1 }
 0x33d   : > { %v1154_v47 = vpop.f32.mrb[30].mxu1 }
 0x33e   : > { %v1915_v48 = vmul.f32 0.125, %v1154_v47  ;;  %v1160_v49 = vsel %vm272_vm2, %v1913_v45, -inf  ;;  %v1581_v50 = vpop.f32.mrb[31].mxu1 }
 0x33f   : > { %1161 = vmax.xlane.f32.xlu0 %v1160_v49 }
 0x340   : > { %v1163_v51 = vsel %vm272_vm2, %v1915_v48, -inf }
 0x341   : > { %1164 = vmax.xlane.f32.xlu1 %v1163_v51 }
 0x39c   : > { %v402_v52 = vpop.xlane.xlu0 %401 }
 0x39d   : > { %v406_v53 = vsub.f32 %v1865_v59, %v402_v52 }
 0x39e   : > { %v405_v55 = vpop.xlane.xlu1 %404 }
 0x39f   : > { %v408_v57 = vmul.f32 1.442695, %v406_v53  ;;  %v407_v58 = vsub.f32 %v1867_v62, %v405_v55 }
 0x3a1   : > { %1657 = vpow2.f32 %v408_v57  ;;  %v410_v60 = vmul.f32 1.442695, %v407_v58 }
 0x3a3   : > { %1659 = vpow2.f32 %v410_v60 }
 0x3a4   : > { %v531_v61 = vpop.xlane.xlu0 %530 }
 0x3a5   : > { %v535_v63 = vsub.f32 %v1873_v4, %v531_v61 }
 0x3a7   : > { %v537_v1 = vmul.f32 1.442695, %v535_v63 }
 0x3a8   : > { %v534_v2 = vpop.xlane.xlu0 %533 }
 0x3a9   : > { %1661 = vpow2.f32 %v537_v1  ;;  %v536_v3 = vsub.f32 %v1875_v7, %v534_v2 }
 0x3ab   : > { %v1925_v5 = vpop.eup %1657  ;;  %v539_v6 = vmul.f32 1.442695, %v536_v3 }
 0x3ac   : > { %v656_v8 = vpop.xlane.xlu0 %655  ;;  %v412_v59 = vsel %vm272_vm2, %v1925_v5, 0.0 }
 0x3ad   : > { %v1929_v9 = vpop.eup %1659  ;;  %1663 = vpow2.f32 %v539_v6  ;;  %v660_v62 = vsub.f32 %v1881_v12, %v656_v8  ;;  %413 = vadd.xlane.f32.xlu0 %v412_v59  ;;  %v216_v6 = vld [vmem:[%s1791_s19 + $0x18] sm:$0xff] }
 0x3ae   : > { %v415_v4 = vsel %vm272_vm2, %v1929_v9, 0.0  ;;  %v659_v21 = vpop.xlane.xlu1 %658  ;;  %v1438_v8 = vcombine.low %v216_v6, %v216_v6  ;;  %v2002_v59 = vcombine.high %v216_v6, %v216_v6 }
 0x3af   : > { %v662_v10 = vmul.f32 1.442695, %v660_v62  ;;  %416 = vadd.xlane.f32.xlu1 %v415_v4  ;;  %v661_v24 = vsub.f32 %v1883_v15, %v659_v21 }
 0x3b1   : > { %1665 = vpow2.f32 %v662_v10  ;;  %v664_v30 = vmul.f32 1.442695, %v661_v24 }
 0x3b3   : > { %v1934_v7 = vpop.eup %1661  ;;  %1667 = vpow2.f32 %v664_v30 }
 0x3b4   : > { %v541_v11 = vsel %vm272_vm2, %v1934_v7, 0.0  ;;  %v782_v19 = vpop.xlane.xlu0 %781 }
 0x3b5   : > { %542 = vadd.xlane.f32.xlu0 %v541_v11  ;;  %v786_v28 = vsub.f32 %v1889_v20, %v782_v19 }
 0x3b6   : > { %v785_v25 = vpop.xlane.xlu1 %784 }
 0x3b7   : > { %v1938_v13 = vpop.eup %1663  ;;  %v787_v31 = vsub.f32 %v1891_v23, %v785_v25  ;;  %v788_v34 = vmul.f32 1.442695, %v786_v28 }
 0x3b8   : > { %v544_v14 = vsel %vm272_vm2, %v1938_v13, 0.0 }
 0x3b9   : > { %545 = vadd.xlane.f32.xlu1 %v544_v14  ;;  %v790_v26 = vmul.f32 1.442695, %v787_v31  ;;  %1669 = vpow2.f32 %v788_v34 }
 0x3bb   : > { %v1942_v12 = vpop.eup %1665  ;;  %1671 = vpow2.f32 %v790_v26 }
 0x3bc   : > { %v666_v16 = vsel %vm272_vm2, %v1942_v12, 0.0  ;;  %v908_v22 = vpop.xlane.xlu0 %907 }
 0x3bd   : > { %667 = vadd.xlane.f32.xlu0 %v666_v16  ;;  %v912_v35 = vsub.f32 %v1897_v29, %v908_v22  ;;  %v1962_v43 = vpop.eup %1667 }
 0x3be   : > { %v911_v38 = vpop.xlane.xlu1 %910  ;;  %v669_v47 = vsel %vm272_vm2, %v1962_v43, 0.0 }
 0x3bf   : > { %v914_v39 = vmul.f32 1.442695, %v912_v35  ;;  %v913_v15 = vsub.f32 %v1899_v32, %v911_v38 }
 0x3c1   : > { %1673 = vpow2.f32 %v914_v39  ;;  %v916_v20 = vmul.f32 1.442695, %v913_v15 }
 0x3c4   : > { %v1037_v27 = vpop.xlane.xlu0 %1036 }
 0x3c5   : > { %v1041_v42 = vsub.f32 %v1905_v37, %v1037_v27  ;;  %v558_v27 = vsel %vm299_vm3, %v1948_v17, 0 }
 0x3c6   : > { %v1040_v23 = vpop.xlane.xlu1 %1039 }
 0x3c7   : > { %v1043_v29 = vmul.f32 1.442695, %v1041_v42  ;;  %v1042_v44 = vsub.f32 %v1907_v40, %v1040_v23 }
 0x3c9   : > { %v1045_v49 = vmul.f32 1.442695, %v1042_v44 }
 0x3ca   : > { %677 = vrot.lane.b32.xlu1 %v1948_v17, %s1739_s20 }
 0x3cc   : > { %v1162_v33 = vpop.xlane.xlu0 %1161 }
 0x3cd   : > { %v1166_v36 = vsub.f32 %v1913_v45, %v1162_v33  ;;  %v1965_v45 = vpop.eup %1669 }
 0x3ce   : > { %v1165_v46 = vpop.xlane.xlu1 %1164  ;;  %v1969_v32 = vpop.eup %1671  ;;  %v792_v40 = vsel %vm272_vm2, %v1965_v45, 0.0 }
 0x3cf   : > { %v1168_v41 = vmul.f32 1.442695, %v1166_v36  ;;  %v1167_v37 = vsub.f32 %v1915_v48, %v1165_v46  ;;  %v1972_v50 = vpop.eup %1673  ;;  %v795_v51 = vsel %vm272_vm2, %v1969_v32, 0.0 }
 0x3d0   : > { %v918_v55 = vsel %vm272_vm2, %v1972_v50, 0.0 }
 0x3d1   : > { %1675 = vpow2.f32 %v1168_v41  ;;  %v1170_v53 = vmul.f32 1.442695, %v1167_v37 }
 0x3d2   : > { %1677 = vpow2.f32 %v916_v20  ;;  %v807_v20 = vsel %vm299_vm3, %v216_v6, 0 }
 0x3d3   : > { %426 = vrot.lane.b32.xlu0 %v1424_v18, %s1739_s20  ;;  %1679 = vpow2.f32 %v1043_v29 }
 0x3d4   : > { %1681 = vpow2.f32 %v1045_v49 }
 0x3d5   : > { %1683 = vpow2.f32 %v1170_v53 }
 0x3db   : > { %v1978_v52 = vpop.eup %1675 }
 0x3dc   : > { %v1172_v48 = vsel %vm272_vm2, %v1978_v52, 0.0  ;;  %v1984_v57 = vpop.eup %1677 }
 0x3dd   : > { %v921_v58 = vsel %vm272_vm2, %v1984_v57, 0.0  ;;  %v1988_v60 = vpop.eup %1679 }
 0x3de   : > { %v1047_v61 = vsel %vm272_vm2, %v1988_v60, 0.0  ;;  %v1992_v63 = vpop.eup %1681 }
 0x3df   : > { %v1050_v1 = vsel %vm272_vm2, %v1992_v63, 0.0  ;;  %v1996_v2 = vpop.eup %1683 }
 0x3e0   : > { %v1175_v3 = vsel %vm272_vm2, %v1996_v2, 0.0 }
 0x3ee   : > { %670 = vadd.xlane.f32.xlu1 %v669_v47 }
 0x3f2   : > { %796 = vadd.xlane.f32.xlu1 %v795_v51  ;;  %793 = vadd.xlane.f32.xlu0 %v792_v40 }
 0x3f6   : > { %919 = vadd.xlane.f32.xlu1 %v918_v55  ;;  %1173 = vadd.xlane.f32.xlu0 %v1172_v48  ;;  %v1064_v48 = vsel %vm299_vm3, %v2002_v59, 0 }
 0x3fa   : > { %922 = vadd.xlane.f32.xlu1 %v921_v58 }
 0x3fe   : > { %1048 = vadd.xlane.f32.xlu1 %v1047_v61 }
 0x402   : > { %1051 = vadd.xlane.f32.xlu1 %v1050_v1 }
 0x406   : > { %1176 = vadd.xlane.f32.xlu1 %v1175_v3 }
 0x40c   : > { %932 = vrot.lane.b32.xlu0 %v1438_v8, %s1739_s20 }
 0x417   : > { %1183 = vrot.lane.b32.xlu1 %v2002_v59, %s1739_s20 }
 0x43a   : > { %v414_v4 = vpop.xlane.xlu0 %413 }
 0x43c   : > { %v417_v62 = vpop.xlane.xlu1 %416 }
 0x43d   : > { %1685 = vrcp.f32 %v417_v62 }
 0x43e   : > { %1687 = vrcp.f32 %v414_v4 }
 0x442   : > { %v543_v10 = vpop.xlane.xlu0 %542 }
 0x446   : > { %v546_v11 = vpop.xlane.xlu1 %545 }
 0x447   : > { %1689 = vrcp.f32 %v546_v11  ;;  %v1686_v14 = vpop.eup %1685 }
 0x448   : > { %1691 = vrcp.f32 %v543_v10  ;;  %v1688_v18 = vpop.eup %1687  ;;  %v421_v19 = vmul.f32 %v1686_v14, %v1929_v9 }
 0x449   : > { %v420_v22 = vmul.f32 %v1688_v18, %v1925_v5 }
 0x44a   : > { %v668_v16 = vpop.xlane.xlu0 %667  ;;  %v678_v31 = vpop.permute.xlu1 %677 }
 0x44b   : > { %v422_v25 = vpack.c.bf16 %v421_v19, %v420_v22  ;;  %v683_v34 = vsel %vm299_vm3, %v678_v31, 0  ;;  %1693 = vrcp.f32 %v668_v16 }
 0x44e   : > { %v427_v21 = vpop.permute.xlu0 %426 }
 0x44f   : > { %v432_v24 = vsel %vm299_vm3, %v427_v21, 0 }
 0x450   : > { %1511 = vmatpush3.bf16.msra.mxu0 %v432_v24 }
 0x451   : > { %1522 = vmatprep.subr.bf16.mxu0 %v1737_v0  ;;  %v1690_v28 = vpop.eup %1689 }
 0x452   : > { %v1692_v30 = vpop.eup %1691  ;;  %v550_v9 = vmul.f32 %v1690_v28, %v1938_v13 }
 0x453   : > { %1513 = vmatmul.mubr.msk.bf16.vlgmr.msra.gmra.mrb[4].mxu0 %vm272_vm2, %v422_v25  ;;  %v549_v5 = vmul.f32 %v1692_v30, %v1934_v7 }
 0x454   : > { %1523 = vmatpush3.bf16.msra.mxu0 %v558_v27  ;;  %1524 = vmatprep.mubr.msk.bf16.mxu0 %vm1738_vm0, %v1737_v0 }
 0x455   : > { %1534 = vmatprep.subr.bf16.mxu0 %v1737_v0  ;;  %v551_v33 = vpack.c.bf16 %v550_v9, %v549_v5  ;;  %v1694_v26 = vpop.eup %1693 }
 0x456   : > { %v674_v38 = vmul.f32 %v1694_v26, %v1942_v12 }
 0x45b   : > { %1525 = vmatmul.mubr.msk.bf16.vlgmr.msra.gmra.mrb[8].mxu0 %vm272_vm2, %v551_v33 }
 0x45c   : > { %1535 = vmatpush3.bf16.msra.mxu0 %v683_v34  ;;  %1536 = vmatprep.mubr.msk.bf16.mxu0 %vm1738_vm0, %v1737_v0 }
 0x45d   : > { %1546 = vmatprep.subr.bf16.mxu0 %v1737_v0 }
 0x47b   : > { %v671_v17 = vpop.xlane.xlu1 %670 }
 0x47c   : > { %1695 = vrcp.f32 %v671_v17 }
 0x47f   : > { %v797_v13 = vpop.xlane.xlu1 %796  ;;  %v794_v35 = vpop.xlane.xlu0 %793 }
 0x480   : > { %1697 = vrcp.f32 %v797_v13 }
 0x481   : > { %1699 = vrcp.f32 %v794_v35 }
 0x483   : > { %v920_v7 = vpop.xlane.xlu1 %919  ;;  %v1174_v23 = vpop.xlane.xlu0 %1173 }
 0x486   : > { %v1696_v36 = vpop.eup %1695 }
 0x487   : > { %v675_v39 = vmul.f32 %v1696_v36, %v1962_v43  ;;  %v923_v15 = vpop.xlane.xlu1 %922  ;;  %v933_v46 = vpop.permute.xlu0 %932 }
 0x488   : > { %1701 = vrcp.f32 %v923_v15  ;;  %v938_v49 = vsel %vm299_vm3, %v933_v46, 0 }
 0x489   : > { %v676_v41 = vpack.c.bf16 %v675_v39, %v674_v38  ;;  %1703 = vrcp.f32 %v920_v7 }
 0x48a   : > { %v1698_v42 = vpop.eup %1697 }
 0x48b   : > { %v1700_v29 = vpop.eup %1699  ;;  %v1049_v44 = vpop.xlane.xlu1 %1048  ;;  %1537 = vmatmul.mubr.msk.bf16.vlgmr.msra.gmra.mrb[12].mxu0 %vm272_vm2, %v676_v41  ;;  %v801_v12 = vmul.f32 %v1698_v42, %v1969_v32 }
 0x48c   : > { %1547 = vmatpush3.bf16.msra.mxu0 %v807_v20  ;;  %1548 = vmatprep.mubr.msk.bf16.mxu0 %vm1738_vm0, %v1737_v0  ;;  %v800_v43 = vmul.f32 %v1700_v29, %v1965_v45 }
 0x48d   : > { %1558 = vmatprep.subr.bf16.mxu0 %v1737_v0 }
 0x48e   : > { %v802_v37 = vpack.c.bf16 %v801_v12, %v800_v43 }
 0x48f   : > { %v1052_v47 = vpop.xlane.xlu1 %1051 }
 0x490   : > { %1705 = vrcp.f32 %v1052_v47 }
 0x491   : > { %1707 = vrcp.f32 %v1049_v44 }
 0x492   : > { %v1702_v51 = vpop.eup %1701 }
 0x493   : > { %1549 = vmatmul.mubr.msk.bf16.vlgmr.msra.gmra.mrb[16].mxu0 %vm272_vm2, %v802_v37  ;;  %v1704_v40 = vpop.eup %1703  ;;  %v927_v32 = vmul.f32 %v1702_v51, %v1984_v57  ;;  %v1177_v45 = vpop.xlane.xlu1 %1176 }
 0x494   : > { %1559 = vmatpush3.bf16.msra.mxu0 %v938_v49  ;;  %1560 = vmatprep.mubr.msk.bf16.mxu0 %vm1738_vm0, %v1737_v0  ;;  %v926_v53 = vmul.f32 %v1704_v40, %v1972_v50  ;;  %1709 = vrcp.f32 %v1177_v45 }
 0x495   : > { %1570 = vmatprep.subr.bf16.mxu0 %v1737_v0  ;;  %1711 = vrcp.f32 %v1174_v23 }
 0x496   : > { %v928_v55 = vpack.c.bf16 %v927_v32, %v926_v53 }
 0x497   : > { %v1184_v1 = vpop.permute.xlu1 %1183 }
 0x498   : > { %v1189_v3 = vsel %vm299_vm3, %v1184_v1, 0 }
 0x49a   : > { %v1706_v58 = vpop.eup %1705 }
 0x49b   : > { %1561 = vmatmul.mubr.msk.bf16.vlgmr.msra.gmra.mrb[20].mxu0 %vm272_vm2, %v928_v55  ;;  %v1708_v61 = vpop.eup %1707  ;;  %v1056_v57 = vmul.f32 %v1706_v58, %v1992_v63 }
 0x49c   : > { %1571 = vmatpush3.bf16.msra.mxu0 %v1064_v48  ;;  %1572 = vmatprep.mubr.msk.bf16.mxu0 %vm1738_vm0, %v1737_v0  ;;  %v1055_v50 = vmul.f32 %v1708_v61, %v1988_v60 }
 0x49d   : > { %1582 = vmatprep.subr.bf16.mxu0 %v1737_v0 }
 0x49e   : > { %v1057_v6 = vpack.c.bf16 %v1056_v57, %v1055_v50  ;;  %v1710_v8 = vpop.eup %1709 }
 0x49f   : > { %v1712_v59 = vpop.eup %1711  ;;  %v1181_v62 = vmul.f32 %v1710_v8, %v1996_v2 }
 0x4a0   : > { %v1180_v63 = vmul.f32 %v1712_v59, %v1978_v52 }
 0x4a2   : > { %v1182_v4 = vpack.c.bf16 %v1181_v62, %v1180_v63 }
 0x4a3   : > { %1573 = vmatmul.mubr.msk.bf16.vlgmr.msra.gmra.mrb[24].mxu0 %vm272_vm2, %v1057_v6 }
 0x4a4   : > { %1583 = vmatpush3.bf16.msra.mxu0 %v1189_v3  ;;  %1584 = vmatprep.mubr.msk.bf16.mxu0 %vm1738_vm0, %v1737_v0 }
 0x4ab   : > { %1585 = vmatmul.mubr.msk.bf16.vlgmr.msra.gmra.mrb[28].mxu0 %vm272_vm2, %v1182_v4 }
 0x526   : > { %v468_v10 = vpop.f32.mrb[4].mxu0 }
 0x527   : > { %v1514_v60 = vpop.f32.mrb[5].mxu0 }
 0x528   : > { %v471_v11 = vpop.f32.mrb[6].mxu0 }
 0x529   : > { %v1615_v14 = vpack.i.bf16 %v471_v11, %v468_v10  ;;  %v1515_v16 = vpop.f32.mrb[7].mxu0 }
 0x52b   : > { %1616 = vrot.lane.b32.xlu0 %v1615_v14, %s1739_s20 }
 0x52e   : > { %v594_v18 = vpop.f32.mrb[8].mxu0 }
 0x52f   : > { %v1526_v19 = vpop.f32.mrb[9].mxu0 }
 0x530   : > { %v597_v21 = vpop.f32.mrb[10].mxu0 }
 0x531   : > { %v1527_v22 = vpop.f32.mrb[11].mxu0 }
 0x55e   : > { %v719_v24 = vpop.f32.mrb[12].mxu0 }
 0x55f   : > { %v1538_v0 = vpop.f32.mrb[13].mxu0 }
 0x560   : > { %v722_v25 = vpop.f32.mrb[14].mxu0 }
 0x561   : > { %v1620_v2 = vpack.i.bf16 %v722_v25, %v719_v24  ;;  %v1539_v27 = vpop.f32.mrb[15].mxu0 }
 0x563   : > { %1621 = vrot.lane.b32.xlu0 %v1620_v2, %s1739_s20 }
 0x566   : > { %v843_v52 = vpop.f32.mrb[16].mxu0 }
 0x567   : > { %v1550_v28 = vpop.f32.mrb[17].mxu0 }
 0x568   : > { %v846_v30 = vpop.f32.mrb[18].mxu0 }
 0x569   : > { %v1551_v9 = vpop.f32.mrb[19].mxu0 }
 0x56e   : > { %v974_v5 = vpop.f32.mrb[20].mxu0 }
 0x56f   : > { %v1562_v31 = vpop.f32.mrb[21].mxu0 }
 0x570   : > { %v977_v33 = vpop.f32.mrb[22].mxu0 }
 0x571   : > { %v1625_v34 = vpack.i.bf16 %v977_v33, %v974_v5  ;;  %v1563_v17 = vpop.f32.mrb[23].mxu0 }
 0x573   : > { %1626 = vrot.lane.b32.xlu0 %v1625_v34, %s1739_s20 }
 0x576   : > { %v1100_v13 = vpop.f32.mrb[24].mxu0 }
 0x577   : > { %v1574_v35 = vpop.f32.mrb[25].mxu0 }
 0x578   : > { %v1103_v7 = vpop.f32.mrb[26].mxu0 }
 0x579   : > { %v1575_v26 = vpop.f32.mrb[27].mxu0 }
 0x57e   : > { %v1225_v36 = vpop.f32.mrb[28].mxu0 }
 0x57f   : > { %v1586_v38 = vpop.f32.mrb[29].mxu0 }
 0x580   : > { %v1228_v39 = vpop.f32.mrb[30].mxu0 }
 0x581   : > { %v1630_v15 = vpack.i.bf16 %v1228_v39, %v1225_v36  ;;  %v1587_v41 = vpop.f32.mrb[31].mxu0 }
 0x583   : > { %1631 = vrot.lane.b32.xlu1 %v1630_v15, %s1739_s20 }
 0x59d   : > { %v1617_v20 = vpop.permute.xlu0 %1616 }
 0x59e   : > { %v1619_v42 = vunpack.i.h.bf16 %v1617_v20  ;;  %v1618_v23 = vunpack.i.l.bf16 %v1617_v20 }
 0x5a0   : > { %v1265_v43 = vsel %vm222_vm1, %v1863_v56, %v1619_v42  ;;  %v1264_v46 = vsel %vm222_vm1, %v1861_v54, %v1618_v23 }
 0x5d5   : > { %v1622_v29 = vpop.permute.xlu0 %1621 }
 0x5d6   : > { %v1624_v44 = vunpack.i.h.bf16 %v1622_v29  ;;  %v1623_v12 = vunpack.i.l.bf16 %v1622_v29 }
 0x5d8   : > { %v1267_v47 = vsel %vm222_vm1, %v597_v21, %v1624_v44  ;;  %v1266_v49 = vsel %vm222_vm1, %v594_v18, %v1623_v12 }
 0x5d9   : > { %v1458_v37 = vpack.c.bf16 %v1267_v47, %v1265_v43  ;;  %v1456_v51 = vpack.c.bf16 %v1266_v49, %v1264_v46 }
 0x5db   : > { %1298 = vst [vmem:[%s206_s23 + $0x10] sm:$0xff] %v1458_v37  ;;  %1296 = vst [vmem:[%s206_s23] sm:$0xff] %v1456_v51 }
 0x5e5   : > { %v1627_v40 = vpop.permute.xlu0 %1626 }
 0x5e6   : > { %v1629_v32 = vunpack.i.h.bf16 %v1627_v40  ;;  %v1628_v45 = vunpack.i.l.bf16 %v1627_v40 }
 0x5e8   : > { %v1269_v58 = vsel %vm222_vm1, %v846_v30, %v1629_v32  ;;  %v1268_v56 = vsel %vm222_vm1, %v843_v52, %v1628_v45 }
 0x5f5   : > { %v1632_v53 = vpop.permute.xlu1 %1631 }
 0x5f6   : > { %v1634_v55 = vunpack.i.h.bf16 %v1632_v53  ;;  %v1633_v48 = vunpack.i.l.bf16 %v1632_v53 }
 0x5f8   : > { %v1271_v54 = vsel %vm222_vm1, %v1103_v7, %v1634_v55  ;;  %v1270_v61 = vsel %vm222_vm1, %v1100_v13, %v1633_v48 }
 0x5f9   : > { %v1459_v57 = vpack.c.bf16 %v1271_v54, %v1269_v58  ;;  %v1457_v1 = vpack.c.bf16 %v1270_v61, %v1268_v56 }
 0x5fb   : > { %1299 = vst [vmem:[%s206_s23 + $0x18] sm:$0xff] %v1459_v57  ;;  %1297 = vst [vmem:[%s206_s23 + $0x8] sm:$0xff] %v1457_v1 }
 0x5fc PF: > { %s12_s11 = sadd.s32 1, %s1735_s11   ;;  %s2084_s9 = smov %s1731_s10 }
 0x5fd   : > { %p9_p5 = scmp.ge.s32.totalorder %s12_s11, 4   ;;  %s2085_s10 = smov %s2087_s12 }
 0x5ff   :  { %11 = sbr.rel (!%p9_p5) target bundleno = 2 (0x2), region = 61 }

// kernel: hifidiff_forward.10
= control target key start
LH: loop header
LB: loop body
LE: loop exit
PB: predicated region body
PF: predicated region fallthrough
CT: control target
= control target key end

     0   :  { %12 = vsyncpa [#allocation3], 0  ;;  %s1636_s24 = smov [#allocation2]   ;;  %s2134_s0 = inlined_call_operand.vmem [shape: f32[2,128], index: 0, kind: input, shape index: {}]   ;;  %s2135_s1 = inlined_call_operand.vmem [shape: f32[128,512], index: 1, kind: input, shape index: {}]   ;;  %s2136_s2 = inlined_call_operand.vmem [shape: f32[1,512], index: 2, kind: input, shape index: {}]   ;;  %s2137_s3 = inlined_call_operand.hbm [shape: f32[512,512], index: 3, kind: input, shape index: {}]   ;;  %s2138_s4 = inlined_call_operand.vmem [shape: f32[1,512], index: 4, kind: input, shape index: {}]   ;;  %s2139_s5 = inlined_call_operand.vmem [shape: f32[512,8], index: 5, kind: input, shape index: {}]   ;;  %s2140_s6 = inlined_call_operand.vmem [shape: f32[1,8], index: 6, kind: input, shape index: {}]   ;;  %s2141_s7 = inlined_call_operand.vmem [shape: f32[2,8], index: 7, kind: output, shape index: {}]  }
   0x1   :  { %s24_s25 = sshll.u32 %s1636_s24, 4  ;;  %s1612_s28 = scalar_lea.hbm %s2137_s3, 32768  ;;  %s25_s25 = int_to_ptr.vmem [resolvable:$true] %s24_s25 }
   0x2   :  { %p1613_p0 = scmp.ne.s32.totalorder %s2137_s3, %s1612_s28  ;;  %p1616_p1 = scmp.lt.u32.totalorder %s1612_s28, %s2137_s3 }
   0x4   :  { %p1618_p2 = pnand %p1616_p1, %p1613_p0 }
   0x6   :  { %1621 = shalt.err (!%p1618_p2)
}
   0x7   :  { %s1622_s10 = scalar_lea.vmem %s25_s25, 32768  ;;  %p1627_p4 = scmp.lt.s32.totalorder %s25_s25, %s25_s25 }
   0x8   :  { %p1623_p3 = scmp.ne.s32.totalorder %s25_s25, %s1622_s10  ;;  %p1628_p5 = scmp.lt.s32.totalorder %s1622_s10, %s1622_s10 }
   0xa   :  { %p1629_p6 = por %p1628_p5, %p1627_p4 }
   0xc   :  { %p1630_p7 = pnand %p1629_p6, %p1623_p3 }
   0xe   :  { %1633 = shalt.err (!%p1630_p7)
}
   0xf   :  { %s1637_s11 = smov 512   ;;  %s1638_s12 = smov 32  }
  0x10   :  { %30 = dma.hbm_to_vmem [thread:$0]  %s2137_s3, 32768, %s25_s25, [#allocation3], %s1637_s11, %s1637_s11, %s1638_s12  }
  0x11   :  { %1634 = dma.done.wait [#allocation3], 32768  }
  0x12   :  { %1635 = vsyncadd [#allocation3], 4294934528  ;;  %v1639_v0 = vmov 0.0   ;;  %v42_v1 = vld [vmem:[%s2135_s1 + $0x8] sm:$0xff]  ;;  %v41_v3 = vld [vmem:[%s2135_s1] sm:$0xff]  ;;  %vm1098_vm0 = vcmask 58368  }
  0x13   :  { %191 = vmatprep.mubr.f32.mxu0 %v1639_v0  ;;  %262 = vmatprep.mubr.f32.mxu1 %v1639_v0  ;;  %v46_v2 = vld [vmem:[%s2135_s1 + $0x28] sm:$0xff]  ;;  %v45_v5 = vld [vmem:[%s2135_s1 + $0x20] sm:$0xff]  ;;  %v44_v28 = vld [vmem:[%s2135_s1 + $0x18] sm:$0xff] }
  0x14   :  { %v1184_v4 = vpack.c.bf16 %v46_v2, %v42_v1  ;;  %v50_v6 = vld [vmem:[%s2135_s1 + $0x48] sm:$0xff]  ;;  %v1186_v8 = vpack.c.bf16 %v45_v5, %v41_v3  ;;  %v49_v10 = vld [vmem:[%s2135_s1 + $0x40] sm:$0xff]  ;;  %v48_v29 = vld [vmem:[%s2135_s1 + $0x38] sm:$0xff] }
  0x15   :  { %v54_v7 = vld [vmem:[%s2135_s1 + $0x68] sm:$0xff]  ;;  %v53_v11 = vld [vmem:[%s2135_s1 + $0x60] sm:$0xff]  ;;  %v43_v30 = vld [vmem:[%s2135_s1 + $0x10] sm:$0xff]  ;;  %v1216_v32 = vpack.c.bf16 %v48_v29, %v44_v28 }
  0x16   :  { %v1188_v9 = vpack.c.bf16 %v54_v7, %v50_v6  ;;  %v58_v12 = vld [vmem:[%s2135_s1 + $0x88] sm:$0xff]  ;;  %1185 = vmatprep.subr.bf16.mxu0 %v1184_v4  ;;  %v1190_v14 = vpack.c.bf16 %v53_v11, %v49_v10  ;;  %v57_v16 = vld [vmem:[%s2135_s1 + $0x80] sm:$0xff]  ;;  %v47_v33 = vld [vmem:[%s2135_s1 + $0x30] sm:$0xff] }
  0x17   :  { %v62_v13 = vld [vmem:[%s2135_s1 + $0xa8] sm:$0xff]  ;;  %1187 = vmatpush1.bf16.msra.mxu0 %v1186_v8  ;;  %v61_v17 = vld [vmem:[%s2135_s1 + $0xa0] sm:$0xff]  ;;  %v52_v34 = vld [vmem:[%s2135_s1 + $0x58] sm:$0xff]  ;;  %v1218_v37 = vpack.c.bf16 %v47_v33, %v43_v30  ;;  %1217 = vmatprep.subr.bf16.mxu1 %v1216_v32 }
  0x18   :  { %1189 = vmatprep.subr.bf16.mxu0 %v1188_v9  ;;  %v1192_v15 = vpack.c.bf16 %v62_v13, %v58_v12  ;;  %v66_v18 = vld [vmem:[%s2135_s1 + $0xc8] sm:$0xff]  ;;  %v1194_v20 = vpack.c.bf16 %v61_v17, %v57_v16  ;;  %v65_v22 = vld [vmem:[%s2135_s1 + $0xc0] sm:$0xff]  ;;  %v56_v35 = vld [vmem:[%s2135_s1 + $0x78] sm:$0xff] }
  0x19   :  { %v70_v19 = vld [vmem:[%s2135_s1 + $0xe8] sm:$0xff]  ;;  %v69_v23 = vld [vmem:[%s2135_s1 + $0xe0] sm:$0xff]  ;;  %v1220_v38 = vpack.c.bf16 %v56_v35, %v52_v34  ;;  %v51_v39 = vld [vmem:[%s2135_s1 + $0x50] sm:$0xff]  ;;  %1219 = vmatpush1.bf16.msra.mxu1 %v1218_v37 }
  0x1a   :  { %v1196_v21 = vpack.c.bf16 %v70_v19, %v66_v18  ;;  %v74_v24 = vld [vmem:[%s2135_s1 + $0x108] sm:$0xff]  ;;  %v73_v26 = vld [vmem:[%s2135_s1 + $0x100] sm:$0xff]  ;;  %v1198_v31 = vpack.c.bf16 %v69_v23, %v65_v22  ;;  %v55_v40 = vld [vmem:[%s2135_s1 + $0x70] sm:$0xff] }
  0x1b   :  { %1191 = vmatpush1.bf16.msra.mxu0 %v1190_v14  ;;  %v78_v25 = vld [vmem:[%s2135_s1 + $0x128] sm:$0xff]  ;;  %v77_v27 = vld [vmem:[%s2135_s1 + $0x120] sm:$0xff]  ;;  %v60_v41 = vld [vmem:[%s2135_s1 + $0x98] sm:$0xff]  ;;  %v1222_v45 = vpack.c.bf16 %v55_v40, %v51_v39  ;;  %1221 = vmatprep.subr.bf16.mxu1 %v1220_v38 }
  0x1c   :  { %1193 = vmatprep.subr.bf16.mxu0 %v1192_v15  ;;  %v1200_v36 = vpack.c.bf16 %v78_v25, %v74_v24  ;;  %v82_v42 = vld [vmem:[%s2135_s1 + $0x148] sm:$0xff]  ;;  %v64_v44 = vld [vmem:[%s2135_s1 + $0xb8] sm:$0xff]  ;;  %v1202_v46 = vpack.c.bf16 %v77_v27, %v73_v26  ;;  %v81_v47 = vld [vmem:[%s2135_s1 + $0x140] sm:$0xff] }
  0x1d   :  { %v86_v43 = vld [vmem:[%s2135_s1 + $0x168] sm:$0xff]  ;;  %v1224_v48 = vpack.c.bf16 %v64_v44, %v60_v41  ;;  %v59_v49 = vld [vmem:[%s2135_s1 + $0x90] sm:$0xff]  ;;  %v85_v52 = vld [vmem:[%s2135_s1 + $0x160] sm:$0xff]  ;;  %1223 = vmatpush1.bf16.msra.mxu1 %v1222_v45 }
  0x1e   :  { %v63_v50 = vld [vmem:[%s2135_s1 + $0xb0] sm:$0xff]  ;;  %v1204_v51 = vpack.c.bf16 %v86_v43, %v82_v42  ;;  %v68_v53 = vld [vmem:[%s2135_s1 + $0xd8] sm:$0xff]  ;;  %v90_v55 = vld [vmem:[%s2135_s1 + $0x188] sm:$0xff]  ;;  %v1206_v58 = vpack.c.bf16 %v85_v52, %v81_v47 }
  0x1f   :  { %1195 = vmatpush1.bf16.msra.mxu0 %v1194_v20  ;;  %v72_v54 = vld [vmem:[%s2135_s1 + $0xf8] sm:$0xff]  ;;  %v94_v56 = vld [vmem:[%s2135_s1 + $0x1a8] sm:$0xff]  ;;  %v1226_v57 = vpack.c.bf16 %v63_v50, %v59_v49  ;;  %v89_v59 = vld [vmem:[%s2135_s1 + $0x180] sm:$0xff]  ;;  %1225 = vmatprep.subr.bf16.mxu1 %v1224_v48 }
  0x20   :  { %1197 = vmatprep.subr.bf16.mxu0 %v1196_v21  ;;  %v1228_v60 = vpack.c.bf16 %v72_v54, %v68_v53  ;;  %v67_v61 = vld [vmem:[%s2135_s1 + $0xd0] sm:$0xff]  ;;  %v1208_v63 = vpack.c.bf16 %v94_v56, %v90_v55  ;;  %v93_v0 = vld [vmem:[%s2135_s1 + $0x1a0] sm:$0xff]  ;;  %v76_v1 = vld [vmem:[%s2135_s1 + $0x118] sm:$0xff] }
  0x21   :  { %v71_v62 = vld [vmem:[%s2135_s1 + $0xf0] sm:$0xff]  ;;  %v80_v2 = vld [vmem:[%s2135_s1 + $0x138] sm:$0xff]  ;;  %v98_v3 = vld [vmem:[%s2135_s1 + $0x1c8] sm:$0xff]  ;;  %1227 = vmatpush1.bf16.msra.mxu1 %v1226_v57  ;;  %v1210_v6 = vpack.c.bf16 %v93_v0, %v89_v59 }
  0x22   :  { %v102_v4 = vld [vmem:[%s2135_s1 + $0x1e8] sm:$0xff]  ;;  %v1230_v5 = vpack.c.bf16 %v71_v62, %v67_v61  ;;  %v97_v7 = vld [vmem:[%s2135_s1 + $0x1c0] sm:$0xff]  ;;  %1229 = vmatprep.subr.bf16.mxu1 %v1228_v60  ;;  %v1232_v8 = vpack.c.bf16 %v80_v2, %v76_v1  ;;  %v75_v9 = vld [vmem:[%s2135_s1 + $0x110] sm:$0xff] }
  0x23   :  { %1199 = vmatpush1.bf16.msra.mxu0 %v1198_v31  ;;  %v79_v10 = vld [vmem:[%s2135_s1 + $0x130] sm:$0xff]  ;;  %v1212_v11 = vpack.c.bf16 %v102_v4, %v98_v3  ;;  %v101_v12 = vld [vmem:[%s2135_s1 + $0x1e0] sm:$0xff]  ;;  %v84_v13 = vld [vmem:[%s2135_s1 + $0x158] sm:$0xff] }
  0x24   :  { %1201 = vmatprep.subr.bf16.mxu0 %v1200_v36  ;;  %v88_v14 = vld [vmem:[%s2135_s1 + $0x178] sm:$0xff]  ;;  %v298_v15 = vld [vmem:[#allocation2 + $0x8] sm:$0xff]  ;;  %v1234_v17 = vpack.c.bf16 %v79_v10, %v75_v9  ;;  %v1214_v18 = vpack.c.bf16 %v101_v12, %v97_v7  ;;  %v83_v20 = vld [vmem:[%s2135_s1 + $0x150] sm:$0xff] }
  0x25   :  { %v302_v16 = vld [vmem:[#allocation2 + $0x28] sm:$0xff]  ;;  %1231 = vmatpush1.bf16.msra.mxu1 %v1230_v5  ;;  %v1236_v19 = vpack.c.bf16 %v88_v14, %v84_v13  ;;  %v87_v21 = vld [vmem:[%s2135_s1 + $0x170] sm:$0xff]  ;;  %v92_v22 = vld [vmem:[%s2135_s1 + $0x198] sm:$0xff] }
  0x26   :  { %1233 = vmatprep.subr.bf16.mxu1 %v1232_v8  ;;  %v96_v23 = vld [vmem:[%s2135_s1 + $0x1b8] sm:$0xff]  ;;  %v1248_v24 = vpack.c.bf16 %v302_v16, %v298_v15  ;;  %v297_v25 = vld [vmem:[#allocation2] sm:$0xff]  ;;  %v306_v27 = vld [vmem:[#allocation2 + $0x48] sm:$0xff]  ;;  %v1238_v30 = vpack.c.bf16 %v87_v21, %v83_v20 }
  0x27   :  { %1203 = vmatpush1.bf16.msra.mxu0 %v1202_v46  ;;  %v301_v26 = vld [vmem:[#allocation2 + $0x20] sm:$0xff]  ;;  %v310_v28 = vld [vmem:[#allocation2 + $0x68] sm:$0xff]  ;;  %v1240_v31 = vpack.c.bf16 %v96_v23, %v92_v22  ;;  %v91_v32 = vld [vmem:[%s2135_s1 + $0x190] sm:$0xff] }
  0x28   :  { %1205 = vmatprep.subr.bf16.mxu0 %v1204_v51  ;;  %v1869_v29 = vld [vmem:[%s2134_s0] sm:$0x3]  ;;  %v95_v33 = vld [vmem:[%s2135_s1 + $0x1b0] sm:$0xff]  ;;  %v100_v34 = vld [vmem:[%s2135_s1 + $0x1d8] sm:$0xff]  ;;  %v1250_v35 = vpack.c.bf16 %v301_v26, %v297_v25  ;;  %v1252_v37 = vpack.c.bf16 %v310_v28, %v306_v27 }
  0x29   :  { %1235 = vmatpush1.bf16.msra.mxu1 %v1234_v17  ;;  %v104_v36 = vld [vmem:[%s2135_s1 + $0x1f8] sm:$0xff]  ;;  %v305_v38 = vld [vmem:[#allocation2 + $0x40] sm:$0xff]  ;;  %v314_v40 = vld [vmem:[#allocation2 + $0x88] sm:$0xff]  ;;  %v1242_v42 = vpack.c.bf16 %v95_v33, %v91_v32 }
  0x2a   :  { %1237 = vmatprep.subr.bf16.mxu1 %v1236_v19  ;;  %v309_v39 = vld [vmem:[#allocation2 + $0x60] sm:$0xff]  ;;  %v318_v41 = vld [vmem:[#allocation2 + $0xa8] sm:$0xff]  ;;  %v1244_v43 = vpack.c.bf16 %v104_v36, %v100_v34  ;;  %v99_v44 = vld [vmem:[%s2135_s1 + $0x1d0] sm:$0xff] }
  0x2b   :  { %1207 = vmatpush1.bf16.msra.mxu0 %v1206_v58  ;;  %v103_v45 = vld [vmem:[%s2135_s1 + $0x1f0] sm:$0xff]  ;;  %v300_v46 = vld [vmem:[#allocation2 + $0x18] sm:$0xff]  ;;  %v1254_v47 = vpack.c.bf16 %v309_v39, %v305_v38  ;;  %v1256_v49 = vpack.c.bf16 %v318_v41, %v314_v40  ;;  %v313_v50 = vld [vmem:[#allocation2 + $0x80] sm:$0xff] }
  0x2c   :  { %1209 = vmatprep.subr.bf16.mxu0 %v1208_v63  ;;  %v304_v48 = vld [vmem:[#allocation2 + $0x38] sm:$0xff]  ;;  %v317_v51 = vld [vmem:[#allocation2 + $0xa0] sm:$0xff]  ;;  %v322_v52 = vld [vmem:[#allocation2 + $0xc8] sm:$0xff]  ;;  %v1246_v54 = vpack.c.bf16 %v103_v45, %v99_v44 }
  0x2d   :  { %1239 = vmatpush1.bf16.msra.mxu1 %v1238_v30  ;;  %v326_v53 = vld [vmem:[#allocation2 + $0xe8] sm:$0xff]  ;;  %v1376_v55 = vpack.c.bf16 %v304_v48, %v300_v46  ;;  %v299_v56 = vld [vmem:[#allocation2 + $0x10] sm:$0xff]  ;;  %v308_v58 = vld [vmem:[#allocation2 + $0x58] sm:$0xff]  ;;  %v1258_v59 = vpack.c.bf16 %v317_v51, %v313_v50 }
  0x2e   :  { %1241 = vmatprep.subr.bf16.mxu1 %v1240_v31  ;;  %v303_v57 = vld [vmem:[#allocation2 + $0x30] sm:$0xff]  ;;  %v312_v60 = vld [vmem:[#allocation2 + $0x78] sm:$0xff]  ;;  %v1260_v61 = vpack.c.bf16 %v326_v53, %v322_v52  ;;  %v321_v62 = vld [vmem:[#allocation2 + $0xc0] sm:$0xff] }
  0x2f   :  { %1211 = vmatpush1.bf16.msra.mxu0 %v1210_v6  ;;  %v325_v63 = vld [vmem:[#allocation2 + $0xe0] sm:$0xff]  ;;  %v330_v0 = vld [vmem:[#allocation2 + $0x108] sm:$0xff]  ;;  %v1378_v2 = vpack.c.bf16 %v303_v57, %v299_v56  ;;  %v1380_v3 = vpack.c.bf16 %v312_v60, %v308_v58  ;;  %v307_v4 = vld [vmem:[#allocation2 + $0x50] sm:$0xff] }
  0x30   :  { %1213 = vmatprep.subr.bf16.mxu0 %v1212_v11  ;;  %v334_v1 = vld [vmem:[#allocation2 + $0x128] sm:$0xff]  ;;  %v311_v5 = vld [vmem:[#allocation2 + $0x70] sm:$0xff]  ;;  %v316_v6 = vld [vmem:[#allocation2 + $0x98] sm:$0xff]  ;;  %v1262_v7 = vpack.c.bf16 %v325_v63, %v321_v62 }
  0x31   :  { %1243 = vmatpush1.bf16.msra.mxu1 %v1242_v42  ;;  %v320_v8 = vld [vmem:[#allocation2 + $0xb8] sm:$0xff]  ;;  %v1264_v9 = vpack.c.bf16 %v334_v1, %v330_v0  ;;  %v329_v10 = vld [vmem:[#allocation2 + $0x100] sm:$0xff]  ;;  %v338_v12 = vld [vmem:[#allocation2 + $0x148] sm:$0xff]  ;;  %v1382_v14 = vpack.c.bf16 %v311_v5, %v307_v4 }
  0x32   :  { %1245 = vmatprep.subr.bf16.mxu1 %v1244_v43  ;;  %v333_v11 = vld [vmem:[#allocation2 + $0x120] sm:$0xff]  ;;  %v342_v13 = vld [vmem:[#allocation2 + $0x168] sm:$0xff]  ;;  %v1384_v15 = vpack.c.bf16 %v320_v8, %v316_v6  ;;  %v315_v16 = vld [vmem:[#allocation2 + $0x90] sm:$0xff] }
  0x33   :  { %1215 = vmatpush1.bf16.msra.mxu0 %v1214_v18  ;;  %v319_v17 = vld [vmem:[#allocation2 + $0xb0] sm:$0xff]  ;;  %v324_v18 = vld [vmem:[#allocation2 + $0xd8] sm:$0xff]  ;;  %v1266_v19 = vpack.c.bf16 %v333_v11, %v329_v10  ;;  %v1268_v21 = vpack.c.bf16 %v342_v13, %v338_v12  ;;  %v337_v22 = vld [vmem:[#allocation2 + $0x140] sm:$0xff] }
  0x34   :  { %1249 = vmatprep.subr.bf16.mxu0 %v1248_v24  ;;  %v328_v20 = vld [vmem:[#allocation2 + $0xf8] sm:$0xff]  ;;  %v341_v23 = vld [vmem:[#allocation2 + $0x160] sm:$0xff]  ;;  %v346_v24 = vld [vmem:[#allocation2 + $0x188] sm:$0xff]  ;;  %v1386_v26 = vpack.c.bf16 %v319_v17, %v315_v16 }
  0x35   :  { %1247 = vmatpush1.bf16.msra.mxu1 %v1246_v54  ;;  %v350_v25 = vld [vmem:[#allocation2 + $0x1a8] sm:$0xff]  ;;  %v1388_v27 = vpack.c.bf16 %v328_v20, %v324_v18  ;;  %v323_v28 = vld [vmem:[#allocation2 + $0xd0] sm:$0xff]  ;;  %v332_v30 = vld [vmem:[#allocation2 + $0x118] sm:$0xff]  ;;  %v1270_v31 = vpack.c.bf16 %v341_v23, %v337_v22 }
  0x36   :  { %192 = vmatmul.mubr.f32.vlgmr.msra.gmra.mrb[0].mxu0 %v1869_v29  ;;  %1377 = vmatprep.subr.bf16.mxu1 %v1376_v55  ;;  %v336_v32 = vld [vmem:[#allocation2 + $0x138] sm:$0xff]  ;;  %v1272_v33 = vpack.c.bf16 %v350_v25, %v346_v24  ;;  %v345_v34 = vld [vmem:[#allocation2 + $0x180] sm:$0xff]  ;;  %v354_v36 = vld [vmem:[#allocation2 + $0x1c8] sm:$0xff] }
  0x37   :  { %1251 = vmatpush1.bf16.msra.mxu0 %v1250_v35  ;;  %v349_v35 = vld [vmem:[#allocation2 + $0x1a0] sm:$0xff]  ;;  %v1392_v39 = vpack.c.bf16 %v336_v32, %v332_v30  ;;  %v331_v40 = vld [vmem:[#allocation2 + $0x110] sm:$0xff]  ;;  %v340_v42 = vld [vmem:[#allocation2 + $0x158] sm:$0xff] }
  0x38   :  { %1253 = vmatprep.subr.bf16.mxu0 %v1252_v37  ;;  %263 = vmatmul.mubr.f32.vlgmr.msra.gmra.mrb[0].mxu1 %v1869_v29  ;;  %v327_v29 = vld [vmem:[#allocation2 + $0xf0] sm:$0xff]  ;;  %v358_v37 = vld [vmem:[#allocation2 + $0x1e8] sm:$0xff]  ;;  %v1274_v43 = vpack.c.bf16 %v349_v35, %v345_v34  ;;  %v344_v44 = vld [vmem:[#allocation2 + $0x178] sm:$0xff] }
  0x39   :  { %1379 = vmatpush1.bf16.msra.mxu1 %v1378_v2  ;;  %v1390_v38 = vpack.c.bf16 %v327_v29, %v323_v28  ;;  %v335_v41 = vld [vmem:[#allocation2 + $0x130] sm:$0xff]  ;;  %v1276_v45 = vpack.c.bf16 %v358_v37, %v354_v36  ;;  %v353_v46 = vld [vmem:[#allocation2 + $0x1c0] sm:$0xff]  ;;  %v348_v53 = vld [vmem:[#allocation2 + $0x198] sm:$0xff] }
  0x3a   :  { %1381 = vmatprep.subr.bf16.mxu1 %v1380_v3  ;;  %v1394_v48 = vpack.c.bf16 %v335_v41, %v331_v40  ;;  %v339_v50 = vld [vmem:[#allocation2 + $0x150] sm:$0xff]  ;;  %v352_v54 = vld [vmem:[#allocation2 + $0x1b8] sm:$0xff]  ;;  %v362_v2 = vld [vmem:[#allocation2 + $0x208] sm:$0xff] }
  0x3b   :  { %1255 = vmatpush1.bf16.msra.mxu0 %v1254_v47  ;;  %v357_v47 = vld [vmem:[#allocation2 + $0x1e0] sm:$0xff]  ;;  %v343_v51 = vld [vmem:[#allocation2 + $0x170] sm:$0xff]  ;;  %v1400_v56 = vpack.c.bf16 %v352_v54, %v348_v53  ;;  %v360_v60 = vld [vmem:[#allocation2 + $0x1f8] sm:$0xff] }
  0x3c   :  { %1257 = vmatprep.subr.bf16.mxu0 %v1256_v49  ;;  %v1396_v49 = vpack.c.bf16 %v344_v44, %v340_v42  ;;  %v1278_v52 = vpack.c.bf16 %v357_v47, %v353_v46  ;;  %v1398_v55 = vpack.c.bf16 %v343_v51, %v339_v50  ;;  %v347_v57 = vld [vmem:[#allocation2 + $0x190] sm:$0xff]  ;;  %v366_v3 = vld [vmem:[#allocation2 + $0x228] sm:$0xff]  ;;  %v364_v4 = vld [vmem:[#allocation2 + $0x218] sm:$0xff] }
  0x3d   :  { %1383 = vmatpush1.bf16.msra.mxu1 %v1382_v14  ;;  %v351_v58 = vld [vmem:[#allocation2 + $0x1b0] sm:$0xff]  ;;  %v1280_v5 = vpack.c.bf16 %v366_v3, %v362_v2  ;;  %v368_v6 = vld [vmem:[#allocation2 + $0x238] sm:$0xff]  ;;  %v365_v8 = vld [vmem:[#allocation2 + $0x220] sm:$0xff] }
  0x3e   :  { %1385 = vmatprep.subr.bf16.mxu1 %v1384_v15  ;;  %v355_v63 = vld [vmem:[#allocation2 + $0x1d0] sm:$0xff]  ;;  %v370_v14 = vld [vmem:[#allocation2 + $0x248] sm:$0xff]  ;;  %v372_v16 = vld [vmem:[#allocation2 + $0x258] sm:$0xff] }
  0x3f   :  { %1259 = vmatpush1.bf16.msra.mxu0 %v1258_v59  ;;  %v356_v59 = vld [vmem:[#allocation2 + $0x1d8] sm:$0xff]  ;;  %v359_v0 = vld [vmem:[#allocation2 + $0x1f0] sm:$0xff]  ;;  %v374_v15 = vld [vmem:[#allocation2 + $0x268] sm:$0xff] }
  0x40   :  { %1261 = vmatprep.subr.bf16.mxu0 %v1260_v61  ;;  %v1402_v61 = vpack.c.bf16 %v351_v58, %v347_v57  ;;  %v1404_v62 = vpack.c.bf16 %v360_v60, %v356_v59  ;;  %v1406_v1 = vpack.c.bf16 %v359_v0, %v355_v63  ;;  %v363_v11 = vld [vmem:[#allocation2 + $0x210] sm:$0xff]  ;;  %v1284_v17 = vpack.c.bf16 %v374_v15, %v370_v14  ;;  %v376_v18 = vld [vmem:[#allocation2 + $0x278] sm:$0xff]  ;;  %v373_v20 = vld [vmem:[#allocation2 + $0x260] sm:$0xff] }
  0x41   :  { %1387 = vmatpush1.bf16.msra.mxu1 %v1386_v26  ;;  %v367_v12 = vld [vmem:[#allocation2 + $0x230] sm:$0xff]  ;;  %v378_v26 = vld [vmem:[#allocation2 + $0x288] sm:$0xff]  ;;  %v380_v28 = vld [vmem:[#allocation2 + $0x298] sm:$0xff] }
  0x42   :  { %1389 = vmatprep.subr.bf16.mxu1 %v1388_v27  ;;  %v1410_v13 = vpack.c.bf16 %v367_v12, %v363_v11  ;;  %v371_v23 = vld [vmem:[#allocation2 + $0x250] sm:$0xff]  ;;  %v382_v27 = vld [vmem:[#allocation2 + $0x2a8] sm:$0xff]  ;;  %v384_v30 = vld [vmem:[#allocation2 + $0x2b8] sm:$0xff] }
  0x43   :  { %1263 = vmatpush1.bf16.msra.mxu0 %v1262_v7  ;;  %v361_v7 = vld [vmem:[#allocation2 + $0x200] sm:$0xff]  ;;  %v375_v24 = vld [vmem:[#allocation2 + $0x270] sm:$0xff]  ;;  %v1288_v29 = vpack.c.bf16 %v382_v27, %v378_v26  ;;  %v388_v40 = vld [vmem:[#allocation2 + $0x2d8] sm:$0xff] }
  0x44   :  { %1265 = vmatprep.subr.bf16.mxu0 %v1264_v9  ;;  %v1408_v9 = vpack.c.bf16 %v368_v6, %v364_v4  ;;  %v1282_v10 = vpack.c.bf16 %v365_v8, %v361_v7  ;;  %v1414_v25 = vpack.c.bf16 %v375_v24, %v371_v23  ;;  %v381_v32 = vld [vmem:[#allocation2 + $0x2a0] sm:$0xff]  ;;  %v379_v35 = vld [vmem:[#allocation2 + $0x290] sm:$0xff]  ;;  %v392_v42 = vld [vmem:[#allocation2 + $0x2f8] sm:$0xff] }
  0x45   :  { %1391 = vmatpush1.bf16.msra.mxu1 %v1390_v38  ;;  %v383_v36 = vld [vmem:[#allocation2 + $0x2b0] sm:$0xff]  ;;  %v386_v38 = vld [vmem:[#allocation2 + $0x2c8] sm:$0xff]  ;;  %v389_v44 = vld [vmem:[#allocation2 + $0x2e0] sm:$0xff] }
  0x46   :  { %1393 = vmatprep.subr.bf16.mxu1 %v1392_v39  ;;  %v1418_v37 = vpack.c.bf16 %v383_v36, %v379_v35  ;;  %v390_v39 = vld [vmem:[#allocation2 + $0x2e8] sm:$0xff]  ;;  %v387_v47 = vld [vmem:[#allocation2 + $0x2d0] sm:$0xff]  ;;  %v400_v54 = vld [vmem:[#allocation2 + $0x338] sm:$0xff] }
  0x47   :  { %1267 = vmatpush1.bf16.msra.mxu0 %v1266_v19  ;;  %v369_v19 = vld [vmem:[#allocation2 + $0x240] sm:$0xff]  ;;  %v1292_v41 = vpack.c.bf16 %v390_v39, %v386_v38  ;;  %v394_v50 = vld [vmem:[#allocation2 + $0x308] sm:$0xff]  ;;  %v395_v59 = vld [vmem:[#allocation2 + $0x310] sm:$0xff] }
  0x48   :  { %1269 = vmatprep.subr.bf16.mxu0 %v1268_v21  ;;  %v1412_v21 = vpack.c.bf16 %v376_v18, %v372_v16  ;;  %v1286_v22 = vpack.c.bf16 %v373_v20, %v369_v19  ;;  %v398_v51 = vld [vmem:[#allocation2 + $0x328] sm:$0xff]  ;;  %v399_v60 = vld [vmem:[#allocation2 + $0x330] sm:$0xff]  ;;  %v404_v0 = vld [vmem:[#allocation2 + $0x358] sm:$0xff] }
  0x49   :  { %1395 = vmatpush1.bf16.msra.mxu1 %v1394_v48  ;;  %v391_v48 = vld [vmem:[#allocation2 + $0x2f0] sm:$0xff]  ;;  %v1296_v53 = vpack.c.bf16 %v398_v51, %v394_v50  ;;  %v406_v63 = vld [vmem:[#allocation2 + $0x368] sm:$0xff]  ;;  %v408_v2 = vld [vmem:[#allocation2 + $0x378] sm:$0xff] }
  0x4a   :  { %1397 = vmatprep.subr.bf16.mxu1 %v1396_v49  ;;  %v1422_v49 = vpack.c.bf16 %v391_v48, %v387_v47  ;;  %v401_v3 = vld [vmem:[#allocation2 + $0x340] sm:$0xff]  ;;  %v403_v7 = vld [vmem:[#allocation2 + $0x350] sm:$0xff]  ;;  %v414_v11 = vld [vmem:[#allocation2 + $0x3a8] sm:$0xff] }
  0x4b   :  { %1271 = vmatpush1.bf16.msra.mxu0 %v1270_v31  ;;  %v377_v31 = vld [vmem:[#allocation2 + $0x280] sm:$0xff]  ;;  %v407_v8 = vld [vmem:[#allocation2 + $0x370] sm:$0xff]  ;;  %v412_v12 = vld [vmem:[#allocation2 + $0x398] sm:$0xff] }
  0x4c   :  { %1273 = vmatprep.subr.bf16.mxu0 %v1272_v33  ;;  %v1416_v33 = vpack.c.bf16 %v384_v30, %v380_v28  ;;  %v1290_v34 = vpack.c.bf16 %v381_v32, %v377_v31  ;;  %v405_v4 = vld [vmem:[#allocation2 + $0x360] sm:$0xff]  ;;  %v416_v14 = vld [vmem:[#allocation2 + $0x3b8] sm:$0xff]  ;;  %v411_v19 = vld [vmem:[#allocation2 + $0x390] sm:$0xff] }
  0x4d   :  { %1399 = vmatpush1.bf16.msra.mxu1 %v1398_v55  ;;  %v393_v55 = vld [vmem:[#allocation2 + $0x300] sm:$0xff]  ;;  %v1302_v6 = vpack.c.bf16 %v405_v4, %v401_v3  ;;  %v415_v20 = vld [vmem:[#allocation2 + $0x3b0] sm:$0xff]  ;;  %v422_v23 = vld [vmem:[#allocation2 + $0x3e8] sm:$0xff] }
  0x4e   :  { %1401 = vmatprep.subr.bf16.mxu1 %v1400_v56  ;;  %v397_v56 = vld [vmem:[#allocation2 + $0x320] sm:$0xff]  ;;  %v420_v24 = vld [vmem:[#allocation2 + $0x3d8] sm:$0xff]  ;;  %v419_v31 = vld [vmem:[#allocation2 + $0x3d0] sm:$0xff] }
  0x4f   :  { %1275 = vmatpush1.bf16.msra.mxu0 %v1274_v43  ;;  %v385_v43 = vld [vmem:[#allocation2 + $0x2c0] sm:$0xff]  ;;  %v1298_v58 = vpack.c.bf16 %v397_v56, %v393_v55  ;;  %v424_v26 = vld [vmem:[#allocation2 + $0x3f8] sm:$0xff]  ;;  %v423_v32 = vld [vmem:[#allocation2 + $0x3f0] sm:$0xff] }
  0x50   :  { %1277 = vmatprep.subr.bf16.mxu0 %v1276_v45  ;;  %v1420_v45 = vpack.c.bf16 %v392_v42, %v388_v40  ;;  %v1294_v46 = vpack.c.bf16 %v389_v44, %v385_v43  ;;  %v409_v15 = vld [vmem:[#allocation2 + $0x380] sm:$0xff]  ;;  %v430_v35 = vld [vmem:[#allocation2 + $0x428] sm:$0xff]  ;;  %v428_v36 = vld [vmem:[#allocation2 + $0x418] sm:$0xff]  ;;  %v107_v40 = vlaneseq }
  0x51   :  { %1403 = vmatpush1.bf16.msra.mxu1 %v1402_v61  ;;  %v1426_v61 = vpack.c.bf16 %v399_v60, %v395_v59  ;;  %v413_v16 = vld [vmem:[#allocation2 + $0x3a0] sm:$0xff]  ;;  %v432_v38 = vld [vmem:[#allocation2 + $0x438] sm:$0xff]  ;;  %v431_v3 = vld [vmem:[#allocation2 + $0x430] sm:$0xff] }
  0x52   :  { %1405 = vmatprep.subr.bf16.mxu1 %v1404_v62  ;;  %v402_v62 = vld [vmem:[#allocation2 + $0x348] sm:$0xff]  ;;  %v1306_v18 = vpack.c.bf16 %v413_v16, %v409_v15  ;;  %v417_v27 = vld [vmem:[#allocation2 + $0x3c0] sm:$0xff]  ;;  %v1440_v39 = vpack.c.bf16 %v432_v38, %v428_v36  ;;  %v456_v36 = vld [vmem:[#allocation2 + $0x4f8] sm:$0xff] }
  0x53   :  { %1279 = vmatpush1.bf16.msra.mxu0 %v1278_v52  ;;  %v396_v52 = vld [vmem:[#allocation2 + $0x318] sm:$0xff]  ;;  %v421_v28 = vld [vmem:[#allocation2 + $0x3e0] sm:$0xff]  ;;  %v434_v4 = vld [vmem:[#allocation2 + $0x448] sm:$0xff] }
  0x54   :  { %1281 = vmatprep.subr.bf16.mxu0 %v1280_v5  ;;  %v1424_v57 = vpack.c.bf16 %v400_v54, %v396_v52  ;;  %v1428_v5 = vpack.c.bf16 %v408_v2, %v404_v0  ;;  %v1310_v30 = vpack.c.bf16 %v421_v28, %v417_v27  ;;  %v1897_v43 = vld [vmem:[%s2136_s2] sm:$0xf]  ;;  %v427_v2 = vld [vmem:[#allocation2 + $0x410] sm:$0xff] }
  0x55   :  { %1407 = vmatpush1.bf16.msra.mxu1 %v1406_v1  ;;  %v1300_v1 = vpack.c.bf16 %v406_v63, %v402_v62  ;;  %v425_v63 = vld [vmem:[#allocation2 + $0x400] sm:$0xff] }
  0x56   :  { %1409 = vmatprep.subr.bf16.mxu1 %v1408_v9  ;;  %v1430_v9 = vpack.c.bf16 %v407_v8, %v403_v7  ;;  %v429_v0 = vld [vmem:[#allocation2 + $0x420] sm:$0xff]  ;;  %v436_v7 = vld [vmem:[#allocation2 + $0x458] sm:$0xff] }
  0x57   :  { %1283 = vmatpush1.bf16.msra.mxu0 %v1282_v10  ;;  %v410_v10 = vld [vmem:[#allocation2 + $0x388] sm:$0xff]  ;;  %v440_v8 = vld [vmem:[#allocation2 + $0x478] sm:$0xff]  ;;  %v437_v15 = vld [vmem:[#allocation2 + $0x460] sm:$0xff] }
  0x58   :  { %1285 = vmatprep.subr.bf16.mxu0 %v1284_v17  ;;  %v1432_v17 = vpack.c.bf16 %v416_v14, %v412_v12  ;;  %v1314_v12 = vpack.c.bf16 %v429_v0, %v425_v63  ;;  %v433_v14 = vld [vmem:[#allocation2 + $0x440] sm:$0xff]  ;;  %v459_v0 = vld [vmem:[#allocation2 + $0x510] sm:$0xff] }
  0x59   :  { %1411 = vmatpush1.bf16.msra.mxu1 %v1410_v13  ;;  %v1304_v13 = vpack.c.bf16 %v414_v11, %v410_v10  ;;  %v441_v27 = vld [vmem:[#allocation2 + $0x480] sm:$0xff] }
  0x5a   :  { %1413 = vmatprep.subr.bf16.mxu1 %v1412_v21  ;;  %v1434_v21 = vpack.c.bf16 %v415_v20, %v411_v19  ;;  %v435_v19 = vld [vmem:[#allocation2 + $0x450] sm:$0xff]  ;;  %v445_v28 = vld [vmem:[#allocation2 + $0x4a0] sm:$0xff] }
  0x5b   :  { %1287 = vmatpush1.bf16.msra.mxu0 %v1286_v22  ;;  %v418_v22 = vld [vmem:[#allocation2 + $0x3c8] sm:$0xff]  ;;  %v439_v20 = vld [vmem:[#allocation2 + $0x470] sm:$0xff] }
  0x5c   :  { %1289 = vmatprep.subr.bf16.mxu0 %v1288_v29  ;;  %v1436_v29 = vpack.c.bf16 %v424_v26, %v420_v24  ;;  %v448_v24 = vld [vmem:[#allocation2 + $0x4b8] sm:$0xff]  ;;  %v1446_v26 = vpack.c.bf16 %v439_v20, %v435_v19  ;;  %v473_v20 = vld [vmem:[#allocation2 + $0x580] sm:$0xff] }
  0x5d   :  { %1415 = vmatpush1.bf16.msra.mxu1 %v1414_v25  ;;  %v1308_v25 = vpack.c.bf16 %v422_v23, %v418_v22  ;;  %v446_v22 = vld [vmem:[#allocation2 + $0x4a8] sm:$0xff]  ;;  %v444_v23 = vld [vmem:[#allocation2 + $0x498] sm:$0xff] }
  0x5e   :  { %1417 = vmatprep.subr.bf16.mxu1 %v1416_v33  ;;  %v1438_v33 = vpack.c.bf16 %v423_v32, %v419_v31  ;;  %v443_v31 = vld [vmem:[#allocation2 + $0x490] sm:$0xff] }
  0x5f   :  { %1291 = vmatpush1.bf16.msra.mxu0 %v1290_v34  ;;  %v426_v34 = vld [vmem:[#allocation2 + $0x408] sm:$0xff]  ;;  %v447_v32 = vld [vmem:[#allocation2 + $0x4b0] sm:$0xff] }
  0x60   :  { %1293 = vmatprep.subr.bf16.mxu0 %v1292_v41  ;;  %v1891_v41 = vshrl.u32 %v107_v40, 7  ;;  %v1450_v38 = vpack.c.bf16 %v447_v32, %v443_v31  ;;  %v453_v40 = vld [vmem:[#allocation2 + $0x4e0] sm:$0xff] }
  0x61   :  { %1419 = vmatpush1.bf16.msra.mxu1 %v1418_v37  ;;  %v1312_v37 = vpack.c.bf16 %v430_v35, %v426_v34  ;;  %v454_v34 = vld [vmem:[#allocation2 + $0x4e8] sm:$0xff]  ;;  %v452_v35 = vld [vmem:[#allocation2 + $0x4d8] sm:$0xff] }
  0x62   :  { %1421 = vmatprep.subr.bf16.mxu1 %v1420_v45  ;;  %v109_v42 = vsub.s32 0, %v1891_v41  ;;  %v113_v44 = vsub.s32 1, %v1891_v41 }
  0x63   :  { %1295 = vmatpush1.bf16.msra.mxu0 %v1294_v46 }
  0x64   :  { %1297 = vmatprep.subr.bf16.mxu0 %v1296_v53  ;;  %v110_v45 = vrot.slane %v1897_v43, %v109_v42  ;;  %v114_v46 = vrot.slane %v1897_v43, %v113_v44  ;;  %v121_v53 = vsub.s32 3, %v1891_v41 }
  0x65   :  { %1423 = vmatpush1.bf16.msra.mxu1 %v1422_v49 }
  0x66   :  { %1425 = vmatprep.subr.bf16.mxu1 %v1424_v57  ;;  %v122_v54 = vrot.slane %v1897_v43, %v121_v53 }
  0x67   :  { %1299 = vmatpush1.bf16.msra.mxu0 %v1298_v58 }
  0x68   :  { %1301 = vmatprep.subr.bf16.mxu0 %v1300_v1 }
  0x69   :  { %1427 = vmatpush1.bf16.msra.mxu1 %v1426_v61 }
  0x6a   :  { %1429 = vmatprep.subr.bf16.mxu1 %v1428_v5 }
  0x6b   :  { %1303 = vmatpush1.bf16.msra.mxu0 %v1302_v6  ;;  %v438_v6 = vld [vmem:[#allocation2 + $0x468] sm:$0xff] }
  0x6c   :  { %1305 = vmatprep.subr.bf16.mxu0 %v1304_v13  ;;  %v1442_v13 = vpack.c.bf16 %v431_v3, %v427_v2  ;;  %v466_v2 = vld [vmem:[#allocation2 + $0x548] sm:$0xff] }
  0x6d   :  { %1431 = vmatpush1.bf16.msra.mxu1 %v1430_v9  ;;  %v470_v3 = vld [vmem:[#allocation2 + $0x568] sm:$0xff] }
  0x6e   :  { %1433 = vmatprep.subr.bf16.mxu1 %v1432_v17  ;;  %v1316_v17 = vpack.c.bf16 %v438_v6, %v434_v4  ;;  %v468_v4 = vld [vmem:[#allocation2 + $0x558] sm:$0xff] }
  0x6f   :  { %1307 = vmatpush1.bf16.msra.mxu0 %v1306_v18  ;;  %v1444_v18 = vpack.c.bf16 %v440_v8, %v436_v7  ;;  %v465_v7 = vld [vmem:[#allocation2 + $0x540] sm:$0xff] }
  0x70   :  { %1309 = vmatprep.subr.bf16.mxu0 %v1308_v25  ;;  %v1318_v25 = vpack.c.bf16 %v437_v15, %v433_v14  ;;  %v469_v8 = vld [vmem:[#allocation2 + $0x560] sm:$0xff]  ;;  %v478_v14 = vld [vmem:[#allocation2 + $0x5a8] sm:$0xff]  ;;  %v476_v15 = vld [vmem:[#allocation2 + $0x598] sm:$0xff] }
  0x71   :  { %1435 = vmatpush1.bf16.msra.mxu1 %v1434_v21  ;;  %v442_v21 = vld [vmem:[#allocation2 + $0x488] sm:$0xff] }
  0x72   :  { %1437 = vmatprep.subr.bf16.mxu1 %v1436_v29  ;;  %v1320_v29 = vpack.c.bf16 %v446_v22, %v442_v21  ;;  %v477_v21 = vld [vmem:[#allocation2 + $0x5a0] sm:$0xff] }
  0x73   :  { %1311 = vmatpush1.bf16.msra.mxu0 %v1310_v30  ;;  %v1448_v30 = vpack.c.bf16 %v448_v24, %v444_v23  ;;  %v475_v24 = vld [vmem:[#allocation2 + $0x590] sm:$0xff]  ;;  %v1338_v31 = vpack.c.bf16 %v477_v21, %v473_v20  ;;  %v516_v20 = vld [vmem:[#allocation2 + $0x6d8] sm:$0xff] }
  0x74   :  { %1313 = vmatprep.subr.bf16.mxu0 %v1312_v37  ;;  %v1322_v37 = vpack.c.bf16 %v445_v28, %v441_v27  ;;  %v486_v27 = vld [vmem:[#allocation2 + $0x5e8] sm:$0xff]  ;;  %v484_v28 = vld [vmem:[#allocation2 + $0x5d8] sm:$0xff] }
  0x75   :  { %1439 = vmatpush1.bf16.msra.mxu1 %v1438_v33  ;;  %v450_v33 = vld [vmem:[#allocation2 + $0x4c8] sm:$0xff]  ;;  %v520_v21 = vld [vmem:[#allocation2 + $0x6f8] sm:$0xff] }
  0x76   :  { %1441 = vmatprep.subr.bf16.mxu1 %v1440_v39  ;;  %v449_v39 = vld [vmem:[#allocation2 + $0x4c0] sm:$0xff] }
 0x109   :  { %v193_v47 = vpop.f32.mrb[0].mxu0 }
 0x10a   :  { %v194_v48 = vadd.f32 %v193_v47, %v110_v45  ;;  %v195_v49 = vpop.f32.mrb[1].mxu0  ;;  %v1324_v45 = vpack.c.bf16 %v454_v34, %v450_v33  ;;  %v451_v47 = vld [vmem:[#allocation2 + $0x4d0] sm:$0xff]  ;;  %v481_v33 = vld [vmem:[#allocation2 + $0x5c0] sm:$0xff] }
 0x10b   :  { %v196_v50 = vadd.f32 %v195_v49, %v114_v46  ;;  %v1910_v55 = vpop.f32.mrb[0].mxu1  ;;  %v1452_v46 = vpack.c.bf16 %v456_v36, %v452_v35  ;;  %v458_v49 = vld [vmem:[#allocation2 + $0x508] sm:$0xff]  ;;  %v485_v34 = vld [vmem:[#allocation2 + $0x5e0] sm:$0xff] }
 0x10c   :  { %v1105_v51 = vmul.f32 -1.442695, %v194_v48  ;;  %v266_v56 = vpop.f32.mrb[1].mxu1 }
 0x10d   :  { %v1106_v52 = vmul.f32 -1.442695, %v196_v50  ;;  %v1912_v57 = vadd.f32 %v266_v56, %v122_v54  ;;  %v464_v54 = vld [vmem:[#allocation2 + $0x538] sm:$0xff] }
 0x10e   :  { %1580 = vpow2.f32 %v1105_v51  ;;  %v462_v51 = vld [vmem:[#allocation2 + $0x528] sm:$0xff] }
 0x10f   :  { %1582 = vpow2.f32 %v1106_v52  ;;  %v1108_v59 = vmul.f32 -1.442695, %v1912_v57  ;;  %v460_v52 = vld [vmem:[#allocation2 + $0x518] sm:$0xff] }
 0x110   :  { %v1456_v63 = vpack.c.bf16 %v464_v54, %v460_v52  ;;  %v491_v54 = vld [vmem:[#allocation2 + $0x610] sm:$0xff] }
 0x111   :  { %1584 = vpow2.f32 %v1108_v59 }
 0x118   :  { %v1581_v58 = vpop.eup %1580 }
 0x119   :  { %v1583_v60 = vpop.eup %1582  ;;  %v281_v61 = vadd.f32 1.0, %v1581_v58  ;;  %v1326_v58 = vpack.c.bf16 %v453_v40, %v449_v39  ;;  %v490_v39 = vld [vmem:[#allocation2 + $0x608] sm:$0xff] }
 0x11a   :  { %v282_v62 = vadd.f32 1.0, %v1583_v60  ;;  %v457_v60 = vld [vmem:[#allocation2 + $0x500] sm:$0xff]  ;;  %v494_v40 = vld [vmem:[#allocation2 + $0x628] sm:$0xff] }
 0x11b   :  { %1586 = vrcp.f32 %v281_v61  ;;  %v1585_v1 = vpop.eup %1584  ;;  %v461_v61 = vld [vmem:[#allocation2 + $0x520] sm:$0xff] }
 0x11c   :  { %1588 = vrcp.f32 %v282_v62  ;;  %v284_v9 = vadd.f32 1.0, %v1585_v1  ;;  %v1328_v62 = vpack.c.bf16 %v462_v51, %v458_v49  ;;  %v463_v1 = vld [vmem:[#allocation2 + $0x530] sm:$0xff]  ;;  %v489_v49 = vld [vmem:[#allocation2 + $0x600] sm:$0xff]  ;;  %v1344_v51 = vpack.c.bf16 %v494_v40, %v490_v39 }
 0x11d   :  { %v1458_v6 = vpack.c.bf16 %v463_v1, %v459_v0  ;;  %v497_v0 = vld [vmem:[#allocation2 + $0x640] sm:$0xff] }
 0x11e   :  { %1590 = vrcp.f32 %v284_v9  ;;  %v1332_v9 = vpack.c.bf16 %v470_v3, %v466_v2  ;;  %v501_v1 = vld [vmem:[#allocation2 + $0x660] sm:$0xff] }
 0x125   :  { %v1587_v5 = vpop.eup %1586 }
 0x126   :  { %v1589_v10 = vpop.eup %1588  ;;  %v293_v16 = vmul.f32 %v1587_v5, %v194_v48  ;;  %v455_v48 = vld [vmem:[#allocation2 + $0x4f0] sm:$0xff]  ;;  %v472_v5 = vld [vmem:[#allocation2 + $0x578] sm:$0xff] }
 0x127   :  { %v294_v11 = vmul.f32 %v1589_v10, %v196_v50  ;;  %v1454_v59 = vpack.c.bf16 %v455_v48, %v451_v47  ;;  %v1460_v10 = vpack.c.bf16 %v472_v5, %v468_v4  ;;  %v499_v4 = vld [vmem:[#allocation2 + $0x650] sm:$0xff] }
 0x128   :  { %v1591_v50 = vpop.eup %1590  ;;  %v503_v5 = vld [vmem:[#allocation2 + $0x670] sm:$0xff] }
 0x129   :  { %639 = vmatprep.mubr.f32.mxu0 %v294_v11  ;;  %781 = vmatprep.mubr.f32.mxu1 %v294_v11  ;;  %v296_v56 = vmul.f32 %v1591_v50, %v1912_v57  ;;  %v1330_v57 = vpack.c.bf16 %v461_v61, %v457_v60  ;;  %v467_v11 = vld [vmem:[#allocation2 + $0x550] sm:$0xff]  ;;  %v493_v50 = vld [vmem:[#allocation2 + $0x620] sm:$0xff]  ;;  %v500_v60 = vld [vmem:[#allocation2 + $0x658] sm:$0xff] }
 0x12a   :  { %640 = vmatmul.mubr.f32.vlgmr.msra.gmra.mrb[2].mxu0 %v293_v16  ;;  %782 = vmatmul.mubr.f32.vlgmr.msra.gmra.mrb[2].mxu1 %v293_v16  ;;  %v480_v16 = vld [vmem:[#allocation2 + $0x5b8] sm:$0xff] }
 0x12b   :  { %1315 = vmatpush1.bf16.msra.mxu0 %v1314_v12  ;;  %1443 = vmatpush1.bf16.msra.mxu1 %v1442_v13  ;;  %v471_v12 = vld [vmem:[#allocation2 + $0x570] sm:$0xff]  ;;  %v474_v13 = vld [vmem:[#allocation2 + $0x588] sm:$0xff]  ;;  %v1464_v23 = vpack.c.bf16 %v480_v16, %v476_v15  ;;  %v504_v61 = vld [vmem:[#allocation2 + $0x678] sm:$0xff] }
 0x12c   :  { %1317 = vmatprep.subr.bf16.mxu0 %v1316_v17  ;;  %1445 = vmatprep.subr.bf16.mxu1 %v1444_v18  ;;  %v117_v17 = vsub.s32 2, %v1891_v41  ;;  %v1334_v18 = vpack.c.bf16 %v469_v8, %v465_v7  ;;  %v1462_v19 = vpack.c.bf16 %v471_v12, %v467_v11  ;;  %v1336_v22 = vpack.c.bf16 %v478_v14, %v474_v13  ;;  %v508_v7 = vld [vmem:[#allocation2 + $0x698] sm:$0xff]  ;;  %v505_v11 = vld [vmem:[#allocation2 + $0x680] sm:$0xff]  ;;  %v507_v15 = vld [vmem:[#allocation2 + $0x690] sm:$0xff] }
 0x12d   :  { %710 = vmatprep.mubr.f32.mxu0 %v296_v56  ;;  %852 = vmatprep.mubr.f32.mxu1 %v296_v56  ;;  %v495_v56 = vld [vmem:[#allocation2 + $0x630] sm:$0xff]  ;;  %v1476_v3 = vpack.c.bf16 %v504_v61, %v500_v60  ;;  %v512_v8 = vld [vmem:[#allocation2 + $0x6b8] sm:$0xff]  ;;  %v509_v12 = vld [vmem:[#allocation2 + $0x6a0] sm:$0xff] }
 0x12e   :  { %v1480_v14 = vpack.c.bf16 %v512_v8, %v508_v7  ;;  %v511_v16 = vld [vmem:[#allocation2 + $0x6b0] sm:$0xff] }
 0x12f   :  { %1319 = vmatpush1.bf16.msra.mxu0 %v1318_v25  ;;  %1447 = vmatpush1.bf16.msra.mxu1 %v1446_v26  ;;  %v479_v25 = vld [vmem:[#allocation2 + $0x5b0] sm:$0xff]  ;;  %v482_v26 = vld [vmem:[#allocation2 + $0x5c8] sm:$0xff] }
 0x130   :  { %1321 = vmatprep.subr.bf16.mxu0 %v1320_v29  ;;  %1449 = vmatprep.subr.bf16.mxu1 %v1448_v30  ;;  %v488_v29 = vld [vmem:[#allocation2 + $0x5f8] sm:$0xff]  ;;  %v118_v30 = vrot.slane %v1897_v43, %v117_v17  ;;  %v1466_v32 = vpack.c.bf16 %v479_v25, %v475_v24  ;;  %v1340_v35 = vpack.c.bf16 %v486_v27, %v482_v26  ;;  %v513_v24 = vld [vmem:[#allocation2 + $0x6c0] sm:$0xff]  ;;  %v531_v61 = vld [vmem:[#allocation2 + $0x750] sm:$0xff] }
 0x131   :  { %v1468_v36 = vpack.c.bf16 %v488_v29, %v484_v28  ;;  %v1342_v43 = vpack.c.bf16 %v485_v34, %v481_v33  ;;  %v517_v25 = vld [vmem:[#allocation2 + $0x6e0] sm:$0xff]  ;;  %v1484_v27 = vpack.c.bf16 %v520_v21, %v516_v20  ;;  %v515_v28 = vld [vmem:[#allocation2 + $0x6d0] sm:$0xff]  ;;  %v528_v33 = vld [vmem:[#allocation2 + $0x738] sm:$0xff] }
 0x132   :  { %v1921_v47 = vadd.f32 %v1910_v55, %v118_v30  ;;  %v1346_v55 = vpack.c.bf16 %v493_v50, %v489_v49  ;;  %v519_v29 = vld [vmem:[#allocation2 + $0x6f0] sm:$0xff]  ;;  %v522_v30 = vld [vmem:[#allocation2 + $0x708] sm:$0xff]  ;;  %v1358_v34 = vpack.c.bf16 %v517_v25, %v513_v24  ;;  %v532_v49 = vld [vmem:[#allocation2 + $0x758] sm:$0xff] }
 0x133   :  { %1323 = vmatpush1.bf16.msra.mxu0 %v1322_v37  ;;  %1451 = vmatpush1.bf16.msra.mxu1 %v1450_v38  ;;  %v483_v37 = vld [vmem:[#allocation2 + $0x5d0] sm:$0xff]  ;;  %v536_v50 = vld [vmem:[#allocation2 + $0x778] sm:$0xff] }
 0x134   :  { %1325 = vmatprep.subr.bf16.mxu0 %v1324_v45  ;;  %1453 = vmatprep.subr.bf16.mxu1 %v1452_v46  ;;  %v487_v38 = vld [vmem:[#allocation2 + $0x5f0] sm:$0xff]  ;;  %v492_v45 = vld [vmem:[#allocation2 + $0x618] sm:$0xff]  ;;  %v1492_v60 = vpack.c.bf16 %v536_v50, %v532_v49 }
 0x135   :  { %v496_v46 = vld [vmem:[#allocation2 + $0x638] sm:$0xff]  ;;  %v1470_v48 = vpack.c.bf16 %v487_v38, %v483_v37  ;;  %v525_v37 = vld [vmem:[#allocation2 + $0x720] sm:$0xff]  ;;  %v539_v7 = vld [vmem:[#allocation2 + $0x790] sm:$0xff] }
 0x136   :  { %v1472_v52 = vpack.c.bf16 %v496_v46, %v492_v45  ;;  %v523_v45 = vld [vmem:[#allocation2 + $0x710] sm:$0xff] }
 0x137   :  { %1327 = vmatpush1.bf16.msra.mxu0 %v1326_v58  ;;  %1455 = vmatpush1.bf16.msra.mxu1 %v1454_v59  ;;  %v498_v58 = vld [vmem:[#allocation2 + $0x648] sm:$0xff]  ;;  %v527_v46 = vld [vmem:[#allocation2 + $0x730] sm:$0xff] }
 0x138   :  { %1329 = vmatprep.subr.bf16.mxu0 %v1328_v62  ;;  %1457 = vmatprep.subr.bf16.mxu1 %v1456_v63  ;;  %v502_v59 = vld [vmem:[#allocation2 + $0x668] sm:$0xff]  ;;  %v1107_v62 = vmul.f32 -1.442695, %v1921_v47  ;;  %v1474_v63 = vpack.c.bf16 %v495_v56, %v491_v54  ;;  %v1490_v54 = vpack.c.bf16 %v527_v46, %v523_v45  ;;  %v529_v56 = vld [vmem:[#allocation2 + $0x740] sm:$0xff]  ;;  %v543_v8 = vld [vmem:[#allocation2 + $0x7b0] sm:$0xff] }
 0x139   :  { %v1348_v2 = vpack.c.bf16 %v502_v59, %v498_v58  ;;  %v533_v58 = vld [vmem:[#allocation2 + $0x760] sm:$0xff]  ;;  %v547_v20 = vld [vmem:[#allocation2 + $0x7d0] sm:$0xff]  ;;  %v938_v45 = vld [vmem:[%s2139_s5 + $0x198] sm:$0xff] }
 0x13a   :  { %1592 = vpow2.f32 %v1107_v62  ;;  %v535_v62 = vld [vmem:[#allocation2 + $0x770] sm:$0xff] }
 0x13b   :  { %1331 = vmatpush1.bf16.msra.mxu0 %v1330_v57  ;;  %1459 = vmatpush1.bf16.msra.mxu1 %v1458_v6  ;;  %v506_v57 = vld [vmem:[#allocation2 + $0x688] sm:$0xff]  ;;  %v551_v21 = vld [vmem:[#allocation2 + $0x7f0] sm:$0xff] }
 0x13c   :  { %1333 = vmatprep.subr.bf16.mxu0 %v1332_v9  ;;  %1461 = vmatprep.subr.bf16.mxu1 %v1460_v10  ;;  %v510_v6 = vld [vmem:[#allocation2 + $0x6a8] sm:$0xff]  ;;  %v1350_v9 = vpack.c.bf16 %v501_v1, %v497_v0  ;;  %v1478_v10 = vpack.c.bf16 %v503_v5, %v499_v4  ;;  %v540_v0 = vld [vmem:[#allocation2 + $0x798] sm:$0xff]  ;;  %v537_v4 = vld [vmem:[#allocation2 + $0x780] sm:$0xff] }
 0x13d   :  { %v1352_v13 = vpack.c.bf16 %v510_v6, %v506_v57  ;;  %v544_v1 = vld [vmem:[#allocation2 + $0x7b8] sm:$0xff]  ;;  %v541_v5 = vld [vmem:[#allocation2 + $0x7a0] sm:$0xff]  ;;  %v889_v46 = vld [vmem:[%s2139_s5 + $0x10] sm:$0xff] }
 0x13e   :  { %v1496_v6 = vpack.c.bf16 %v544_v1, %v540_v0  ;;  %v921_v50 = vld [vmem:[%s2139_s5 + $0x110] sm:$0xff]  ;;  %v923_v0 = vld [vmem:[%s2139_s5 + $0x120] sm:$0xff]  ;;  %v924_v1 = vld [vmem:[%s2139_s5 + $0x128] sm:$0xff] }
 0x13f   :  { %1335 = vmatpush1.bf16.msra.mxu0 %v1334_v18  ;;  %1463 = vmatpush1.bf16.msra.mxu1 %v1462_v19  ;;  %v514_v18 = vld [vmem:[#allocation2 + $0x6c8] sm:$0xff] }
 0x140   :  { %1337 = vmatprep.subr.bf16.mxu0 %v1336_v22  ;;  %1465 = vmatprep.subr.bf16.mxu1 %v1464_v23  ;;  %v518_v19 = vld [vmem:[#allocation2 + $0x6e8] sm:$0xff]  ;;  %v1354_v22 = vpack.c.bf16 %v509_v12, %v505_v11  ;;  %v1482_v23 = vpack.c.bf16 %v511_v16, %v507_v15  ;;  %v548_v11 = vld [vmem:[#allocation2 + $0x7d8] sm:$0xff]  ;;  %v545_v15 = vld [vmem:[#allocation2 + $0x7c0] sm:$0xff] }
 0x141   :  { %v1356_v26 = vpack.c.bf16 %v518_v19, %v514_v18  ;;  %v552_v12 = vld [vmem:[#allocation2 + $0x7f8] sm:$0xff]  ;;  %v549_v19 = vld [vmem:[#allocation2 + $0x7e0] sm:$0xff] }
 0x142   :  { %v1500_v18 = vpack.c.bf16 %v552_v12, %v548_v11  ;;  %v925_v11 = vld [vmem:[%s2139_s5 + $0x130] sm:$0xff]  ;;  %v926_v12 = vld [vmem:[%s2139_s5 + $0x138] sm:$0xff] }
 0x143   :  { %1339 = vmatpush1.bf16.msra.mxu0 %v1338_v31  ;;  %1467 = vmatpush1.bf16.msra.mxu1 %v1466_v32  ;;  %v526_v31 = vld [vmem:[#allocation2 + $0x728] sm:$0xff]  ;;  %v524_v32 = vld [vmem:[#allocation2 + $0x718] sm:$0xff] }
 0x144   :  { %1341 = vmatprep.subr.bf16.mxu0 %v1340_v35  ;;  %1469 = vmatprep.subr.bf16.mxu1 %v1468_v36  ;;  %v1486_v35 = vpack.c.bf16 %v519_v29, %v515_v28  ;;  %v521_v36 = vld [vmem:[#allocation2 + $0x700] sm:$0xff]  ;;  %v1593_v38 = vpop.eup %1592  ;;  %v1360_v39 = vpack.c.bf16 %v526_v31, %v522_v30  ;;  %v1488_v40 = vpack.c.bf16 %v528_v33, %v524_v32  ;;  %v936_v30 = vld [vmem:[%s2139_s5 + $0x188] sm:$0xff] }
 0x145   :  { %v935_v28 = vld [vmem:[%s2139_s5 + $0x180] sm:$0xff]  ;;  %v888_v31 = vld [vmem:[%s2139_s5 + $0x8] sm:$0xff] }
 0x146   :  { %v1536_v32 = vpack.c.bf16 %v936_v30, %v935_v28  ;;  %v914_v28 = vld [vmem:[%s2139_s5 + $0xd8] sm:$0xff] }
 0x147   :  { %1343 = vmatpush1.bf16.msra.mxu0 %v1342_v43  ;;  %1471 = vmatpush1.bf16.msra.mxu1 %v1470_v48  ;;  %v530_v43 = vld [vmem:[#allocation2 + $0x748] sm:$0xff] }
 0x148   :  { %1345 = vmatprep.subr.bf16.mxu0 %v1344_v51  ;;  %1473 = vmatprep.subr.bf16.mxu1 %v1472_v52  ;;  %v534_v48 = vld [vmem:[#allocation2 + $0x768] sm:$0xff]  ;;  %v283_v51 = vadd.f32 1.0, %v1593_v38  ;;  %v1362_v52 = vpack.c.bf16 %v525_v37, %v521_v36  ;;  %v905_v37 = vld [vmem:[%s2139_s5 + $0x90] sm:$0xff]  ;;  %v906_v38 = vld [vmem:[%s2139_s5 + $0x98] sm:$0xff] }
 0x149   :  { %v1364_v59 = vpack.c.bf16 %v534_v48, %v530_v43  ;;  %v890_v43 = vld [vmem:[%s2139_s5 + $0x18] sm:$0xff] }
 0x14a   :  { %1594 = vrcp.f32 %v283_v51  ;;  %v1510_v49 = vpack.c.bf16 %v890_v43, %v889_v46  ;;  %v922_v51 = vld [vmem:[%s2139_s5 + $0x118] sm:$0xff]  ;;  %v948_v46 = vld [vmem:[%s2139_s5 + $0x1e8] sm:$0xff]  ;;  %v899_v43 = vld [vmem:[%s2139_s5 + $0x60] sm:$0xff] }
 0x14b   :  { %1347 = vmatpush1.bf16.msra.mxu0 %v1346_v55  ;;  %1475 = vmatpush1.bf16.msra.mxu1 %v1474_v63  ;;  %v538_v55 = vld [vmem:[#allocation2 + $0x788] sm:$0xff] }
 0x14c   :  { %1349 = vmatprep.subr.bf16.mxu0 %v1348_v2  ;;  %1477 = vmatprep.subr.bf16.mxu1 %v1476_v3  ;;  %v542_v63 = vld [vmem:[#allocation2 + $0x7a8] sm:$0xff]  ;;  %v1366_v2 = vpack.c.bf16 %v533_v58, %v529_v56  ;;  %v1494_v3 = vpack.c.bf16 %v535_v62, %v531_v61  ;;  %v939_v58 = vld [vmem:[%s2139_s5 + $0x1a0] sm:$0xff] }
 0x14d   :  { %v1368_v57 = vpack.c.bf16 %v542_v63, %v538_v55  ;;  %v908_v56 = vld [vmem:[%s2139_s5 + $0xa8] sm:$0xff]  ;;  %v891_v61 = vld [vmem:[%s2139_s5 + $0x20] sm:$0xff] }
 0x14e   :  { %v892_v62 = vld [vmem:[%s2139_s5 + $0x28] sm:$0xff] }
 0x14f   :  { %1351 = vmatpush1.bf16.msra.mxu0 %v1350_v9  ;;  %1479 = vmatpush1.bf16.msra.mxu1 %v1478_v10  ;;  %v546_v9 = vld [vmem:[#allocation2 + $0x7c8] sm:$0xff]  ;;  %v1514_v63 = vpack.c.bf16 %v892_v62, %v891_v61  ;;  %v950_v61 = vld [vmem:[%s2139_s5 + $0x1f8] sm:$0xff]  ;;  %v901_v62 = vld [vmem:[%s2139_s5 + $0x70] sm:$0xff] }
 0x150   :  { %1353 = vmatprep.subr.bf16.mxu0 %v1352_v13  ;;  %1481 = vmatprep.subr.bf16.mxu1 %v1480_v14  ;;  %v550_v10 = vld [vmem:[#allocation2 + $0x7e8] sm:$0xff]  ;;  %v1370_v13 = vpack.c.bf16 %v541_v5, %v537_v4  ;;  %v1498_v14 = vpack.c.bf16 %v543_v8, %v539_v7  ;;  %v910_v4 = vld [vmem:[%s2139_s5 + $0xb8] sm:$0xff]  ;;  %v941_v5 = vld [vmem:[%s2139_s5 + $0x1b0] sm:$0xff] }
 0x151   :  { %v1372_v16 = vpack.c.bf16 %v550_v10, %v546_v9  ;;  %v893_v7 = vld [vmem:[%s2139_s5 + $0x30] sm:$0xff]  ;;  %v894_v8 = vld [vmem:[%s2139_s5 + $0x38] sm:$0xff] }
 0x152   :  { %v1518_v10 = vpack.c.bf16 %v894_v8, %v893_v7 }
 0x153   :  { %1355 = vmatpush1.bf16.msra.mxu0 %v1354_v22  ;;  %1483 = vmatpush1.bf16.msra.mxu1 %v1482_v23  ;;  %v1374_v22 = vpack.c.bf16 %v549_v19, %v545_v15  ;;  %v1502_v23 = vpack.c.bf16 %v551_v21, %v547_v20  ;;  %v912_v15 = vld [vmem:[%s2139_s5 + $0xc8] sm:$0xff]  ;;  %v895_v20 = vld [vmem:[%s2139_s5 + $0x40] sm:$0xff] }
 0x154   :  { %1357 = vmatprep.subr.bf16.mxu0 %v1356_v26  ;;  %1485 = vmatprep.subr.bf16.mxu1 %v1484_v27  ;;  %v1595_v24 = vpop.eup %1594  ;;  %v903_v26 = vld [vmem:[%s2139_s5 + $0x80] sm:$0xff]  ;;  %v904_v27 = vld [vmem:[%s2139_s5 + $0x88] sm:$0xff] }
 0x155   :  { %v295_v25 = vmul.f32 %v1595_v24, %v1921_v47  ;;  %v1504_v29 = vpack.c.bf16 %v904_v27, %v903_v26  ;;  %v887_v47 = vld [vmem:[%s2139_s5] sm:$0xff]  ;;  %v944_v19 = vld [vmem:[%s2139_s5 + $0x1c8] sm:$0xff]  ;;  %v913_v27 = vld [vmem:[%s2139_s5 + $0xd0] sm:$0xff] }
 0x156   :  { %v1506_v33 = vpack.c.bf16 %v888_v31, %v887_v47  ;;  %v896_v21 = vld [vmem:[%s2139_s5 + $0x48] sm:$0xff]  ;;  %v927_v24 = vld [vmem:[%s2139_s5 + $0x140] sm:$0xff]  ;;  %v1524_v30 = vpack.c.bf16 %v914_v28, %v913_v27  ;;  %v946_v47 = vld [vmem:[%s2139_s5 + $0x1d8] sm:$0xff] }
 0x157   :  { %1359 = vmatpush1.bf16.msra.mxu0 %v1358_v34  ;;  %1487 = vmatpush1.bf16.msra.mxu1 %v1486_v35  ;;  %v919_v34 = vld [vmem:[%s2139_s5 + $0x100] sm:$0xff]  ;;  %v920_v35 = vld [vmem:[%s2139_s5 + $0x108] sm:$0xff]  ;;  %v897_v31 = vld [vmem:[%s2139_s5 + $0x50] sm:$0xff] }
 0x158   :  { %1361 = vmatprep.subr.bf16.mxu0 %v1360_v39  ;;  %1489 = vmatprep.subr.bf16.mxu1 %v1488_v40  ;;  %v1538_v36 = vpack.c.bf16 %v920_v35, %v919_v34  ;;  %v937_v39 = vld [vmem:[%s2139_s5 + $0x190] sm:$0xff]  ;;  %v1508_v40 = vpack.c.bf16 %v906_v38, %v905_v37  ;;  %v915_v38 = vld [vmem:[%s2139_s5 + $0xe0] sm:$0xff] }
 0x159   :  { %v1540_v48 = vpack.c.bf16 %v938_v45, %v937_v39  ;;  %v929_v35 = vld [vmem:[%s2139_s5 + $0x150] sm:$0xff]  ;;  %v916_v39 = vld [vmem:[%s2139_s5 + $0xe8] sm:$0xff] }
 0x15a   :  { %v1528_v45 = vpack.c.bf16 %v916_v39, %v915_v38 }
 0x15b   :  { %1363 = vmatpush1.bf16.msra.mxu0 %v1362_v52  ;;  %1491 = vmatpush1.bf16.msra.mxu1 %v1490_v54  ;;  %v1542_v52 = vpack.c.bf16 %v922_v51, %v921_v50  ;;  %v907_v54 = vld [vmem:[%s2139_s5 + $0xa0] sm:$0xff] }
 0x15c   :  { %1365 = vmatprep.subr.bf16.mxu0 %v1364_v59  ;;  %1493 = vmatprep.subr.bf16.mxu1 %v1492_v60  ;;  %v1512_v59 = vpack.c.bf16 %v908_v56, %v907_v54  ;;  %v940_v60 = vld [vmem:[%s2139_s5 + $0x1a8] sm:$0xff]  ;;  %v931_v51 = vld [vmem:[%s2139_s5 + $0x160] sm:$0xff]  ;;  %v917_v56 = vld [vmem:[%s2139_s5 + $0xf0] sm:$0xff] }
 0x15d   :  { %v1544_v55 = vpack.c.bf16 %v940_v60, %v939_v58  ;;  %v918_v58 = vld [vmem:[%s2139_s5 + $0xf8] sm:$0xff] }
 0x15e   :  { %v1532_v60 = vpack.c.bf16 %v918_v58, %v917_v56 }
 0x15f   :  { %1367 = vmatpush1.bf16.msra.mxu0 %v1366_v2  ;;  %1495 = vmatpush1.bf16.msra.mxu1 %v1494_v3  ;;  %v1546_v2 = vpack.c.bf16 %v924_v1, %v923_v0  ;;  %v909_v3 = vld [vmem:[%s2139_s5 + $0xb0] sm:$0xff] }
 0x160   :  { %1369 = vmatprep.subr.bf16.mxu0 %v1368_v57  ;;  %1497 = vmatprep.subr.bf16.mxu1 %v1496_v6  ;;  %v1516_v57 = vpack.c.bf16 %v910_v4, %v909_v3  ;;  %v942_v6 = vld [vmem:[%s2139_s5 + $0x1b8] sm:$0xff]  ;;  %v933_v1 = vld [vmem:[%s2139_s5 + $0x170] sm:$0xff]  ;;  %v553_v4 = vld [vmem:[%s2138_s4] sm:$0xf] }
 0x161   :  { %v1548_v9 = vpack.c.bf16 %v942_v6, %v941_v5  ;;  %v558_v5 = vrot.slane %v553_v4, %v109_v42  ;;  %v562_v6 = vrot.slane %v553_v4, %v113_v44  ;;  %v570_v7 = vrot.slane %v553_v4, %v121_v53 }
 0x163   :  { %1371 = vmatpush1.bf16.msra.mxu0 %v1370_v13  ;;  %1499 = vmatpush1.bf16.msra.mxu1 %v1498_v14  ;;  %v1550_v13 = vpack.c.bf16 %v926_v12, %v925_v11  ;;  %v911_v14 = vld [vmem:[%s2139_s5 + $0xc0] sm:$0xff] }
 0x164   :  { %1373 = vmatprep.subr.bf16.mxu0 %v1372_v16  ;;  %1501 = vmatprep.subr.bf16.mxu1 %v1500_v18  ;;  %v943_v16 = vld [vmem:[%s2139_s5 + $0x1c0] sm:$0xff]  ;;  %v1520_v18 = vpack.c.bf16 %v912_v15, %v911_v14 }
 0x167   :  { %1375 = vmatpush1.bf16.msra.mxu0 %v1374_v22  ;;  %1503 = vmatpush1.bf16.msra.mxu1 %v1502_v23  ;;  %v1552_v22 = vpack.c.bf16 %v944_v19, %v943_v16  ;;  %v1522_v23 = vpack.c.bf16 %v896_v21, %v895_v20 }
 0x168   :  { %1505 = vmatprep.subr.bf16.mxu0 %v1504_v29  ;;  %1537 = vmatprep.subr.bf16.mxu1 %v1536_v32  ;;  %v945_v29 = vld [vmem:[%s2139_s5 + $0x1d0] sm:$0xff]  ;;  %v898_v32 = vld [vmem:[%s2139_s5 + $0x58] sm:$0xff] }
 0x169   :  { %v1526_v34 = vpack.c.bf16 %v898_v32, %v897_v31 }
 0x16a   :  { %711 = vmatmul.mubr.f32.vlgmr.msra.gmra.mrb[2].mxu0 %v295_v25  ;;  %853 = vmatmul.mubr.f32.vlgmr.msra.gmra.mrb[2].mxu1 %v295_v25  ;;  %v928_v25 = vld [vmem:[%s2139_s5 + $0x148] sm:$0xff] }
 0x16b   :  { %1507 = vmatpush3.bf16.msra.mxu0 %v1506_v33  ;;  %1539 = vmatpush3.bf16.msra.mxu1 %v1538_v36  ;;  %v1554_v26 = vpack.c.bf16 %v928_v25, %v927_v24  ;;  %v1556_v33 = vpack.c.bf16 %v946_v47, %v945_v29  ;;  %v930_v36 = vld [vmem:[%s2139_s5 + $0x158] sm:$0xff] }
 0x16c   :  { %1509 = vmatprep.subr.bf16.mxu0 %v1508_v40  ;;  %1541 = vmatprep.subr.bf16.mxu1 %v1540_v48  ;;  %v1558_v37 = vpack.c.bf16 %v930_v36, %v929_v35  ;;  %v947_v40 = vld [vmem:[%s2139_s5 + $0x1e0] sm:$0xff]  ;;  %v900_v48 = vld [vmem:[%s2139_s5 + $0x68] sm:$0xff] }
 0x16d   :  { %v1530_v50 = vpack.c.bf16 %v900_v48, %v899_v43 }
 0x16f   :  { %1511 = vmatpush3.bf16.msra.mxu0 %v1510_v49  ;;  %1543 = vmatpush3.bf16.msra.mxu1 %v1542_v52  ;;  %v1560_v49 = vpack.c.bf16 %v948_v46, %v947_v40  ;;  %v932_v52 = vld [vmem:[%s2139_s5 + $0x168] sm:$0xff] }
 0x170   :  { %1513 = vmatprep.subr.bf16.mxu0 %v1512_v59  ;;  %1545 = vmatprep.subr.bf16.mxu1 %v1544_v55  ;;  %v1562_v54 = vpack.c.bf16 %v932_v52, %v931_v51  ;;  %v949_v59 = vld [vmem:[%s2139_s5 + $0x1f0] sm:$0xff]  ;;  %v902_v55 = vld [vmem:[%s2139_s5 + $0x78] sm:$0xff] }
 0x171   :  { %v1534_v0 = vpack.c.bf16 %v902_v55, %v901_v62 }
 0x173   :  { %1515 = vmatpush3.bf16.msra.mxu0 %v1514_v63  ;;  %1547 = vmatpush3.bf16.msra.mxu1 %v1546_v2  ;;  %v1564_v63 = vpack.c.bf16 %v950_v61, %v949_v59  ;;  %v934_v2 = vld [vmem:[%s2139_s5 + $0x178] sm:$0xff] }
 0x174   :  { %1517 = vmatprep.subr.bf16.mxu0 %v1516_v57  ;;  %1549 = vmatprep.subr.bf16.mxu1 %v1548_v9  ;;  %v1566_v3 = vpack.c.bf16 %v934_v2, %v933_v1  ;;  %v566_v57 = vrot.slane %v553_v4, %v117_v17 }
 0x177   :  { %1519 = vmatpush3.bf16.msra.mxu0 %v1518_v10  ;;  %1551 = vmatpush3.bf16.msra.mxu1 %v1550_v13 }
 0x178   :  { %1521 = vmatprep.subr.bf16.mxu0 %v1520_v18  ;;  %1553 = vmatprep.subr.bf16.mxu1 %v1552_v22 }
 0x17b   :  { %1523 = vmatpush3.bf16.msra.mxu0 %v1522_v23  ;;  %1555 = vmatpush3.bf16.msra.mxu1 %v1554_v26 }
 0x17c   :  { %1525 = vmatprep.subr.bf16.mxu0 %v1524_v30  ;;  %1557 = vmatprep.subr.bf16.mxu1 %v1556_v33  ;;  %v1113_v33 = vld [vmem:[%s2140_s6] ss:$0 sm:$0xff] }
 0x17f   :  { %1527 = vmatpush3.bf16.msra.mxu0 %v1526_v34  ;;  %1559 = vmatpush3.bf16.msra.mxu1 %v1558_v37 }
 0x180   :  { %1529 = vmatprep.subr.bf16.mxu0 %v1528_v45  ;;  %1561 = vmatprep.subr.bf16.mxu1 %v1560_v49 }
 0x183   :  { %1531 = vmatpush3.bf16.msra.mxu0 %v1530_v50  ;;  %1563 = vmatpush3.bf16.msra.mxu1 %v1562_v54 }
 0x184   :  { %1533 = vmatprep.subr.bf16.mxu0 %v1532_v60  ;;  %1565 = vmatprep.subr.bf16.mxu1 %v1564_v63 }
 0x187   :  { %1535 = vmatpush3.bf16.msra.mxu0 %v1534_v0  ;;  %1567 = vmatpush3.bf16.msra.mxu1 %v1566_v3 }
 0x23d   :  { %v712_v8 = vpop.f32.mrb[2].mxu0  ;;  %v854_v9 = vpop.f32.mrb[2].mxu1 }
 0x23e   :  { %v1568_v10 = vadd.f32 %v712_v8, %v558_v5  ;;  %v1570_v11 = vadd.f32 %v854_v9, %v566_v57  ;;  %v714_v12 = vpop.f32.mrb[3].mxu0  ;;  %v856_v13 = vpop.f32.mrb[3].mxu1 }
 0x23f   :  { %v1569_v14 = vadd.f32 %v714_v12, %v562_v6  ;;  %v1571_v15 = vadd.f32 %v856_v13, %v570_v7 }
 0x240   :  { %v1109_v16 = vmul.f32 -1.442695, %v1568_v10  ;;  %v1111_v18 = vmul.f32 -1.442695, %v1570_v11 }
 0x241   :  { %v1110_v42 = vmul.f32 -1.442695, %v1569_v14  ;;  %v1112_v19 = vmul.f32 -1.442695, %v1571_v15 }
 0x242   :  { %1596 = vpow2.f32 %v1109_v16 }
 0x243   :  { %1598 = vpow2.f32 %v1111_v18 }
 0x244   :  { %1600 = vpow2.f32 %v1110_v42 }
 0x245   :  { %1602 = vpow2.f32 %v1112_v19 }
 0x24c   :  { %v1597_v44 = vpop.eup %1596 }
 0x24d   :  { %v1599_v17 = vpop.eup %1598  ;;  %v871_v41 = vadd.f32 1.0, %v1597_v44 }
 0x24e   :  { %v1601_v53 = vpop.eup %1600  ;;  %v873_v20 = vadd.f32 1.0, %v1599_v17 }
 0x24f   :  { %v1603_v21 = vpop.eup %1602  ;;  %1604 = vrcp.f32 %v871_v41  ;;  %v872_v22 = vadd.f32 1.0, %v1601_v53 }
 0x250   :  { %1606 = vrcp.f32 %v873_v20  ;;  %v874_v23 = vadd.f32 1.0, %v1603_v21 }
 0x251   :  { %1608 = vrcp.f32 %v872_v22 }
 0x252   :  { %1610 = vrcp.f32 %v874_v23 }
 0x259   :  { %v1605_v24 = vpop.eup %1604 }
 0x25a   :  { %v1607_v25 = vpop.eup %1606  ;;  %v883_v29 = vmul.f32 %v1605_v24, %v1568_v10 }
 0x25b   :  { %v1609_v26 = vpop.eup %1608  ;;  %v885_v47 = vmul.f32 %v1607_v25, %v1570_v11 }
 0x25c   :  { %v1611_v27 = vpop.eup %1610  ;;  %v884_v28 = vmul.f32 %v1609_v26, %v1569_v14 }
 0x25d   :  { %v886_v30 = vmul.f32 %v1611_v27, %v1571_v15 }
 0x25e   :  { %1022 = vmatprep.mubr.f32.mxu0 %v884_v28 }
 0x25f   :  { %1092 = vmatprep.mubr.f32.mxu1 %v886_v30  ;;  %1023 = vmatmul.mubr.f32.vlgmr.msra.gmra.mrb[4].mxu0 %v883_v29 }
 0x260   :  { %1093 = vmatmul.mubr.f32.vlgmr.msra.gmra.mrb[4].mxu1 %v885_v47 }
 0x332   :  { %v1146_v31 = vpop.f32.mrb[4].mxu0 }
 0x333   :  { %v1181_v32 = vpop.f32.mrb[4].mxu1  ;;  %v1147_v34 = vpop.f32.mrb[5].mxu0 }
 0x334   :  { %v1148_v35 = vadd.f32 %v1147_v34, %v1146_v31  ;;  %v1182_v36 = vpop.f32.mrb[5].mxu1 }
 0x335   :  { %v1183_v37 = vadd.f32 %v1182_v36, %v1181_v32 }
 0x336   :  { %v1025_v38 = vadd.f32 %v1148_v35, %v1113_v33 }
 0x338   :  { %v1095_v39 = vadd.f32 %v1183_v37, %v1025_v38 }
 0x33a   :  { %1099 = vst.msk [vmem:[%s2141_s7] sm:$0x3] %vm1098_vm0, %v1095_v39 }
 0x33b   :  { %1104 = vsyncpa [#allocation3], 1 }

// kernel: hifidiff_forward.14
= control target key start
LH: loop header
LB: loop body
LE: loop exit
PB: predicated region body
PF: predicated region fallthrough
CT: control target
= control target key end

     0   :  { %s1149_s21 = smov 0   ;;  %s1151_s22 = smov 0   ;;  %s1301_s0 = inlined_call_operand.vmem [shape: bf16[2,16,512], index: 0, kind: input, shape index: {}]   ;;  %s1302_s1 = inlined_call_operand.vmem [shape: f32[2,16,8], index: 1, kind: input, shape index: {}]   ;;  %s1303_s2 = inlined_call_operand.vmem [shape: bf16[512,8], index: 2, kind: input, shape index: {}]   ;;  %s1304_s3 = inlined_call_operand.vmem [shape: f32[1,8], index: 3, kind: input, shape index: {}]   ;;  %s1305_s4 = inlined_call_operand.vmem [shape: bf16[4,8], index: 4, kind: input, shape index: {}]   ;;  %s1306_s5 = inlined_call_operand.vmem [shape: f32[1,8], index: 5, kind: input, shape index: {}]   ;;  %s1307_s6 = inlined_call_operand.vmem [shape: f32[2,16,8], index: 6, kind: output, shape index: {}]  }
   0x1   :  { %s1153_s23 = smov 0  }
   0x2 LB: > { %s28_s24 = sadd.s32 1, %s1105_s22  ;;  %p905_p0 = scmp.ge.s32.totalorder %s1109_s23, 1  ;;  %s1109_s23 = sphi %s1153_s23, %s16_s23   ;;  %s1105_s22 = sphi %s1151_s22, %s1309_s22   ;;  %s1101_s21 = sphi %s1149_s21, %s1308_s21  }
   0x3   : > { %p30_p1 = scmp.ge.s32.totalorder %s28_s24, 2  ;;  %p251_p2 = scmp.lt.s32.totalorder %s1109_s23, 3 }
   0x5   : > { %s1311_s24 = smov (%p30_p1, %s28_s24), 0  ;;  %p252_p3 = pnand %p905_p0, %p251_p2 }
   0x6   : > { %v1037_v0 = vld [vmem:[%s1303_s2 + $0x40] sm:$0xff] (!%p252_p3)   ;;  %v1041_v4 = vld [vmem:[%s1303_s2 + $0x48] sm:$0xff] (!%p252_p3)   ;;  %v1045_v8 = vld [vmem:[%s1303_s2 + $0x50] sm:$0xff] (!%p252_p3)   ;;  %p300_p4 = scmp.lt.s32.totalorder (!%p252_p3), %s1101_s21, 1  ;;  %v1111_v36 = vmov (!%p252_p3), 0.0   ;;  %vm737_vm0 = vcmask (!%p252_p3), 1041408  }
   0x7   : > { %255 = sbr.rel (%p252_p3) target bundleno = 615 (0x267), region = 44  ;;  %v1038_v1 = vld [vmem:[%s1303_s2 + $0xc0] sm:$0xff] (!%p252_p3)   ;;  %958 = vmatprep.subr.bf16.mxu0 (!%p252_p3), %v1037_v0  ;;  %v1042_v5 = vld [vmem:[%s1303_s2 + $0xc8] sm:$0xff] (!%p252_p3)   ;;  %v1046_v9 = vld [vmem:[%s1303_s2 + $0xd0] sm:$0xff] (!%p252_p3)   ;;  %vm1112_vm1 = vmmov (!%p252_p3), 0   ;;  %s1113_s13 = smov (!%p252_p3), 124  }
   0x8   : > { %v1039_v2 = vld [vmem:[%s1303_s2] sm:$0xff] (!%p252_p3)   ;;  %980 = vmatprep.subr.bf16.mxu1 (!%p252_p3), %v1038_v1  ;;  %v1043_v6 = vld [vmem:[%s1303_s2 + $0x8] sm:$0xff] (!%p252_p3)   ;;  %v1047_v10 = vld [vmem:[%s1303_s2 + $0x10] sm:$0xff] (!%p252_p3)   ;;  %vm733_vm2 = vcmask (!%p252_p3), 31744   ;;  %vm790_vm3 = vcmask (!%p252_p3), 64512  }
   0x9   : > { %v1040_v3 = vld [vmem:[%s1303_s2 + $0x80] sm:$0xff] (!%p252_p3)   ;;  %959 = vmatpush3.bf16.msra.mxu0 (!%p252_p3), %v1039_v2  ;;  %v1044_v7 = vld [vmem:[%s1303_s2 + $0x88] sm:$0xff] (!%p252_p3)   ;;  %v1048_v11 = vld [vmem:[%s1303_s2 + $0x90] sm:$0xff] (!%p252_p3)  }
   0xa   : > { %981 = vmatpush3.bf16.msra.mxu1 (!%p252_p3), %v1040_v3  ;;  %960 = vmatprep.subr.bf16.mxu0 (!%p252_p3), %v1041_v4  ;;  %v1049_v12 = vld [vmem:[%s1303_s2 + $0x58] sm:$0xff] (!%p252_p3)   ;;  %v1053_v16 = vld [vmem:[%s1303_s2 + $0x60] sm:$0xff] (!%p252_p3)   ;;  %v1057_v20 = vld [vmem:[%s1303_s2 + $0x68] sm:$0xff] (!%p252_p3)  }
   0xb   : > { %982 = vmatprep.subr.bf16.mxu1 (!%p252_p3), %v1042_v5  ;;  %v1050_v13 = vld [vmem:[%s1303_s2 + $0xd8] sm:$0xff] (!%p252_p3)   ;;  %v1054_v17 = vld [vmem:[%s1303_s2 + $0xe0] sm:$0xff] (!%p252_p3)   ;;  %v1058_v21 = vld [vmem:[%s1303_s2 + $0xe8] sm:$0xff] (!%p252_p3)  }
   0xc   : > { %v1051_v14 = vld [vmem:[%s1303_s2 + $0x18] sm:$0xff] (!%p252_p3)   ;;  %v1055_v18 = vld [vmem:[%s1303_s2 + $0x20] sm:$0xff] (!%p252_p3)   ;;  %v1059_v22 = vld [vmem:[%s1303_s2 + $0x28] sm:$0xff] (!%p252_p3)  }
   0xd   : > { %961 = vmatpush3.bf16.msra.mxu0 (!%p252_p3), %v1043_v6  ;;  %v1052_v15 = vld [vmem:[%s1303_s2 + $0x98] sm:$0xff] (!%p252_p3)   ;;  %v1056_v19 = vld [vmem:[%s1303_s2 + $0xa0] sm:$0xff] (!%p252_p3)   ;;  %v1060_v23 = vld [vmem:[%s1303_s2 + $0xa8] sm:$0xff] (!%p252_p3)  }
   0xe   : > { %983 = vmatpush3.bf16.msra.mxu1 %v1044_v7  ;;  %962 = vmatprep.subr.bf16.mxu0 %v1045_v8  ;;  %s1313_s21 = smov (!%p300_p4, %s1101_s21), 1  ;;  %v1061_v24 = vld [vmem:[%s1303_s2 + $0x70] sm:$0xff]   ;;  %v1065_v28 = vld [vmem:[%s1303_s2 + $0x78] sm:$0xff]   ;;  %v912_v39 = vld [vmem:[%s1304_s3] ss:$0 sm:$0xff] }
   0xf   : > { %984 = vmatprep.subr.bf16.mxu1 %v1046_v9  ;;  %v1062_v25 = vld [vmem:[%s1303_s2 + $0xf0] sm:$0xff]   ;;  %s955_s15 = sshll.u32 %s1313_s21, 5  ;;  %v1066_v29 = vld [vmem:[%s1303_s2 + $0xf8] sm:$0xff]   ;;  %v725_v53 = vld [vmem:[%s1305_s4] sm:$0x3]  ;;  %s956_s14 = sshll.u32 %s1313_s21, 4 }
  0x10   : > { %v1063_v26 = vld [vmem:[%s1303_s2 + $0x30] sm:$0xff]   ;;  %s308_s28 = scalar_lea.vmem %s1301_s0, %s955_s15  ;;  %v1067_v30 = vld [vmem:[%s1303_s2 + $0x38] sm:$0xff]   ;;  %v739_v54 = vsel %vm737_vm0, %v725_v53, 0  ;;  %s318_s17 = scalar_lea.vmem %s1302_s1, %s956_s14  ;;  %v951_v7 = vld [vmem:[%s1306_s5] ss:$0 sm:$0xff] }
  0x11   : > { %963 = vmatpush3.bf16.msra.mxu0 %v1047_v10  ;;  %v1064_v27 = vld [vmem:[%s1303_s2 + $0xb0] sm:$0xff]   ;;  %v1068_v31 = vld [vmem:[%s1303_s2 + $0xb8] sm:$0xff]   ;;  %v782_v9 = vld [vmem:[%s318_s17] sm:$0xff]  ;;  %s328_s21 = scalar_lea.vmem %s1307_s6, %s956_s14 }
  0x12   : > { %985 = vmatpush3.bf16.msra.mxu1 %v1048_v11  ;;  %964 = vmatprep.subr.bf16.mxu0 %v1049_v12  ;;  %v1069_v32 = vld [vmem:[%s308_s28] ss:$16 sps:$4 sm:$0xff]   ;;  %v1071_v33 = vld [vmem:[%s308_s28 + $0x4] ss:$16 sps:$4 sm:$0xff]   ;;  %v1072_v34 = vld [vmem:[%s308_s28 + $0x8] ss:$16 sps:$4 sm:$0xff]  }
  0x13   : > { %986 = vmatprep.subr.bf16.mxu1 %v1050_v13  ;;  %v1074_v35 = vld [vmem:[%s308_s28 + $0xc] ss:$16 sps:$4 sm:$0xff]   ;;  %650 = vmatprep.mubr.bf16.mxu0 %v1071_v33 }
  0x14   : > { %691 = vmatprep.mubr.bf16.mxu1 %v1074_v35  ;;  %v783_v13 = vld [vmem:[%s318_s17 + $0x8] sm:$0xff] }
  0x15   : > { %965 = vmatpush3.bf16.msra.mxu0 %v1051_v14 }
  0x16   : > { %987 = vmatpush3.bf16.msra.mxu1 %v1052_v15  ;;  %966 = vmatprep.subr.bf16.mxu0 %v1053_v16 }
  0x17   : > { %988 = vmatprep.subr.bf16.mxu1 %v1054_v17 }
  0x19   : > { %967 = vmatpush3.bf16.msra.mxu0 %v1055_v18 }
  0x1a   : > { %989 = vmatpush3.bf16.msra.mxu1 %v1056_v19  ;;  %968 = vmatprep.subr.bf16.mxu0 %v1057_v20 }
  0x1b   : > { %990 = vmatprep.subr.bf16.mxu1 %v1058_v21 }
  0x1d   : > { %969 = vmatpush3.bf16.msra.mxu0 %v1059_v22 }
  0x1e   : > { %991 = vmatpush3.bf16.msra.mxu1 %v1060_v23  ;;  %970 = vmatprep.subr.bf16.mxu0 %v1061_v24 }
  0x1f   : > { %992 = vmatprep.subr.bf16.mxu1 %v1062_v25 }
  0x21   : > { %971 = vmatpush3.bf16.msra.mxu0 %v1063_v26 }
  0x22   : > { %993 = vmatpush3.bf16.msra.mxu1 %v1064_v27  ;;  %972 = vmatprep.subr.bf16.mxu0 %v1065_v28 }
  0x23   : > { %994 = vmatprep.subr.bf16.mxu1 %v1066_v29 }
  0x25   : > { %973 = vmatpush3.bf16.msra.mxu0 %v1067_v30 }
  0x26   : > { %995 = vmatpush3.bf16.msra.mxu1 %v1068_v31  ;;  %1004 = vmatprep.subr.bf16.mxu0 %v1111_v36 }
  0x28   : > { %651 = vmatmul.mubr.bf16.vlgmr.msra.gmra.mrb[0].mxu0 %v1069_v32 }
  0x29   : > { %692 = vmatmul.mubr.bf16.vlgmr.msra.gmra.mrb[0].mxu1 %v1072_v34  ;;  %1005 = vmatpush3.bf16.msra.mxu0 %v739_v54 }
  0x2a   : > { %1006 = vmatprep.mubr.msk.bf16.mxu0 %vm1112_vm1, %v1111_v36 }
  0xfb   : > { %v974_v37 = vpop.f32.mrb[0].mxu0 }
  0xfc   : > { %v996_v38 = vpop.f32.mrb[0].mxu1  ;;  %v975_v40 = vpop.f32.mrb[1].mxu0 }
  0xfd   : > { %v976_v41 = vadd.f32 %v975_v40, %v974_v37  ;;  %v997_v42 = vpop.f32.mrb[1].mxu1  ;;  %v977_v43 = vpop.f32.mrb[2].mxu0 }
  0xfe   : > { %v998_v44 = vadd.f32 %v997_v42, %v996_v38  ;;  %v999_v45 = vpop.f32.mrb[2].mxu1  ;;  %v978_v46 = vpop.f32.mrb[3].mxu0 }
  0xff   : > { %v653_v47 = vadd.f32 %v976_v41, %v912_v39  ;;  %v979_v48 = vadd.f32 %v978_v46, %v977_v43  ;;  %v1000_v49 = vpop.f32.mrb[3].mxu1 }
 0x100   : > { %v1001_v50 = vadd.f32 %v1000_v49, %v999_v45 }
 0x101   : > { %v694_v51 = vadd.f32 %v998_v44, %v653_v47  ;;  %v656_v52 = vadd.f32 %v979_v48, %v912_v39 }
 0x103   : > { %1075 = vtanh.f32 %v694_v51  ;;  %v697_v55 = vadd.f32 %v1001_v50, %v656_v52  ;;  %v949_v58 = vmul.f32 -1.442695, %v694_v51 }
 0x105   : > { %1077 = vtanh.f32 %v697_v55  ;;  %v950_v59 = vmul.f32 -1.442695, %v697_v55 }
 0x106   : > { %1079 = vpow2.f32 %v949_v58 }
 0x107   : > { %1081 = vpow2.f32 %v950_v59 }
 0x10d   : > { %v1076_v56 = vpop.eup %1075 }
 0x10e   : > { %716 = vrot.lane.b32.xlu0 %v1076_v56, %s1113_s13 }
 0x10f   : > { %v1078_v57 = vpop.eup %1077 }
 0x110   : > { %v1080_v60 = vpop.eup %1079 }
 0x111   : > { %v1082_v61 = vpop.eup %1081  ;;  %v706_v62 = vadd.f32 1.0, %v1080_v60 }
 0x112   : > { %718 = vrot.lane.b32.xlu0 %v1078_v57, %s1113_s13  ;;  %v707_v63 = vadd.f32 1.0, %v1082_v61 }
 0x113   : > { %1083 = vrcp.f32 %v706_v62 }
 0x114   : > { %1085 = vrcp.f32 %v707_v63 }
 0x11d   : > { %v1084_v1 = vpop.eup %1083 }
 0x11e   : > { %v1086_v2 = vpop.eup %1085 }
 0x180   : > { %v717_v0 = vpop.permute.xlu0 %716 }
 0x181   : > { %v722_v4 = vmul.f32 %v1084_v1, %v717_v0 }
 0x184   : > { %v719_v3 = vpop.permute.xlu0 %718 }
 0x185   : > { %v723_v5 = vmul.f32 %v1086_v2, %v719_v3 }
 0x187   : > { %v724_v6 = vpack.c.bf16 %v723_v5, %v722_v4 }
 0x189   : > { %1007 = vmatmul.mubr.msk.bf16.vlgmr.msra.gmra.mrb[4].mxu0 %vm733_vm2, %v724_v6 }
 0x25c   : > { %v775_v8 = vpop.f32.mrb[4].mxu0 }
 0x25d   : > { %v776_v10 = vadd.f32 %v951_v7, %v775_v8  ;;  %v1008_v11 = vpop.f32.mrb[5].mxu0 }
 0x25e   : > { %v778_v12 = vpop.f32.mrb[6].mxu0 }
 0x25f   : > { %v784_v14 = vadd.f32 %v782_v9, %v776_v10  ;;  %v779_v15 = vadd.f32 %v951_v7, %v778_v12  ;;  %v1009_v16 = vpop.f32.mrb[7].mxu0 }
 0x261   : > { %v786_v17 = vmul.f32 0.70710677, %v784_v14  ;;  %v785_v18 = vadd.f32 %v783_v13, %v779_v15 }
 0x263   : > { %v788_v19 = vsel %vm733_vm2, %v786_v17, %v784_v14  ;;  %v787_v20 = vmul.f32 0.70710677, %v785_v18 }
 0x264   : > { %791 = vst.msk [vmem:[%s328_s21] sm:$0xff] %vm790_vm3, %v788_v19 }
 0x265   : > { %v789_v21 = vsel %vm733_vm2, %v787_v20, %v785_v18 }
 0x266   : > { %792 = vst.msk [vmem:[%s328_s21 + $0x8] sm:$0xff] %vm790_vm3, %v789_v21 }
 0x267 PF: > { %s16_s23 = sadd.s32 1, %s1109_s23   ;;  %s1308_s21 = smov %s1105_s22 }
 0x268   : > { %p13_p5 = scmp.ge.s32.totalorder %s16_s23, 4   ;;  %s1309_s22 = smov %s1311_s24 }
 0x26a   :  { %15 = sbr.rel (!%p13_p5) target bundleno = 2 (0x2), region = 77 }

// kernel: hifidiff_forward.19
= control target key start
LH: loop header
LB: loop body
LE: loop exit
PB: predicated region body
PF: predicated region fallthrough
CT: control target
= control target key end

     0   :  { %s560_s20 = smov 0   ;;  %s562_s21 = smov 0   ;;  %s612_s0 = inlined_call_operand.vmem [shape: f32[2,16,8], index: 0, kind: input, shape index: {}]   ;;  %s613_s1 = inlined_call_operand.vmem [shape: bf16[4,4], index: 1, kind: input, shape index: {}]   ;;  %s614_s2 = inlined_call_operand.vmem [shape: f32[1,4], index: 2, kind: input, shape index: {}]   ;;  %s615_s3 = inlined_call_operand.vmem [shape: f32[1,4], index: 3, kind: input, shape index: {}]   ;;  %s616_s4 = inlined_call_operand.<no memory space> [shape: f32[1,1], index: 4, kind: input, shape index: {}]   ;;  %s617_s5 = inlined_call_operand.vmem [shape: f32[2,16,1], index: 5, kind: output, shape index: {}]  }
   0x1   :  { %v10_v0 = vstv %s616_s4  ;;  %s564_s22 = smov 0  }
   0x2   :  { %11 = vst [vmem:[#allocation2] sm:$0x1] %v10_v0 }
   0x3 LB: > { %s29_s4 = sadd.s32 1, %s518_s21  ;;  %p452_p0 = scmp.ge.s32.totalorder %s522_s22, 1  ;;  %s522_s22 = sphi %s564_s22, %s17_s22   ;;  %s518_s21 = sphi %s562_s21, %s619_s21   ;;  %s514_s20 = sphi %s560_s20, %s618_s20  }
   0x4   : > { %p31_p1 = scmp.ge.s32.totalorder %s29_s4, 2  ;;  %p210_p2 = scmp.lt.s32.totalorder %s522_s22, 3 }
   0x6   : > { %s621_s4 = smov (%p31_p1, %s29_s4), 0  ;;  %p211_p3 = pnand %p452_p0, %p210_p2 }
   0x7   : > { %p247_p4 = scmp.lt.s32.totalorder (!%p211_p3), %s514_s20, 1  ;;  %v272_v1 = vld [vmem:[%s613_s1] sm:$0x3] (!%p211_p3)  ;;  %vm287_vm0 = vcmask (!%p211_p3), 1041408   ;;  %v524_v2 = vmov (!%p211_p3), 0.0   ;;  %vm525_vm1 = vmmov (!%p211_p3), 0  }
   0x8   : > { %214 = sbr.rel (%p211_p3) target bundleno = 504 (0x1f8), region = 40  ;;  %467 = vmatprep.subr.bf16.mxu0 (!%p211_p3), %v524_v2  ;;  %v289_v3 = vsel (!%p211_p3), %vm287_vm0, %v272_v1, 0  ;;  %469 = vmatprep.mubr.msk.bf16.mxu0 (!%p211_p3), %vm525_vm1, %v524_v2  ;;  %s526_s29 = smov (!%p211_p3), 124   ;;  %vm283_vm2 = vcmask (!%p211_p3), 31744   ;;  %v457_v10 = vld [vmem:[%s614_s2] ss:$0 sm:$0xff] (!%p211_p3) }
   0x9   : > { %468 = vmatpush3.bf16.msra.mxu0 (!%p211_p3), %v289_v3  ;;  %v459_v15 = vld [vmem:[%s615_s3] ss:$0 sm:$0xff] (!%p211_p3)  ;;  %vm358_vm3 = vcmask (!%p211_p3), 7168  }
   0xa   : > { %v460_v24 = vld [vmem:[#allocation2] ss:$0 sm:$0xff] (!%p211_p3) }
   0xf   : > { %s623_s20 = smov (!%p247_p4, %s514_s20), 1 }
  0x10   : > { %s463_s25 = sshll.u32 %s623_s20, 4 }
  0x11   : > { %s254_s28 = scalar_lea.vmem %s612_s0, %s463_s25  ;;  %s264_s11 = scalar_lea.vmem %s617_s5, %s463_s25 }
  0x12   : > { %v267_v4 = vld [vmem:[%s254_s28] sm:$0xff]  ;;  %v268_v5 = vld [vmem:[%s254_s28 + $0x8] sm:$0xff] }
  0x13   : > { %v269_v6 = vmul.f32 0.70710677, %v267_v4  ;;  %v270_v7 = vmul.f32 0.70710677, %v268_v5 }
  0x15   : > { %v271_v8 = vpack.c.bf16 %v270_v7, %v269_v6 }
  0x17   : > { %281 = vrot.lane.b32.xlu0 %v271_v8, %s526_s29 }
  0x89   : > { %v282_v9 = vpop.permute.xlu0 %281 }
  0x8a   : > { %470 = vmatmul.mubr.msk.bf16.vlgmr.msra.gmra.mrb[0].mxu0 %vm283_vm2, %v282_v9 }
 0x15d   : > { %v325_v11 = vpop.f32.mrb[0].mxu0 }
 0x15e   : > { %v326_v12 = vadd.f32 %v457_v10, %v325_v11  ;;  %v471_v13 = vpop.f32.mrb[1].mxu0 }
 0x15f   : > { %v328_v14 = vpop.f32.mrb[2].mxu0 }
 0x160   : > { %v332_v16 = vmax.f32 %v326_v12, 0.0  ;;  %v329_v17 = vadd.f32 %v457_v10, %v328_v14  ;;  %v472_v18 = vpop.f32.mrb[3].mxu0 }
 0x162   : > { %v333_v19 = vmax.f32 %v329_v17, 0.0  ;;  %v341_v20 = vmul.f32 %v459_v15, %v332_v16 }
 0x164   : > { %v343_v21 = vsel %vm283_vm2, %v341_v20, 0.0  ;;  %v342_v22 = vmul.f32 %v459_v15, %v333_v19 }
 0x165   : > { %344 = vadd.xlane.f32.xlu0 %v343_v21 }
 0x166   : > { %v346_v23 = vsel %vm283_vm2, %v342_v22, 0.0 }
 0x167   : > { %347 = vadd.xlane.f32.xlu1 %v346_v23 }
 0x1f2   : > { %v345_v25 = vpop.xlane.xlu0 %344 }
 0x1f3   : > { %v356_v26 = vadd.f32 %v460_v24, %v345_v25 }
 0x1f4   : > { %v348_v27 = vpop.xlane.xlu1 %347 }
 0x1f5   : > { %359 = vst.msk [vmem:[%s264_s11] sm:$0xff] %vm358_vm3, %v356_v26  ;;  %v357_v28 = vadd.f32 %v460_v24, %v348_v27 }
 0x1f7   : > { %360 = vst.msk [vmem:[%s264_s11 + $0x8] sm:$0xff] %vm358_vm3, %v357_v28 }
 0x1f8 PF: > { %s17_s22 = sadd.s32 1, %s522_s22   ;;  %s618_s20 = smov %s518_s21 }
 0x1f9   : > { %p14_p5 = scmp.ge.s32.totalorder %s17_s22, 4   ;;  %s619_s21 = smov %s621_s4 }
 0x1fb   :  { %16 = sbr.rel (!%p14_p5) target bundleno = 3 (0x3), region = 70 }

</bundles_post_ra>
